<compile_context>
chip_gen: v7x
topology: tpu7x:2x2x1
jax: 0.10.0
libtpu: 0.0.40
codegen_flags: <defaults>
</compile_context>

<pallas_src>
import jax
import jax.numpy as jnp
from jax.experimental import pallas as pl
from jax.experimental.pallas import tpu as pltpu

# ----- hyperparameters (small but structurally consistent with the module) -----
NC = 3          # image channels (nc)
NDF = 8         # base discriminator width (ndf)
TXT_SIZE = 16   # raw text-embedding size (txt_size)
NT = 8          # projected text size (nt)
IMG = 128       # 4 stride-2 convs -> 8x8, required by h2.repeat(1, 1, 8, 8)
BATCH = 2
LRELU = 0.2
BN_EPS = 1e-5


# ------------------------------ Pallas kernels ---------------------------------
def matmul_t_lrelu_kernel(w_ref, p_ref, o_ref):
    # out^T = W^T @ patches^T, LeakyReLU epilogue in f32, stored bf16.
    y = jnp.dot(w_ref[...], p_ref[...], preferred_element_type=jnp.float32)
    y = jnp.where(y > 0, y, LRELU * y)
    o_ref[...] = y.astype(o_ref.dtype)


def matmul_t_bn_lrelu_kernel(w_ref, p_ref, g_ref, b_ref, o_ref):
    # Whole (Cout, M) tile lives in VMEM -> BatchNorm batch statistics are
    # computed in-kernel (single pass: sum + sum-of-squares, biased variance).
    y = jnp.dot(w_ref[...], p_ref[...], preferred_element_type=jnp.float32)
    m = y.shape[1]                                   # static: N * Ho * Wo
    s1 = jnp.sum(y, axis=1, keepdims=True)
    s2 = jnp.sum(y * y, axis=1, keepdims=True)
    mean = s1 * (1.0 / m)
    var = jnp.maximum(s2 * (1.0 / m) - mean * mean, 0.0)
    y = (y - mean) * jax.lax.rsqrt(var + BN_EPS)
    y = y * g_ref[...] + b_ref[...]
    y = jnp.where(y > 0, y, LRELU * y)
    o_ref[...] = y.astype(o_ref.dtype)


def seq3_fused_kernel(p_ref, w5_ref, g_ref, b_ref, w6_ref, gsel_ref, o_ref):
    # conv5 (as W5^T @ patches^T) + BN(batch stats) + LeakyReLU.
    y = jnp.dot(w5_ref[...], p_ref[...], preferred_element_type=jnp.float32)  # (128, N*16)
    m = y.shape[1]
    s1 = jnp.sum(y, axis=1, keepdims=True)
    s2 = jnp.sum(y * y, axis=1, keepdims=True)
    mean = s1 * (1.0 / m)
    var = jnp.maximum(s2 * (1.0 / m) - mean * mean, 0.0)
    y = (y - mean) * jax.lax.rsqrt(var + BN_EPS)
    y = y * g_ref[...] + b_ref[...]
    act = jnp.where(y > 0, y, LRELU * y)                                      # (128, N*16)
    # conv6 (k=4, s=1, p=0 on a 4x4 map) == full reduction over (h, w, cin):
    # elementwise multiply by the column-matched weight, reduce channels
    # (sublanes), then reduce each sample's 16 spatial columns via a 0/1 mask.
    r = jnp.sum(act * w6_ref[...], axis=0, keepdims=True)                     # (1, N*16)
    out = jnp.sum(r * gsel_ref[...], axis=1, keepdims=True)                   # (N, 1)
    o_ref[...] = jax.nn.sigmoid(out)


# ------------------------------ pallas_call glue --------------------------------
def _pallas_matmul_t(kernel, w_t, p_t, extras=(), tile_m=None,
                     out_dtype=jnp.float32):
    """out^T (Cout, M) = fused(kernel)(w_t (Cout, K) @ p_t (K, M), *extras)."""
    cout, k = w_t.shape
    k2, m = p_t.shape
    assert k == k2
    if tile_m is None or m % tile_m != 0:
        tile_m = m
    grid = (m // tile_m,)
    in_specs = [
        pl.BlockSpec((cout, k), lambda i: (0, 0)),       # weights: resident
        pl.BlockSpec((k, tile_m), lambda i: (0, i)),     # patches: tiled on M (lanes)
    ]
    for e in extras:
        in_specs.append(pl.BlockSpec(e.shape, lambda i: (0, 0)))
    return pl.pallas_call(
        kernel,
        out_shape=jax.ShapeDtypeStruct((cout, m), out_dtype),
        grid=grid,
        in_specs=in_specs,
        out_specs=pl.BlockSpec((cout, tile_m), lambda i: (0, i)),
        compiler_params=pltpu.CompilerParams(dimension_semantics=("parallel",)),
    )(w_t, p_t, *extras)


def im2col_t(x, k, stride, pad):
    """x: (N,H,W,C) NHWC -> patches^T (k*k*C, N*Ho*Wo).
    Row order = (kh, kw, c_in); column order = (n, ho, wo)."""
    if pad:
        x = jnp.pad(x, ((0, 0), (pad, pad), (pad, pad), (0, 0)))
    n, h, w, c = x.shape
    ho = (h - k) // stride + 1
    wo = (w - k) // stride + 1
    cols = []
    for i in range(k):
        for j in range(k):
            cols.append(x[:, i:i + stride * ho:stride, j:j + stride * wo:stride, :])
    p = jnp.stack(cols, axis=3)                        # (N, Ho, Wo, k*k, C)
    p = jnp.transpose(p, (3, 4, 0, 1, 2))              # (k*k, C, N, Ho, Wo)
    return p.reshape(k * k * c, n * ho * wo), (n, ho, wo)


def _wmat_t(w):
    # PyTorch conv weight (Cout, Cin, kh, kw) -> (Cout, kh*kw*Cin), matching
    # the im2col_t row order.
    return jnp.transpose(w, (0, 2, 3, 1)).reshape(w.shape[0], -1)


def t_to_nhwc(y_t, n, ho, wo):
    c = y_t.shape[0]
    return jnp.transpose(y_t.reshape(c, n, ho, wo), (1, 2, 3, 0))


def conv_t_lrelu(x_nhwc, w, tile_m=None):
    p_t, dims = im2col_t(x_nhwc, 4, 2, 1)
    y_t = _pallas_matmul_t(matmul_t_lrelu_kernel,
                           _wmat_t(w).astype(jnp.bfloat16),
                           p_t.astype(jnp.bfloat16),
                           tile_m=tile_m, out_dtype=jnp.bfloat16)
    return y_t, dims


def conv_t_bn_lrelu(x_nhwc, w, gamma, beta):
    # NOTE: BN batch statistics are computed in-kernel over the FULL
    # (Cout, N*Ho*Wo) tile -> this layer must never be tiled along M
    # (tile_m is deliberately not exposed here).
    p_t, dims = im2col_t(x_nhwc, 4, 2, 1)
    y_t = _pallas_matmul_t(matmul_t_bn_lrelu_kernel,
                           _wmat_t(w).astype(jnp.bfloat16),
                           p_t.astype(jnp.bfloat16),
                           extras=(gamma.reshape(-1, 1), beta.reshape(-1, 1)),
                           tile_m=None, out_dtype=jnp.bfloat16)
    return y_t, dims


def seq3_fused(h3_nhwc, w5, g5, b5, w6):
    """conv5(+BN+LReLU) + conv6 + sigmoid in a single pallas_call.
    h3_nhwc: (N, 8, 8, ndf*8+nt) bf16 -> (N, 1) f32 (sigmoid)."""
    p_t, (n, ho, wo) = im2col_t(h3_nhwc, 4, 2, 1)           # (1152, N*16)
    m5 = p_t.shape[1]
    w5_t = _wmat_t(w5).astype(jnp.bfloat16)                  # (128, 1152)
    c5 = w5_t.shape[0]
    # conv6 weight arranged to match the (n, ho, wo) column layout of conv5's
    # transposed output: w6_tiled[c, n*16 + h*4 + w] = w6[0, c, h, w].
    w6_tiled = jnp.tile(w6[0].reshape(c5, ho * wo), (1, n))  # (128, N*16) f32
    # 0/1 selector summing each sample's ho*wo columns: gsel[j, m] = (m//16==j).
    gsel = (jnp.arange(m5)[None, :] // (ho * wo)
            == jnp.arange(n)[:, None]).astype(jnp.float32)   # (N, N*16)
    return pl.pallas_call(
        seq3_fused_kernel,
        out_shape=jax.ShapeDtypeStruct((n, 1), jnp.float32),
        grid=(1,),
        in_specs=[
            pl.BlockSpec(p_t.shape, lambda i: (0, 0)),
            pl.BlockSpec(w5_t.shape, lambda i: (0, 0)),
            pl.BlockSpec((c5, 1), lambda i: (0, 0)),
            pl.BlockSpec((c5, 1), lambda i: (0, 0)),
            pl.BlockSpec(w6_tiled.shape, lambda i: (0, 0)),
            pl.BlockSpec(gsel.shape, lambda i: (0, 0)),
        ],
        out_specs=pl.BlockSpec((n, 1), lambda i: (0, 0)),
        compiler_params=pltpu.CompilerParams(dimension_semantics=("arbitrary",)),
    )(p_t.astype(jnp.bfloat16), w5_t,
      g5.reshape(-1, 1), b5.reshape(-1, 1), w6_tiled, gsel)


# ------------------------------ the full forward --------------------------------
def discriminator_forward(params, img_nchw, txt_emb):
    n = img_nchw.shape[0]
    x = jnp.transpose(img_nchw, (0, 2, 3, 1)).astype(jnp.bfloat16)  # NCHW -> NHWC
    # seq1
    y1, (_, h1, w1) = conv_t_lrelu(x, params["c1_w"], tile_m=4096)   # (8, N*64*64)
    x1 = t_to_nhwc(y1, n, h1, w1)                                    # (N,64,64,8)
    y2, (_, h2_, w2_) = conv_t_bn_lrelu(x1, params["c2_w"],
                                        params["bn2_g"], params["bn2_b"])
    x2 = t_to_nhwc(y2, n, h2_, w2_)                                  # (N,32,32,16)
    y3, (_, h3_, w3_) = conv_t_bn_lrelu(x2, params["c3_w"],
                                        params["bn3_g"], params["bn3_b"])
    x3 = t_to_nhwc(y3, n, h3_, w3_)                                  # (N,16,16,32)
    y4, (_, h4_, w4_) = conv_t_bn_lrelu(x3, params["c4_w"],
                                        params["bn4_g"], params["bn4_b"])
    x4 = t_to_nhwc(y4, n, h4_, w4_)                                  # (N,8,8,64)
    # seq2: tiny Linear + LeakyReLU — left to XLA (a pallas_call here is
    # pure launch overhead for 256 MACs).
    h2 = txt_emb @ params["fc_w"].T + params["fc_b"]
    h2 = jnp.where(h2 > 0, h2, LRELU * h2)                           # (N, nt)
    # unsqueeze + repeat(1,1,8,8) + cat(dim=channel)
    h2b = jnp.broadcast_to(h2[:, None, None, :], (n, 8, 8, NT))
    h3cat = jnp.concatenate([x4, h2b.astype(x4.dtype)], axis=-1)     # (N,8,8,72)
    # seq3: conv5+BN+LReLU+conv6+sigmoid fused in one kernel
    out = seq3_fused(h3cat, params["c5_w"], params["bn5_g"],
                     params["bn5_b"], params["c6_w"])                # (N, 1)
    return out.reshape(n, 1, 1, 1)                                   # NCHW (N,1,1,1)


def init_params(key):
    ks = jax.random.split(key, 7)

    def conv_w(k, cout, cin):
        return 0.02 * jax.random.normal(k, (cout, cin, 4, 4), jnp.float32)

    def bn(c):
        return jnp.ones((c,), jnp.float32), jnp.zeros((c,), jnp.float32)

    bn2_g, bn2_b = bn(NDF * 2)
    bn3_g, bn3_b = bn(NDF * 4)
    bn4_g, bn4_b = bn(NDF * 8)
    bn5_g, bn5_b = bn(NDF * 16)
    return {
        "c1_w": conv_w(ks[0], NDF, NC),
        "c2_w": conv_w(ks[1], NDF * 2, NDF), "bn2_g": bn2_g, "bn2_b": bn2_b,
        "c3_w": conv_w(ks[2], NDF * 4, NDF * 2), "bn3_g": bn3_g, "bn3_b": bn3_b,
        "c4_w": conv_w(ks[3], NDF * 8, NDF * 4), "bn4_g": bn4_g, "bn4_b": bn4_b,
        "c5_w": conv_w(ks[4], NDF * 16, NDF * 8 + NT), "bn5_g": bn5_g, "bn5_b": bn5_b,
        "c6_w": conv_w(ks[5], 1, NDF * 16),
        "fc_w": 0.02 * jax.random.normal(ks[6], (NT, TXT_SIZE), jnp.float32),
        "fc_b": jnp.zeros((NT,), jnp.float32),
    }


if __name__ == "__main__":
    key = jax.random.PRNGKey(0)
    pkey, ikey, tkey = jax.random.split(key, 3)
    params = init_params(pkey)
    img = jax.random.normal(ikey, (BATCH, NC, IMG, IMG), jnp.float32)
    txt_emb = jax.random.normal(tkey, (BATCH, TXT_SIZE), jnp.float32)

    fwd = jax.jit(discriminator_forward)
    out = jax.block_until_ready(fwd(params, img, txt_emb))

    assert out.shape == (BATCH, 1, 1, 1), out.shape
    assert bool(jnp.all(jnp.isfinite(out)))
    assert bool(jnp.all((out >= 0.0) & (out <= 1.0)))   # sigmoid range
    print("KERNEL_OK")
</pallas_src>

<mosaic_0001>
module attributes {stable_mosaic.version = 11 : i64} {
  func.func @matmul_t_lrelu_kernel(%arg0: i32, %arg1: memref<8x48xbf16, #tpu.memory_space<vmem>>, %arg2: memref<48x4096xbf16, #tpu.memory_space<vmem>>, %arg3: memref<8x4096xbf16, #tpu.memory_space<vmem>>) attributes {dimension_semantics = [#tpu.dimension_semantics<parallel>], iteration_bounds = array<i64: 2>, scalar_prefetch = 0 : i64, scratch_operands = 0 : i64, tpu.core_type = #tpu.core_type<tc>, window_params = [{pipeline_mode = #tpu.pipeline_mode<synchronous>, transform_indices = @transform_0, window_bounds = array<i64: 8, 48>}, {transform_indices = @transform_1, window_bounds = array<i64: 48, 4096>}, {transform_indices = @transform_2, window_bounds = array<i64: 8, 4096>}]} {
    %c0 = arith.constant 0 : index
    %c0_0 = arith.constant 0 : index
    %0 = vector.load %arg1[%c0, %c0_0] : memref<8x48xbf16, #tpu.memory_space<vmem>>, vector<8x48xbf16>
    %c0_1 = arith.constant 0 : index
    %c0_2 = arith.constant 0 : index
    %1 = vector.load %arg2[%c0_1, %c0_2] : memref<48x4096xbf16, #tpu.memory_space<vmem>>, vector<48x4096xbf16>
    %cst = arith.constant dense<0.000000e+00> : vector<8x4096xf32>
    %2 = tpu.matmul %0, %1, %cst {dimension_numbers = #tpu.dot_dimension_numbers<[1], [0], [0], [1], [0, 0, 1, 1], [], []>} : vector<8x48xbf16>, vector<48x4096xbf16>, vector<8x4096xf32> -> vector<8x4096xf32>
    %cst_3 = arith.constant 0.000000e+00 : f32
    %3 = vector.broadcast %cst_3 : f32 to vector<8x4096xf32>
    %4 = arith.cmpf ogt, %2, %3 : vector<8x4096xf32>
    %cst_4 = arith.constant 2.000000e-01 : f32
    %5 = vector.broadcast %cst_4 : f32 to vector<8x4096xf32>
    %6 = arith.mulf %5, %2 : vector<8x4096xf32>
    %7 = arith.select %4, %2, %6 : vector<8x4096xi1>, vector<8x4096xf32>
    %8 = arith.truncf %7 : vector<8x4096xf32> to vector<8x4096xbf16>
    %c0_5 = arith.constant 0 : index
    %c0_6 = arith.constant 0 : index
    %9 = vector.load %arg3[%c0_5, %c0_6] : memref<8x4096xbf16, #tpu.memory_space<vmem>>, vector<8x4096xbf16>
    tpu.vector_store %arg3[%c0_5, %c0_6], %8 {strides = array<i32>} : memref<8x4096xbf16, #tpu.memory_space<vmem>>, vector<8x4096xbf16>,
    return
  }
  func.func @transform_0(%arg0: i32) -> (i32, i32) {
    %c0_i32 = arith.constant 0 : i32
    %c0_i32_0 = arith.constant 0 : i32
    %c0_i32_1 = arith.constant 0 : i32
    return %c0_i32, %c0_i32_0 : i32, i32
  }
  func.func @transform_1(%arg0: i32) -> (i32, i32) {
    %c0_i32 = arith.constant 0 : i32
    %c0_i32_0 = arith.constant 0 : i32
    return %c0_i32, %arg0 : i32, i32
  }
  func.func @transform_2(%arg0: i32) -> (i32, i32) {
    %c0_i32 = arith.constant 0 : i32
    %c0_i32_0 = arith.constant 0 : i32
    return %c0_i32, %arg0 : i32, i32
  }
}

module attributes {stable_mosaic.version = 11 : i64} {
  func.func @matmul_t_bn_lrelu_kernel(%arg0: i32, %arg1: memref<16x128xbf16, #tpu.memory_space<vmem>>, %arg2: memref<128x2048xbf16, #tpu.memory_space<vmem>>, %arg3: memref<16x1xf32, #tpu.memory_space<vmem>>, %arg4: memref<16x1xf32, #tpu.memory_space<vmem>>, %arg5: memref<16x2048xbf16, #tpu.memory_space<vmem>>) attributes {dimension_semantics = [#tpu.dimension_semantics<parallel>], iteration_bounds = array<i64: 1>, scalar_prefetch = 0 : i64, scratch_operands = 0 : i64, tpu.core_type = #tpu.core_type<tc>, window_params = [{pipeline_mode = #tpu.pipeline_mode<synchronous>, transform_indices = @transform_0, window_bounds = array<i64: 16, 128>}, {transform_indices = @transform_1, window_bounds = array<i64: 128, 2048>}, {pipeline_mode = #tpu.pipeline_mode<synchronous>, transform_indices = @transform_2, window_bounds = array<i64: 16, 1>}, {pipeline_mode = #tpu.pipeline_mode<synchronous>, transform_indices = @transform_3, window_bounds = array<i64: 16, 1>}, {transform_indices = @transform_4, window_bounds = array<i64: 16, 2048>}]} {
    %c0 = arith.constant 0 : index
    %c0_0 = arith.constant 0 : index
    %0 = vector.load %arg1[%c0, %c0_0] : memref<16x128xbf16, #tpu.memory_space<vmem>>, vector<16x128xbf16>
    %c0_1 = arith.constant 0 : index
    %c0_2 = arith.constant 0 : index
    %1 = vector.load %arg2[%c0_1, %c0_2] : memref<128x2048xbf16, #tpu.memory_space<vmem>>, vector<128x2048xbf16>
    %cst = arith.constant dense<0.000000e+00> : vector<16x2048xf32>
    %2 = tpu.matmul %0, %1, %cst {dimension_numbers = #tpu.dot_dimension_numbers<[1], [0], [0], [1], [0, 0, 1, 1], [], []>} : vector<16x128xbf16>, vector<128x2048xbf16>, vector<16x2048xf32> -> vector<16x2048xf32>
    %cst_3 = arith.constant dense<0.000000e+00> : vector<16xf32>
    %3 = vector.multi_reduction <add>, %2, %cst_3 [1] : vector<16x2048xf32> to vector<16xf32>
    %4 = vector.shape_cast %3 : vector<16xf32> to vector<16x1xf32>
    %5 = arith.mulf %2, %2 : vector<16x2048xf32>
    %cst_4 = arith.constant dense<0.000000e+00> : vector<16xf32>
    %6 = vector.multi_reduction <add>, %5, %cst_4 [1] : vector<16x2048xf32> to vector<16xf32>
    %7 = vector.shape_cast %6 : vector<16xf32> to vector<16x1xf32>
    %cst_5 = arith.constant 4.8828125E-4 : f32
    %8 = vector.broadcast %cst_5 : f32 to vector<16x1xf32>
    %9 = arith.mulf %4, %8 : vector<16x1xf32>
    %cst_6 = arith.constant 4.8828125E-4 : f32
    %10 = vector.broadcast %cst_6 : f32 to vector<16x1xf32>
    %11 = arith.mulf %7, %10 : vector<16x1xf32>
    %12 = arith.mulf %9, %9 : vector<16x1xf32>
    %13 = arith.subf %11, %12 : vector<16x1xf32>
    %cst_7 = arith.constant 0.000000e+00 : f32
    %14 = vector.broadcast %cst_7 : f32 to vector<16x1xf32>
    %15 = arith.maximumf %13, %14 : vector<16x1xf32>
    %16 = vector.broadcast %9 : vector<16x1xf32> to vector<16x2048xf32>
    %17 = arith.subf %2, %16 : vector<16x2048xf32>
    %cst_8 = arith.constant 9.99999974E-6 : f32
    %18 = vector.broadcast %cst_8 : f32 to vector<16x1xf32>
    %19 = arith.addf %15, %18 : vector<16x1xf32>
    %20 = math.rsqrt %19 : vector<16x1xf32>
    %21 = vector.broadcast %20 : vector<16x1xf32> to vector<16x2048xf32>
    %22 = arith.mulf %17, %21 : vector<16x2048xf32>
    %c0_9 = arith.constant 0 : index
    %c0_10 = arith.constant 0 : index
    %23 = vector.load %arg3[%c0_9, %c0_10] : memref<16x1xf32, #tpu.memory_space<vmem>>, vector<16x1xf32>
    %24 = vector.broadcast %23 : vector<16x1xf32> to vector<16x2048xf32>
    %25 = arith.mulf %22, %24 : vector<16x2048xf32>
    %c0_11 = arith.constant 0 : index
    %c0_12 = arith.constant 0 : index
    %26 = vector.load %arg4[%c0_11, %c0_12] : memref<16x1xf32, #tpu.memory_space<vmem>>, vector<16x1xf32>
    %27 = vector.broadcast %26 : vector<16x1xf32> to vector<16x2048xf32>
    %28 = arith.addf %25, %27 : vector<16x2048xf32>
    %cst_13 = arith.constant 0.000000e+00 : f32
    %29 = vector.broadcast %cst_13 : f32 to vector<16x2048xf32>
    %30 = arith.cmpf ogt, %28, %29 : vector<16x2048xf32>
    %cst_14 = arith.constant 2.000000e-01 : f32
    %31 = vector.broadcast %cst_14 : f32 to vector<16x2048xf32>
    %32 = arith.mulf %31, %28 : vector<16x2048xf32>
    %33 = arith.select %30, %28, %32 : vector<16x2048xi1>, vector<16x2048xf32>
    %34 = arith.truncf %33 : vector<16x2048xf32> to vector<16x2048xbf16>
    %c0_15 = arith.constant 0 : index
    %c0_16 = arith.constant 0 : index
    %35 = vector.load %arg5[%c0_15, %c0_16] : memref<16x2048xbf16, #tpu.memory_space<vmem>>, vector<16x2048xbf16>
    tpu.vector_store %arg5[%c0_15, %c0_16], %34 {strides = array<i32>} : memref<16x2048xbf16, #tpu.memory_space<vmem>>, vector<16x2048xbf16>,
    return
  }
  func.func @transform_0(%arg0: i32) -> (i32, i32) {
    %c0_i32 = arith.constant 0 : i32
    %c0_i32_0 = arith.constant 0 : i32
    %c0_i32_1 = arith.constant 0 : i32
    return %c0_i32, %c0_i32_0 : i32, i32
  }
  func.func @transform_1(%arg0: i32) -> (i32, i32) {
    %c0_i32 = arith.constant 0 : i32
    %c0_i32_0 = arith.constant 0 : i32
    return %c0_i32, %arg0 : i32, i32
  }
  func.func @transform_2(%arg0: i32) -> (i32, i32) {
    %c0_i32 = arith.constant 0 : i32
    %c0_i32_0 = arith.constant 0 : i32
    %c0_i32_1 = arith.constant 0 : i32
    return %c0_i32, %c0_i32_0 : i32, i32
  }
  func.func @transform_3(%arg0: i32) -> (i32, i32) {
    %c0_i32 = arith.constant 0 : i32
    %c0_i32_0 = arith.constant 0 : i32
    %c0_i32_1 = arith.constant 0 : i32
    return %c0_i32, %c0_i32_0 : i32, i32
  }
  func.func @transform_4(%arg0: i32) -> (i32, i32) {
    %c0_i32 = arith.constant 0 : i32
    %c0_i32_0 = arith.constant 0 : i32
    return %c0_i32, %arg0 : i32, i32
  }
}

module attributes {stable_mosaic.version = 11 : i64} {
  func.func @matmul_t_bn_lrelu_kernel(%arg0: i32, %arg1: memref<32x256xbf16, #tpu.memory_space<vmem>>, %arg2: memref<256x512xbf16, #tpu.memory_space<vmem>>, %arg3: memref<32x1xf32, #tpu.memory_space<vmem>>, %arg4: memref<32x1xf32, #tpu.memory_space<vmem>>, %arg5: memref<32x512xbf16, #tpu.memory_space<vmem>>) attributes {dimension_semantics = [#tpu.dimension_semantics<parallel>], iteration_bounds = array<i64: 1>, scalar_prefetch = 0 : i64, scratch_operands = 0 : i64, tpu.core_type = #tpu.core_type<tc>, window_params = [{pipeline_mode = #tpu.pipeline_mode<synchronous>, transform_indices = @transform_0, window_bounds = array<i64: 32, 256>}, {transform_indices = @transform_1, window_bounds = array<i64: 256, 512>}, {pipeline_mode = #tpu.pipeline_mode<synchronous>, transform_indices = @transform_2, window_bounds = array<i64: 32, 1>}, {pipeline_mode = #tpu.pipeline_mode<synchronous>, transform_indices = @transform_3, window_bounds = array<i64: 32, 1>}, {transform_indices = @transform_4, window_bounds = array<i64: 32, 512>}]} {
    %c0 = arith.constant 0 : index
    %c0_0 = arith.constant 0 : index
    %0 = vector.load %arg1[%c0, %c0_0] : memref<32x256xbf16, #tpu.memory_space<vmem>>, vector<32x256xbf16>
    %c0_1 = arith.constant 0 : index
    %c0_2 = arith.constant 0 : index
    %1 = vector.load %arg2[%c0_1, %c0_2] : memref<256x512xbf16, #tpu.memory_space<vmem>>, vector<256x512xbf16>
    %cst = arith.constant dense<0.000000e+00> : vector<32x512xf32>
    %2 = tpu.matmul %0, %1, %cst {dimension_numbers = #tpu.dot_dimension_numbers<[1], [0], [0], [1], [0, 0, 1, 1], [], []>} : vector<32x256xbf16>, vector<256x512xbf16>, vector<32x512xf32> -> vector<32x512xf32>
    %cst_3 = arith.constant dense<0.000000e+00> : vector<32xf32>
    %3 = vector.multi_reduction <add>, %2, %cst_3 [1] : vector<32x512xf32> to vector<32xf32>
    %4 = vector.shape_cast %3 : vector<32xf32> to vector<32x1xf32>
    %5 = arith.mulf %2, %2 : vector<32x512xf32>
    %cst_4 = arith.constant dense<0.000000e+00> : vector<32xf32>
    %6 = vector.multi_reduction <add>, %5, %cst_4 [1] : vector<32x512xf32> to vector<32xf32>
    %7 = vector.shape_cast %6 : vector<32xf32> to vector<32x1xf32>
    %cst_5 = arith.constant 0.001953125 : f32
    %8 = vector.broadcast %cst_5 : f32 to vector<32x1xf32>
    %9 = arith.mulf %4, %8 : vector<32x1xf32>
    %cst_6 = arith.constant 0.001953125 : f32
    %10 = vector.broadcast %cst_6 : f32 to vector<32x1xf32>
    %11 = arith.mulf %7, %10 : vector<32x1xf32>
    %12 = arith.mulf %9, %9 : vector<32x1xf32>
    %13 = arith.subf %11, %12 : vector<32x1xf32>
    %cst_7 = arith.constant 0.000000e+00 : f32
    %14 = vector.broadcast %cst_7 : f32 to vector<32x1xf32>
    %15 = arith.maximumf %13, %14 : vector<32x1xf32>
    %16 = vector.broadcast %9 : vector<32x1xf32> to vector<32x512xf32>
    %17 = arith.subf %2, %16 : vector<32x512xf32>
    %cst_8 = arith.constant 9.99999974E-6 : f32
    %18 = vector.broadcast %cst_8 : f32 to vector<32x1xf32>
    %19 = arith.addf %15, %18 : vector<32x1xf32>
    %20 = math.rsqrt %19 : vector<32x1xf32>
    %21 = vector.broadcast %20 : vector<32x1xf32> to vector<32x512xf32>
    %22 = arith.mulf %17, %21 : vector<32x512xf32>
    %c0_9 = arith.constant 0 : index
    %c0_10 = arith.constant 0 : index
    %23 = vector.load %arg3[%c0_9, %c0_10] : memref<32x1xf32, #tpu.memory_space<vmem>>, vector<32x1xf32>
    %24 = vector.broadcast %23 : vector<32x1xf32> to vector<32x512xf32>
    %25 = arith.mulf %22, %24 : vector<32x512xf32>
    %c0_11 = arith.constant 0 : index
    %c0_12 = arith.constant 0 : index
    %26 = vector.load %arg4[%c0_11, %c0_12] : memref<32x1xf32, #tpu.memory_space<vmem>>, vector<32x1xf32>
    %27 = vector.broadcast %26 : vector<32x1xf32> to vector<32x512xf32>
    %28 = arith.addf %25, %27 : vector<32x512xf32>
    %cst_13 = arith.constant 0.000000e+00 : f32
    %29 = vector.broadcast %cst_13 : f32 to vector<32x512xf32>
    %30 = arith.cmpf ogt, %28, %29 : vector<32x512xf32>
    %cst_14 = arith.constant 2.000000e-01 : f32
    %31 = vector.broadcast %cst_14 : f32 to vector<32x512xf32>
    %32 = arith.mulf %31, %28 : vector<32x512xf32>
    %33 = arith.select %30, %28, %32 : vector<32x512xi1>, vector<32x512xf32>
    %34 = arith.truncf %33 : vector<32x512xf32> to vector<32x512xbf16>
    %c0_15 = arith.constant 0 : index
    %c0_16 = arith.constant 0 : index
    %35 = vector.load %arg5[%c0_15, %c0_16] : memref<32x512xbf16, #tpu.memory_space<vmem>>, vector<32x512xbf16>
    tpu.vector_store %arg5[%c0_15, %c0_16], %34 {strides = array<i32>} : memref<32x512xbf16, #tpu.memory_space<vmem>>, vector<32x512xbf16>,
    return
  }
  func.func @transform_0(%arg0: i32) -> (i32, i32) {
    %c0_i32 = arith.constant 0 : i32
    %c0_i32_0 = arith.constant 0 : i32
    %c0_i32_1 = arith.constant 0 : i32
    return %c0_i32, %c0_i32_0 : i32, i32
  }
  func.func @transform_1(%arg0: i32) -> (i32, i32) {
    %c0_i32 = arith.constant 0 : i32
    %c0_i32_0 = arith.constant 0 : i32
    return %c0_i32, %arg0 : i32, i32
  }
  func.func @transform_2(%arg0: i32) -> (i32, i32) {
    %c0_i32 = arith.constant 0 : i32
    %c0_i32_0 = arith.constant 0 : i32
    %c0_i32_1 = arith.constant 0 : i32
    return %c0_i32, %c0_i32_0 : i32, i32
  }
  func.func @transform_3(%arg0: i32) -> (i32, i32) {
    %c0_i32 = arith.constant 0 : i32
    %c0_i32_0 = arith.constant 0 : i32
    %c0_i32_1 = arith.constant 0 : i32
    return %c0_i32, %c0_i32_0 : i32, i32
  }
  func.func @transform_4(%arg0: i32) -> (i32, i32) {
    %c0_i32 = arith.constant 0 : i32
    %c0_i32_0 = arith.constant 0 : i32
    return %c0_i32, %arg0 : i32, i32
  }
}

module attributes {stable_mosaic.version = 11 : i64} {
  func.func @matmul_t_bn_lrelu_kernel(%arg0: i32, %arg1: memref<64x512xbf16, #tpu.memory_space<vmem>>, %arg2: memref<512x128xbf16, #tpu.memory_space<vmem>>, %arg3: memref<64x1xf32, #tpu.memory_space<vmem>>, %arg4: memref<64x1xf32, #tpu.memory_space<vmem>>, %arg5: memref<64x128xbf16, #tpu.memory_space<vmem>>) attributes {dimension_semantics = [#tpu.dimension_semantics<parallel>], iteration_bounds = array<i64: 1>, scalar_prefetch = 0 : i64, scratch_operands = 0 : i64, tpu.core_type = #tpu.core_type<tc>, window_params = [{pipeline_mode = #tpu.pipeline_mode<synchronous>, transform_indices = @transform_0, window_bounds = array<i64: 64, 512>}, {transform_indices = @transform_1, window_bounds = array<i64: 512, 128>}, {pipeline_mode = #tpu.pipeline_mode<synchronous>, transform_indices = @transform_2, window_bounds = array<i64: 64, 1>}, {pipeline_mode = #tpu.pipeline_mode<synchronous>, transform_indices = @transform_3, window_bounds = array<i64: 64, 1>}, {transform_indices = @transform_4, window_bounds = array<i64: 64, 128>}]} {
    %c0 = arith.constant 0 : index
    %c0_0 = arith.constant 0 : index
    %0 = vector.load %arg1[%c0, %c0_0] : memref<64x512xbf16, #tpu.memory_space<vmem>>, vector<64x512xbf16>
    %c0_1 = arith.constant 0 : index
    %c0_2 = arith.constant 0 : index
    %1 = vector.load %arg2[%c0_1, %c0_2] : memref<512x128xbf16, #tpu.memory_space<vmem>>, vector<512x128xbf16>
    %cst = arith.constant dense<0.000000e+00> : vector<64x128xf32>
    %2 = tpu.matmul %0, %1, %cst {dimension_numbers = #tpu.dot_dimension_numbers<[1], [0], [0], [1], [0, 0, 1, 1], [], []>} : vector<64x512xbf16>, vector<512x128xbf16>, vector<64x128xf32> -> vector<64x128xf32>
    %cst_3 = arith.constant dense<0.000000e+00> : vector<64xf32>
    %3 = vector.multi_reduction <add>, %2, %cst_3 [1] : vector<64x128xf32> to vector<64xf32>
    %4 = vector.shape_cast %3 : vector<64xf32> to vector<64x1xf32>
    %5 = arith.mulf %2, %2 : vector<64x128xf32>
    %cst_4 = arith.constant dense<0.000000e+00> : vector<64xf32>
    %6 = vector.multi_reduction <add>, %5, %cst_4 [1] : vector<64x128xf32> to vector<64xf32>
    %7 = vector.shape_cast %6 : vector<64xf32> to vector<64x1xf32>
    %cst_5 = arith.constant 7.812500e-03 : f32
    %8 = vector.broadcast %cst_5 : f32 to vector<64x1xf32>
    %9 = arith.mulf %4, %8 : vector<64x1xf32>
    %cst_6 = arith.constant 7.812500e-03 : f32
    %10 = vector.broadcast %cst_6 : f32 to vector<64x1xf32>
    %11 = arith.mulf %7, %10 : vector<64x1xf32>
    %12 = arith.mulf %9, %9 : vector<64x1xf32>
    %13 = arith.subf %11, %12 : vector<64x1xf32>
    %cst_7 = arith.constant 0.000000e+00 : f32
    %14 = vector.broadcast %cst_7 : f32 to vector<64x1xf32>
    %15 = arith.maximumf %13, %14 : vector<64x1xf32>
    %16 = vector.broadcast %9 : vector<64x1xf32> to vector<64x128xf32>
    %17 = arith.subf %2, %16 : vector<64x128xf32>
    %cst_8 = arith.constant 9.99999974E-6 : f32
    %18 = vector.broadcast %cst_8 : f32 to vector<64x1xf32>
    %19 = arith.addf %15, %18 : vector<64x1xf32>
    %20 = math.rsqrt %19 : vector<64x1xf32>
    %21 = vector.broadcast %20 : vector<64x1xf32> to vector<64x128xf32>
    %22 = arith.mulf %17, %21 : vector<64x128xf32>
    %c0_9 = arith.constant 0 : index
    %c0_10 = arith.constant 0 : index
    %23 = vector.load %arg3[%c0_9, %c0_10] : memref<64x1xf32, #tpu.memory_space<vmem>>, vector<64x1xf32>
    %24 = vector.broadcast %23 : vector<64x1xf32> to vector<64x128xf32>
    %25 = arith.mulf %22, %24 : vector<64x128xf32>
    %c0_11 = arith.constant 0 : index
    %c0_12 = arith.constant 0 : index
    %26 = vector.load %arg4[%c0_11, %c0_12] : memref<64x1xf32, #tpu.memory_space<vmem>>, vector<64x1xf32>
    %27 = vector.broadcast %26 : vector<64x1xf32> to vector<64x128xf32>
    %28 = arith.addf %25, %27 : vector<64x128xf32>
    %cst_13 = arith.constant 0.000000e+00 : f32
    %29 = vector.broadcast %cst_13 : f32 to vector<64x128xf32>
    %30 = arith.cmpf ogt, %28, %29 : vector<64x128xf32>
    %cst_14 = arith.constant 2.000000e-01 : f32
    %31 = vector.broadcast %cst_14 : f32 to vector<64x128xf32>
    %32 = arith.mulf %31, %28 : vector<64x128xf32>
    %33 = arith.select %30, %28, %32 : vector<64x128xi1>, vector<64x128xf32>
    %34 = arith.truncf %33 : vector<64x128xf32> to vector<64x128xbf16>
    %c0_15 = arith.constant 0 : index
    %c0_16 = arith.constant 0 : index
    %35 = vector.load %arg5[%c0_15, %c0_16] : memref<64x128xbf16, #tpu.memory_space<vmem>>, vector<64x128xbf16>
    tpu.vector_store %arg5[%c0_15, %c0_16], %34 {strides = array<i32>} : memref<64x128xbf16, #tpu.memory_space<vmem>>, vector<64x128xbf16>,
    return
  }
  func.func @transform_0(%arg0: i32) -> (i32, i32) {
    %c0_i32 = arith.constant 0 : i32
    %c0_i32_0 = arith.constant 0 : i32
    %c0_i32_1 = arith.constant 0 : i32
    return %c0_i32, %c0_i32_0 : i32, i32
  }
  func.func @transform_1(%arg0: i32) -> (i32, i32) {
    %c0_i32 = arith.constant 0 : i32
    %c0_i32_0 = arith.constant 0 : i32
    return %c0_i32, %arg0 : i32, i32
  }
  func.func @transform_2(%arg0: i32) -> (i32, i32) {
    %c0_i32 = arith.constant 0 : i32
    %c0_i32_0 = arith.constant 0 : i32
    %c0_i32_1 = arith.constant 0 : i32
    return %c0_i32, %c0_i32_0 : i32, i32
  }
  func.func @transform_3(%arg0: i32) -> (i32, i32) {
    %c0_i32 = arith.constant 0 : i32
    %c0_i32_0 = arith.constant 0 : i32
    %c0_i32_1 = arith.constant 0 : i32
    return %c0_i32, %c0_i32_0 : i32, i32
  }
  func.func @transform_4(%arg0: i32) -> (i32, i32) {
    %c0_i32 = arith.constant 0 : i32
    %c0_i32_0 = arith.constant 0 : i32
    return %c0_i32, %arg0 : i32, i32
  }
}

module attributes {stable_mosaic.version = 11 : i64} {
  func.func @seq3_fused_kernel(%arg0: i32, %arg1: memref<1152x32xbf16, #tpu.memory_space<vmem>>, %arg2: memref<128x1152xbf16, #tpu.memory_space<vmem>>, %arg3: memref<128x1xf32, #tpu.memory_space<vmem>>, %arg4: memref<128x1xf32, #tpu.memory_space<vmem>>, %arg5: memref<128x32xf32, #tpu.memory_space<vmem>>, %arg6: memref<2x32xf32, #tpu.memory_space<vmem>>, %arg7: memref<2x1xf32, #tpu.memory_space<vmem>>) attributes {dimension_semantics = [#tpu.dimension_semantics<arbitrary>], iteration_bounds = array<i64: 1>, scalar_prefetch = 0 : i64, scratch_operands = 0 : i64, tpu.core_type = #tpu.core_type<tc>, window_params = [{pipeline_mode = #tpu.pipeline_mode<synchronous>, transform_indices = @transform_0, window_bounds = array<i64: 1152, 32>}, {pipeline_mode = #tpu.pipeline_mode<synchronous>, transform_indices = @transform_1, window_bounds = array<i64: 128, 1152>}, {pipeline_mode = #tpu.pipeline_mode<synchronous>, transform_indices = @transform_2, window_bounds = array<i64: 128, 1>}, {pipeline_mode = #tpu.pipeline_mode<synchronous>, transform_indices = @transform_3, window_bounds = array<i64: 128, 1>}, {pipeline_mode = #tpu.pipeline_mode<synchronous>, transform_indices = @transform_4, window_bounds = array<i64: 128, 32>}, {pipeline_mode = #tpu.pipeline_mode<synchronous>, transform_indices = @transform_5, window_bounds = array<i64: 2, 32>}, {pipeline_mode = #tpu.pipeline_mode<synchronous>, transform_indices = @transform_6, window_bounds = array<i64: 2, 1>}]} {
    %c0 = arith.constant 0 : index
    %c0_0 = arith.constant 0 : index
    %0 = vector.load %arg2[%c0, %c0_0] : memref<128x1152xbf16, #tpu.memory_space<vmem>>, vector<128x1152xbf16>
    %c0_1 = arith.constant 0 : index
    %c0_2 = arith.constant 0 : index
    %1 = vector.load %arg1[%c0_1, %c0_2] : memref<1152x32xbf16, #tpu.memory_space<vmem>>, vector<1152x32xbf16>
    %cst = arith.constant dense<0.000000e+00> : vector<128x32xf32>
    %2 = tpu.matmul %0, %1, %cst {dimension_numbers = #tpu.dot_dimension_numbers<[1], [0], [0], [1], [0, 0, 1, 1], [], []>} : vector<128x1152xbf16>, vector<1152x32xbf16>, vector<128x32xf32> -> vector<128x32xf32>
    %cst_3 = arith.constant dense<0.000000e+00> : vector<128xf32>
    %3 = vector.multi_reduction <add>, %2, %cst_3 [1] : vector<128x32xf32> to vector<128xf32>
    %4 = vector.shape_cast %3 : vector<128xf32> to vector<128x1xf32>
    %5 = arith.mulf %2, %2 : vector<128x32xf32>
    %cst_4 = arith.constant dense<0.000000e+00> : vector<128xf32>
    %6 = vector.multi_reduction <add>, %5, %cst_4 [1] : vector<128x32xf32> to vector<128xf32>
    %7 = vector.shape_cast %6 : vector<128xf32> to vector<128x1xf32>
    %cst_5 = arith.constant 3.125000e-02 : f32
    %8 = vector.broadcast %cst_5 : f32 to vector<128x1xf32>
    %9 = arith.mulf %4, %8 : vector<128x1xf32>
    %cst_6 = arith.constant 3.125000e-02 : f32
    %10 = vector.broadcast %cst_6 : f32 to vector<128x1xf32>
    %11 = arith.mulf %7, %10 : vector<128x1xf32>
    %12 = arith.mulf %9, %9 : vector<128x1xf32>
    %13 = arith.subf %11, %12 : vector<128x1xf32>
    %cst_7 = arith.constant 0.000000e+00 : f32
    %14 = vector.broadcast %cst_7 : f32 to vector<128x1xf32>
    %15 = arith.maximumf %13, %14 : vector<128x1xf32>
    %16 = vector.broadcast %9 : vector<128x1xf32> to vector<128x32xf32>
    %17 = arith.subf %2, %16 : vector<128x32xf32>
    %cst_8 = arith.constant 9.99999974E-6 : f32
    %18 = vector.broadcast %cst_8 : f32 to vector<128x1xf32>
    %19 = arith.addf %15, %18 : vector<128x1xf32>
    %20 = math.rsqrt %19 : vector<128x1xf32>
    %21 = vector.broadcast %20 : vector<128x1xf32> to vector<128x32xf32>
    %22 = arith.mulf %17, %21 : vector<128x32xf32>
    %c0_9 = arith.constant 0 : index
    %c0_10 = arith.constant 0 : index
    %23 = vector.load %arg3[%c0_9, %c0_10] : memref<128x1xf32, #tpu.memory_space<vmem>>, vector<128x1xf32>
    %24 = vector.broadcast %23 : vector<128x1xf32> to vector<128x32xf32>
    %25 = arith.mulf %22, %24 : vector<128x32xf32>
    %c0_11 = arith.constant 0 : index
    %c0_12 = arith.constant 0 : index
    %26 = vector.load %arg4[%c0_11, %c0_12] : memref<128x1xf32, #tpu.memory_space<vmem>>, vector<128x1xf32>
    %27 = vector.broadcast %26 : vector<128x1xf32> to vector<128x32xf32>
    %28 = arith.addf %25, %27 : vector<128x32xf32>
    %cst_13 = arith.constant 0.000000e+00 : f32
    %29 = vector.broadcast %cst_13 : f32 to vector<128x32xf32>
    %30 = arith.cmpf ogt, %28, %29 : vector<128x32xf32>
    %cst_14 = arith.constant 2.000000e-01 : f32
    %31 = vector.broadcast %cst_14 : f32 to vector<128x32xf32>
    %32 = arith.mulf %31, %28 : vector<128x32xf32>
    %33 = arith.select %30, %28, %32 : vector<128x32xi1>, vector<128x32xf32>
    %c0_15 = arith.constant 0 : index
    %c0_16 = arith.constant 0 : index
    %34 = vector.load %arg5[%c0_15, %c0_16] : memref<128x32xf32, #tpu.memory_space<vmem>>, vector<128x32xf32>
    %35 = arith.mulf %33, %34 : vector<128x32xf32>
    %cst_17 = arith.constant dense<0.000000e+00> : vector<32xf32>
    %36 = vector.multi_reduction <add>, %35, %cst_17 [0] : vector<128x32xf32> to vector<32xf32>
    %37 = vector.shape_cast %36 : vector<32xf32> to vector<1x32xf32>
    %c0_18 = arith.constant 0 : index
    %c0_19 = arith.constant 0 : index
    %38 = vector.load %arg6[%c0_18, %c0_19] : memref<2x32xf32, #tpu.memory_space<vmem>>, vector<2x32xf32>
    %39 = vector.broadcast %37 : vector<1x32xf32> to vector<2x32xf32>
    %40 = arith.mulf %39, %38 : vector<2x32xf32>
    %cst_20 = arith.constant dense<0.000000e+00> : vector<2xf32>
    %41 = vector.multi_reduction <add>, %40, %cst_20 [1] : vector<2x32xf32> to vector<2xf32>
    %42 = vector.shape_cast %41 : vector<2xf32> to vector<2x1xf32>
    %43 = arith.negf %42 : vector<2x1xf32>
    %44 = math.exp %43 : vector<2x1xf32>
    %cst_21 = arith.constant 1.000000e+00 : f32
    %45 = vector.broadcast %cst_21 : f32 to vector<2x1xf32>
    %46 = arith.addf %45, %44 : vector<2x1xf32>
    %47 = arith.divf %45, %46 : vector<2x1xf32>
    %c0_22 = arith.constant 0 : index
    %c0_23 = arith.constant 0 : index
    %48 = vector.load %arg7[%c0_22, %c0_23] : memref<2x1xf32, #tpu.memory_space<vmem>>, vector<2x1xf32>
    tpu.vector_store %arg7[%c0_22, %c0_23], %47 {strides = array<i32>} : memref<2x1xf32, #tpu.memory_space<vmem>>, vector<2x1xf32>,
    return
  }
  func.func @transform_0(%arg0: i32) -> (i32, i32) {
    %c0_i32 = arith.constant 0 : i32
    %c0_i32_0 = arith.constant 0 : i32
    %c0_i32_1 = arith.constant 0 : i32
    return %c0_i32, %c0_i32_0 : i32, i32
  }
  func.func @transform_1(%arg0: i32) -> (i32, i32) {
    %c0_i32 = arith.constant 0 : i32
    %c0_i32_0 = arith.constant 0 : i32
    %c0_i32_1 = arith.constant 0 : i32
    return %c0_i32, %c0_i32_0 : i32, i32
  }
  func.func @transform_2(%arg0: i32) -> (i32, i32) {
    %c0_i32 = arith.constant 0 : i32
    %c0_i32_0 = arith.constant 0 : i32
    %c0_i32_1 = arith.constant 0 : i32
    return %c0_i32, %c0_i32_0 : i32, i32
  }
  func.func @transform_3(%arg0: i32) -> (i32, i32) {
    %c0_i32 = arith.constant 0 : i32
    %c0_i32_0 = arith.constant 0 : i32
    %c0_i32_1 = arith.constant 0 : i32
    return %c0_i32, %c0_i32_0 : i32, i32
  }
  func.func @transform_4(%arg0: i32) -> (i32, i32) {
    %c0_i32 = arith.constant 0 : i32
    %c0_i32_0 = arith.constant 0 : i32
    %c0_i32_1 = arith.constant 0 : i32
    return %c0_i32, %c0_i32_0 : i32, i32
  }
  func.func @transform_5(%arg0: i32) -> (i32, i32) {
    %c0_i32 = arith.constant 0 : i32
    %c0_i32_0 = arith.constant 0 : i32
    %c0_i32_1 = arith.constant 0 : i32
    return %c0_i32, %c0_i32_0 : i32, i32
  }
  func.func @transform_6(%arg0: i32) -> (i32, i32) {
    %c0_i32 = arith.constant 0 : i32
    %c0_i32_0 = arith.constant 0 : i32
    %c0_i32_1 = arith.constant 0 : i32
    return %c0_i32, %c0_i32_0 : i32, i32
  }
}

</mosaic_0001>

<bundles_post_ra>
// kernel: discriminator_forward.5
= control target key start
LH: loop header
LB: loop body
LE: loop exit
PB: predicated region body
PF: predicated region fallthrough
CT: control target
= control target key end

     0   :  { %s2119_s9 = smov 0   ;;  %s2121_s10 = smov 0   ;;  %s2536_s0 = inlined_call_operand.vmem [shape: bf16[8,48], index: 0, kind: input, shape index: {}]   ;;  %s2537_s1 = inlined_call_operand.vmem [shape: bf16[48,8192], index: 1, kind: input, shape index: {}]   ;;  %s2538_s2 = inlined_call_operand.vmem [shape: bf16[8,8192], index: 2, kind: output, shape index: {}]  }
   0x1   :  { %s2123_s11 = smov 0  }
   0x2 LB: > { %s1896_s12 = sadd.s32 4294967295, %s2101_s11   ;;  %s2136_s13 = sadd.s32 1, %s2101_s11   ;;  %s2101_s11 = sphi %s2123_s11, %s2541_s11   ;;  %s2097_s10 = sphi %s2121_s10, %s2540_s10   ;;  %s2093_s9 = sphi %s2119_s9, %s2539_s9  }
   0x3   : > { %s37_s14 = ssub.s32 %s2101_s11, %s2136_s13  ;;  %s40_s15 = sadd.s32 1, %s2097_s10 }
   0x4   : > { %p38_p0 = scmp.eq.s32.totalorder %s37_s14, 0  ;;  %p47_p1 = scmp.ne.s32.totalorder %s2097_s10, %s2093_s9 }
   0x5   : > { %p48_p2 = scmp.eq.s32.totalorder %s2101_s11, 0  ;;  %p1899_p4 = scmp.ge.s32.totalorder %s2101_s11, 2 }
   0x6   : > { %s2145_s16 = scalar_select %p38_p0, %s2097_s10, %s40_s15  }
   0x7   : > { %p49_p3 = por %p48_p2, %p47_p1  ;;  %102 = sbr.rel (%p1899_p4) target bundleno = 67 (0x43), region = 20 }
   0xe   : > { %105 = sbr.rel (!%p49_p3) target bundleno = 67 (0x43), region = 24  ;;  %s107_s17 = sand.u32 (%p49_p3), 1, %s2097_s10  }
   0xf   : > { %s2035_s18 = sshll.u32 (%p49_p3), %s2101_s11, 7  ;;  %s2052_s19 = smul.u32 (%p49_p3), 768, %s107_s17 }
  0x10   : > { %s2153_s22 = scalar_lea.vmem (%p49_p3), %s2537_s1, %s2035_s18 }
  0x11   : > { %v125_v0 = vld [vmem:[%s2153_s22] sm:$0xff] (%p49_p3)  ;;  %v127_v1 = vld [vmem:[%s2153_s22 + $0x8] sm:$0xff] (%p49_p3)  ;;  %v129_v2 = vld [vmem:[%s2153_s22 + $0x10] sm:$0xff] (%p49_p3)  ;;  %s2161_s23 = scalar_lea.vmem (%p49_p3), [#allocation2], %s2052_s19 }
  0x12   : > { %v131_v3 = vld [vmem:[%s2153_s22 + $0x18] sm:$0xff] (%p49_p3)  ;;  %v133_v4 = vld [vmem:[%s2153_s22 + $0x20] sm:$0xff] (%p49_p3)  ;;  %v135_v5 = vld [vmem:[%s2153_s22 + $0x28] sm:$0xff] (%p49_p3)  ;;  %126 = vst [vmem:[%s2161_s23] sm:$0xff] (%p49_p3), %v125_v0 }
  0x13   : > { %128 = vst [vmem:[%s2161_s23 + $0x8] sm:$0xff] (%p49_p3), %v127_v1  ;;  %130 = vst [vmem:[%s2161_s23 + $0x10] sm:$0xff] (%p49_p3), %v129_v2  ;;  %v137_v6 = vld [vmem:[%s2153_s22 + $0x30] sm:$0xff] (%p49_p3)  ;;  %v139_v7 = vld [vmem:[%s2153_s22 + $0x38] sm:$0xff] (%p49_p3) }
  0x14   : > { %132 = vst [vmem:[%s2161_s23 + $0x18] sm:$0xff] (%p49_p3), %v131_v3  ;;  %134 = vst [vmem:[%s2161_s23 + $0x20] sm:$0xff] (%p49_p3), %v133_v4  ;;  %v141_v8 = vld [vmem:[%s2153_s22 + $0x40] sm:$0xff] (%p49_p3)  ;;  %v143_v9 = vld [vmem:[%s2153_s22 + $0x48] sm:$0xff] (%p49_p3) }
  0x15   : > { %136 = vst [vmem:[%s2161_s23 + $0x28] sm:$0xff] %v135_v5  ;;  %138 = vst [vmem:[%s2161_s23 + $0x30] sm:$0xff] %v137_v6  ;;  %v145_v10 = vld [vmem:[%s2153_s22 + $0x50] sm:$0xff]  ;;  %v147_v11 = vld [vmem:[%s2153_s22 + $0x58] sm:$0xff] }
  0x16   : > { %140 = vst [vmem:[%s2161_s23 + $0x38] sm:$0xff] %v139_v7  ;;  %142 = vst [vmem:[%s2161_s23 + $0x40] sm:$0xff] %v141_v8  ;;  %v149_v12 = vld [vmem:[%s2153_s22 + $0x60] sm:$0xff]  ;;  %v151_v13 = vld [vmem:[%s2153_s22 + $0x68] sm:$0xff] }
  0x17   : > { %144 = vst [vmem:[%s2161_s23 + $0x48] sm:$0xff] %v143_v9  ;;  %146 = vst [vmem:[%s2161_s23 + $0x50] sm:$0xff] %v145_v10  ;;  %v153_v14 = vld [vmem:[%s2153_s22 + $0x70] sm:$0xff]  ;;  %v155_v15 = vld [vmem:[%s2153_s22 + $0x78] sm:$0xff] }
  0x18   : > { %148 = vst [vmem:[%s2161_s23 + $0x58] sm:$0xff] %v147_v11  ;;  %150 = vst [vmem:[%s2161_s23 + $0x60] sm:$0xff] %v149_v12  ;;  %v157_v16 = vld [vmem:[%s2153_s22 + $0x100] sm:$0xff]  ;;  %v159_v17 = vld [vmem:[%s2153_s22 + $0x108] sm:$0xff] }
  0x19   : > { %152 = vst [vmem:[%s2161_s23 + $0x68] sm:$0xff] %v151_v13  ;;  %154 = vst [vmem:[%s2161_s23 + $0x70] sm:$0xff] %v153_v14  ;;  %v161_v18 = vld [vmem:[%s2153_s22 + $0x110] sm:$0xff]  ;;  %v163_v19 = vld [vmem:[%s2153_s22 + $0x118] sm:$0xff] }
  0x1a   : > { %156 = vst [vmem:[%s2161_s23 + $0x78] sm:$0xff] %v155_v15  ;;  %158 = vst [vmem:[%s2161_s23 + $0x80] sm:$0xff] %v157_v16  ;;  %v165_v20 = vld [vmem:[%s2153_s22 + $0x120] sm:$0xff]  ;;  %v167_v21 = vld [vmem:[%s2153_s22 + $0x128] sm:$0xff] }
  0x1b   : > { %160 = vst [vmem:[%s2161_s23 + $0x88] sm:$0xff] %v159_v17  ;;  %162 = vst [vmem:[%s2161_s23 + $0x90] sm:$0xff] %v161_v18  ;;  %v169_v22 = vld [vmem:[%s2153_s22 + $0x130] sm:$0xff]  ;;  %v171_v23 = vld [vmem:[%s2153_s22 + $0x138] sm:$0xff] }
  0x1c   : > { %164 = vst [vmem:[%s2161_s23 + $0x98] sm:$0xff] %v163_v19  ;;  %166 = vst [vmem:[%s2161_s23 + $0xa0] sm:$0xff] %v165_v20  ;;  %v173_v24 = vld [vmem:[%s2153_s22 + $0x140] sm:$0xff]  ;;  %v175_v25 = vld [vmem:[%s2153_s22 + $0x148] sm:$0xff] }
  0x1d   : > { %168 = vst [vmem:[%s2161_s23 + $0xa8] sm:$0xff] %v167_v21  ;;  %170 = vst [vmem:[%s2161_s23 + $0xb0] sm:$0xff] %v169_v22  ;;  %v177_v26 = vld [vmem:[%s2153_s22 + $0x150] sm:$0xff]  ;;  %v179_v27 = vld [vmem:[%s2153_s22 + $0x158] sm:$0xff] }
  0x1e   : > { %172 = vst [vmem:[%s2161_s23 + $0xb8] sm:$0xff] %v171_v23  ;;  %174 = vst [vmem:[%s2161_s23 + $0xc0] sm:$0xff] %v173_v24  ;;  %v181_v28 = vld [vmem:[%s2153_s22 + $0x160] sm:$0xff]  ;;  %v183_v29 = vld [vmem:[%s2153_s22 + $0x168] sm:$0xff] }
  0x1f   : > { %176 = vst [vmem:[%s2161_s23 + $0xc8] sm:$0xff] %v175_v25  ;;  %178 = vst [vmem:[%s2161_s23 + $0xd0] sm:$0xff] %v177_v26  ;;  %v185_v30 = vld [vmem:[%s2153_s22 + $0x170] sm:$0xff]  ;;  %v187_v31 = vld [vmem:[%s2153_s22 + $0x178] sm:$0xff] }
  0x20   : > { %180 = vst [vmem:[%s2161_s23 + $0xd8] sm:$0xff] %v179_v27  ;;  %182 = vst [vmem:[%s2161_s23 + $0xe0] sm:$0xff] %v181_v28  ;;  %v189_v32 = vld [vmem:[%s2153_s22 + $0x200] sm:$0xff]  ;;  %v191_v33 = vld [vmem:[%s2153_s22 + $0x208] sm:$0xff] }
  0x21   : > { %184 = vst [vmem:[%s2161_s23 + $0xe8] sm:$0xff] %v183_v29  ;;  %186 = vst [vmem:[%s2161_s23 + $0xf0] sm:$0xff] %v185_v30  ;;  %v193_v34 = vld [vmem:[%s2153_s22 + $0x210] sm:$0xff]  ;;  %v195_v35 = vld [vmem:[%s2153_s22 + $0x218] sm:$0xff] }
  0x22   : > { %188 = vst [vmem:[%s2161_s23 + $0xf8] sm:$0xff] %v187_v31  ;;  %190 = vst [vmem:[%s2161_s23 + $0x100] sm:$0xff] %v189_v32  ;;  %v197_v36 = vld [vmem:[%s2153_s22 + $0x220] sm:$0xff]  ;;  %v199_v37 = vld [vmem:[%s2153_s22 + $0x228] sm:$0xff] }
  0x23   : > { %192 = vst [vmem:[%s2161_s23 + $0x108] sm:$0xff] %v191_v33  ;;  %194 = vst [vmem:[%s2161_s23 + $0x110] sm:$0xff] %v193_v34  ;;  %v201_v38 = vld [vmem:[%s2153_s22 + $0x230] sm:$0xff]  ;;  %v203_v39 = vld [vmem:[%s2153_s22 + $0x238] sm:$0xff] }
  0x24   : > { %196 = vst [vmem:[%s2161_s23 + $0x118] sm:$0xff] %v195_v35  ;;  %198 = vst [vmem:[%s2161_s23 + $0x120] sm:$0xff] %v197_v36  ;;  %v205_v40 = vld [vmem:[%s2153_s22 + $0x240] sm:$0xff]  ;;  %v207_v41 = vld [vmem:[%s2153_s22 + $0x248] sm:$0xff] }
  0x25   : > { %200 = vst [vmem:[%s2161_s23 + $0x128] sm:$0xff] %v199_v37  ;;  %202 = vst [vmem:[%s2161_s23 + $0x130] sm:$0xff] %v201_v38  ;;  %v209_v42 = vld [vmem:[%s2153_s22 + $0x250] sm:$0xff]  ;;  %v211_v43 = vld [vmem:[%s2153_s22 + $0x258] sm:$0xff] }
  0x26   : > { %204 = vst [vmem:[%s2161_s23 + $0x138] sm:$0xff] %v203_v39  ;;  %206 = vst [vmem:[%s2161_s23 + $0x140] sm:$0xff] %v205_v40  ;;  %v213_v44 = vld [vmem:[%s2153_s22 + $0x260] sm:$0xff]  ;;  %v215_v45 = vld [vmem:[%s2153_s22 + $0x268] sm:$0xff] }
  0x27   : > { %208 = vst [vmem:[%s2161_s23 + $0x148] sm:$0xff] %v207_v41  ;;  %210 = vst [vmem:[%s2161_s23 + $0x150] sm:$0xff] %v209_v42  ;;  %v217_v46 = vld [vmem:[%s2153_s22 + $0x270] sm:$0xff]  ;;  %v219_v47 = vld [vmem:[%s2153_s22 + $0x278] sm:$0xff] }
  0x28   : > { %212 = vst [vmem:[%s2161_s23 + $0x158] sm:$0xff] %v211_v43  ;;  %214 = vst [vmem:[%s2161_s23 + $0x160] sm:$0xff] %v213_v44  ;;  %v221_v48 = vld [vmem:[%s2153_s22 + $0x300] sm:$0xff]  ;;  %v223_v49 = vld [vmem:[%s2153_s22 + $0x308] sm:$0xff] }
  0x29   : > { %216 = vst [vmem:[%s2161_s23 + $0x168] sm:$0xff] %v215_v45  ;;  %218 = vst [vmem:[%s2161_s23 + $0x170] sm:$0xff] %v217_v46  ;;  %v225_v50 = vld [vmem:[%s2153_s22 + $0x310] sm:$0xff]  ;;  %v227_v51 = vld [vmem:[%s2153_s22 + $0x318] sm:$0xff] }
  0x2a   : > { %220 = vst [vmem:[%s2161_s23 + $0x178] sm:$0xff] %v219_v47  ;;  %222 = vst [vmem:[%s2161_s23 + $0x180] sm:$0xff] %v221_v48  ;;  %v229_v52 = vld [vmem:[%s2153_s22 + $0x320] sm:$0xff]  ;;  %v231_v53 = vld [vmem:[%s2153_s22 + $0x328] sm:$0xff] }
  0x2b   : > { %224 = vst [vmem:[%s2161_s23 + $0x188] sm:$0xff] %v223_v49  ;;  %226 = vst [vmem:[%s2161_s23 + $0x190] sm:$0xff] %v225_v50  ;;  %v233_v54 = vld [vmem:[%s2153_s22 + $0x330] sm:$0xff]  ;;  %v235_v55 = vld [vmem:[%s2153_s22 + $0x338] sm:$0xff] }
  0x2c   : > { %228 = vst [vmem:[%s2161_s23 + $0x198] sm:$0xff] %v227_v51  ;;  %230 = vst [vmem:[%s2161_s23 + $0x1a0] sm:$0xff] %v229_v52  ;;  %v237_v56 = vld [vmem:[%s2153_s22 + $0x340] sm:$0xff]  ;;  %v239_v57 = vld [vmem:[%s2153_s22 + $0x348] sm:$0xff] }
  0x2d   : > { %232 = vst [vmem:[%s2161_s23 + $0x1a8] sm:$0xff] %v231_v53  ;;  %234 = vst [vmem:[%s2161_s23 + $0x1b0] sm:$0xff] %v233_v54  ;;  %v241_v58 = vld [vmem:[%s2153_s22 + $0x350] sm:$0xff]  ;;  %v243_v59 = vld [vmem:[%s2153_s22 + $0x358] sm:$0xff] }
  0x2e   : > { %236 = vst [vmem:[%s2161_s23 + $0x1b8] sm:$0xff] %v235_v55  ;;  %238 = vst [vmem:[%s2161_s23 + $0x1c0] sm:$0xff] %v237_v56  ;;  %v245_v60 = vld [vmem:[%s2153_s22 + $0x360] sm:$0xff]  ;;  %v247_v61 = vld [vmem:[%s2153_s22 + $0x368] sm:$0xff] }
  0x2f   : > { %240 = vst [vmem:[%s2161_s23 + $0x1c8] sm:$0xff] %v239_v57  ;;  %242 = vst [vmem:[%s2161_s23 + $0x1d0] sm:$0xff] %v241_v58  ;;  %v249_v62 = vld [vmem:[%s2153_s22 + $0x370] sm:$0xff]  ;;  %v251_v63 = vld [vmem:[%s2153_s22 + $0x378] sm:$0xff] }
  0x30   : > { %244 = vst [vmem:[%s2161_s23 + $0x1d8] sm:$0xff] %v243_v59  ;;  %246 = vst [vmem:[%s2161_s23 + $0x1e0] sm:$0xff] %v245_v60  ;;  %v253_v0 = vld [vmem:[%s2153_s22 + $0x400] sm:$0xff]  ;;  %v255_v1 = vld [vmem:[%s2153_s22 + $0x408] sm:$0xff] }
  0x31   : > { %248 = vst [vmem:[%s2161_s23 + $0x1e8] sm:$0xff] %v247_v61  ;;  %250 = vst [vmem:[%s2161_s23 + $0x1f0] sm:$0xff] %v249_v62  ;;  %v257_v2 = vld [vmem:[%s2153_s22 + $0x410] sm:$0xff]  ;;  %v259_v3 = vld [vmem:[%s2153_s22 + $0x418] sm:$0xff] }
  0x32   : > { %252 = vst [vmem:[%s2161_s23 + $0x1f8] sm:$0xff] %v251_v63  ;;  %254 = vst [vmem:[%s2161_s23 + $0x200] sm:$0xff] %v253_v0  ;;  %v261_v4 = vld [vmem:[%s2153_s22 + $0x420] sm:$0xff]  ;;  %v263_v5 = vld [vmem:[%s2153_s22 + $0x428] sm:$0xff] }
  0x33   : > { %256 = vst [vmem:[%s2161_s23 + $0x208] sm:$0xff] %v255_v1  ;;  %258 = vst [vmem:[%s2161_s23 + $0x210] sm:$0xff] %v257_v2  ;;  %v265_v6 = vld [vmem:[%s2153_s22 + $0x430] sm:$0xff]  ;;  %v267_v7 = vld [vmem:[%s2153_s22 + $0x438] sm:$0xff] }
  0x34   : > { %260 = vst [vmem:[%s2161_s23 + $0x218] sm:$0xff] %v259_v3  ;;  %262 = vst [vmem:[%s2161_s23 + $0x220] sm:$0xff] %v261_v4  ;;  %v269_v8 = vld [vmem:[%s2153_s22 + $0x440] sm:$0xff]  ;;  %v271_v9 = vld [vmem:[%s2153_s22 + $0x448] sm:$0xff] }
  0x35   : > { %264 = vst [vmem:[%s2161_s23 + $0x228] sm:$0xff] %v263_v5  ;;  %266 = vst [vmem:[%s2161_s23 + $0x230] sm:$0xff] %v265_v6  ;;  %v273_v10 = vld [vmem:[%s2153_s22 + $0x450] sm:$0xff]  ;;  %v275_v11 = vld [vmem:[%s2153_s22 + $0x458] sm:$0xff] }
  0x36   : > { %268 = vst [vmem:[%s2161_s23 + $0x238] sm:$0xff] %v267_v7  ;;  %270 = vst [vmem:[%s2161_s23 + $0x240] sm:$0xff] %v269_v8  ;;  %v277_v12 = vld [vmem:[%s2153_s22 + $0x460] sm:$0xff]  ;;  %v279_v13 = vld [vmem:[%s2153_s22 + $0x468] sm:$0xff] }
  0x37   : > { %272 = vst [vmem:[%s2161_s23 + $0x248] sm:$0xff] %v271_v9  ;;  %274 = vst [vmem:[%s2161_s23 + $0x250] sm:$0xff] %v273_v10  ;;  %v281_v14 = vld [vmem:[%s2153_s22 + $0x470] sm:$0xff]  ;;  %v283_v15 = vld [vmem:[%s2153_s22 + $0x478] sm:$0xff] }
  0x38   : > { %276 = vst [vmem:[%s2161_s23 + $0x258] sm:$0xff] %v275_v11  ;;  %278 = vst [vmem:[%s2161_s23 + $0x260] sm:$0xff] %v277_v12  ;;  %v285_v16 = vld [vmem:[%s2153_s22 + $0x500] sm:$0xff]  ;;  %v287_v17 = vld [vmem:[%s2153_s22 + $0x508] sm:$0xff] }
  0x39   : > { %280 = vst [vmem:[%s2161_s23 + $0x268] sm:$0xff] %v279_v13  ;;  %282 = vst [vmem:[%s2161_s23 + $0x270] sm:$0xff] %v281_v14  ;;  %v289_v18 = vld [vmem:[%s2153_s22 + $0x510] sm:$0xff]  ;;  %v291_v19 = vld [vmem:[%s2153_s22 + $0x518] sm:$0xff] }
  0x3a   : > { %284 = vst [vmem:[%s2161_s23 + $0x278] sm:$0xff] %v283_v15  ;;  %286 = vst [vmem:[%s2161_s23 + $0x280] sm:$0xff] %v285_v16  ;;  %v293_v20 = vld [vmem:[%s2153_s22 + $0x520] sm:$0xff]  ;;  %v295_v21 = vld [vmem:[%s2153_s22 + $0x528] sm:$0xff] }
  0x3b   : > { %288 = vst [vmem:[%s2161_s23 + $0x288] sm:$0xff] %v287_v17  ;;  %290 = vst [vmem:[%s2161_s23 + $0x290] sm:$0xff] %v289_v18  ;;  %v297_v22 = vld [vmem:[%s2153_s22 + $0x530] sm:$0xff]  ;;  %v299_v23 = vld [vmem:[%s2153_s22 + $0x538] sm:$0xff] }
  0x3c   : > { %292 = vst [vmem:[%s2161_s23 + $0x298] sm:$0xff] %v291_v19  ;;  %294 = vst [vmem:[%s2161_s23 + $0x2a0] sm:$0xff] %v293_v20  ;;  %v301_v24 = vld [vmem:[%s2153_s22 + $0x540] sm:$0xff]  ;;  %v303_v25 = vld [vmem:[%s2153_s22 + $0x548] sm:$0xff] }
  0x3d   : > { %296 = vst [vmem:[%s2161_s23 + $0x2a8] sm:$0xff] %v295_v21  ;;  %298 = vst [vmem:[%s2161_s23 + $0x2b0] sm:$0xff] %v297_v22  ;;  %v305_v26 = vld [vmem:[%s2153_s22 + $0x550] sm:$0xff]  ;;  %v307_v27 = vld [vmem:[%s2153_s22 + $0x558] sm:$0xff] }
  0x3e   : > { %300 = vst [vmem:[%s2161_s23 + $0x2b8] sm:$0xff] %v299_v23  ;;  %302 = vst [vmem:[%s2161_s23 + $0x2c0] sm:$0xff] %v301_v24  ;;  %v309_v28 = vld [vmem:[%s2153_s22 + $0x560] sm:$0xff]  ;;  %v311_v29 = vld [vmem:[%s2153_s22 + $0x568] sm:$0xff] }
  0x3f   : > { %304 = vst [vmem:[%s2161_s23 + $0x2c8] sm:$0xff] %v303_v25  ;;  %306 = vst [vmem:[%s2161_s23 + $0x2d0] sm:$0xff] %v305_v26  ;;  %v313_v30 = vld [vmem:[%s2153_s22 + $0x570] sm:$0xff]  ;;  %v315_v31 = vld [vmem:[%s2153_s22 + $0x578] sm:$0xff] }
  0x40   : > { %308 = vst [vmem:[%s2161_s23 + $0x2d8] sm:$0xff] %v307_v27  ;;  %310 = vst [vmem:[%s2161_s23 + $0x2e0] sm:$0xff] %v309_v28 }
  0x41   : > { %312 = vst [vmem:[%s2161_s23 + $0x2e8] sm:$0xff] %v311_v29  ;;  %314 = vst [vmem:[%s2161_s23 + $0x2f0] sm:$0xff] %v313_v30 }
  0x42   : > { %316 = vst [vmem:[%s2161_s23 + $0x2f8] sm:$0xff] %v315_v31 }
  0x43 PF: > { %p1902_p5 = scmp.ge.s32.totalorder %s2101_s11, 1  ;;  %p321_p6 = scmp.lt.s32.totalorder %s2101_s11, 3 }
  0x45   : > { %p322_p7 = pnand %p1902_p5, %p321_p6 }
  0x46   : > { %s328_s24 = sand.u32 (!%p322_p7), 1, %s2093_s9   ;;  %v2103_v32 = vmov (!%p322_p7), 0   ;;  %v2379_v3 = vld [vmem:[%s2536_s0] sm:$0xf] (!%p322_p7)  ;;  %vm934_vm0 = vcmask (!%p322_p7), 392192   ;;  %s1903_s29 = sshll.u32 (!%p322_p7), %s1896_s12, 5 }
  0x47   : > { %325 = sbr.rel (%p322_p7) target bundleno = 395 (0x18b), region = 47  ;;  %970 = vmatprep.mubr.bf16.mxu0 (!%p322_p7), %v2103_v32  ;;  %1011 = vmatprep.mubr.bf16.mxu1 (!%p322_p7), %v2103_v32  ;;  %p351_p8 = scmp.lt.s32.totalorder (!%p322_p7), %s1903_s29, 63 }
  0x48   : > { %s2053_s25 = smul.u32 (!%p322_p7), 768, %s328_s24 }
  0x4a   : > { %s2354_s26 = scalar_lea.vmem (!%p322_p7), [#allocation2], %s2053_s25 }
  0x4b   : > { %v358_v33 = vld [vmem:[%s2354_s26] sm:$0xff] (!%p322_p7)  ;;  %v359_v35 = vld [vmem:[%s2354_s26 + $0x8] sm:$0xff] (!%p322_p7)  ;;  %v360_v55 = vld [vmem:[%s2354_s26 + $0x10] sm:$0xff] (!%p322_p7) }
  0x4c   : > { %v374_v34 = vld [vmem:[%s2354_s26 + $0x80] sm:$0xff] (!%p322_p7)  ;;  %v375_v37 = vld [vmem:[%s2354_s26 + $0x88] sm:$0xff] (!%p322_p7)  ;;  %v376_v56 = vld [vmem:[%s2354_s26 + $0x90] sm:$0xff] (!%p322_p7) }
  0x4d   : > { %v1906_v36 = vcombine.high (!%p322_p7), %v358_v33, %v374_v34  ;;  %v1905_v38 = vcombine.low (!%p322_p7), %v358_v33, %v374_v34  ;;  %v390_v39 = vld [vmem:[%s2354_s26 + $0x100] sm:$0xff] (!%p322_p7)  ;;  %v1908_v41 = vcombine.high (!%p322_p7), %v359_v35, %v375_v37  ;;  %v1907_v42 = vcombine.low (!%p322_p7), %v359_v35, %v375_v37  ;;  %v391_v44 = vld [vmem:[%s2354_s26 + $0x108] sm:$0xff] (!%p322_p7)  ;;  %v361_v57 = vld [vmem:[%s2354_s26 + $0x18] sm:$0xff] (!%p322_p7) }
  0x4e   : > { %v406_v40 = vld [vmem:[%s2354_s26 + $0x180] sm:$0xff]  ;;  %v407_v45 = vld [vmem:[%s2354_s26 + $0x188] sm:$0xff]  ;;  %v377_v58 = vld [vmem:[%s2354_s26 + $0x98] sm:$0xff]  ;;  %v1910_v61 = vcombine.high %v360_v55, %v376_v56  ;;  %v1909_v4 = vcombine.low %v360_v55, %v376_v56  ;;  %s2543_s29 = smov (!%p351_p8, %s1903_s29), 63 }
  0x4f   : > { %v1938_v43 = vcombine.high %v390_v39, %v406_v40  ;;  %v422_v46 = vld [vmem:[%s2354_s26 + $0x200] sm:$0xff]  ;;  %938 = vmatprep.subr.bf16.mxu0 %v1906_v36  ;;  %v1940_v47 = vcombine.high %v391_v44, %v407_v45  ;;  %v423_v49 = vld [vmem:[%s2354_s26 + $0x208] sm:$0xff]  ;;  %979 = vmatprep.subr.bf16.mxu1 %v1908_v41  ;;  %v1937_v51 = vcombine.low %v390_v39, %v406_v40  ;;  %v392_v63 = vld [vmem:[%s2354_s26 + $0x110] sm:$0xff]  ;;  %s1904_s30 = sshll.u32 %s2543_s29, 2 }
  0x50   : > { %v438_v48 = vld [vmem:[%s2354_s26 + $0x280] sm:$0xff]  ;;  %v439_v50 = vld [vmem:[%s2354_s26 + $0x288] sm:$0xff]  ;;  %939 = vmatpush1.bf16.msra.mxu0 %v1905_v38  ;;  %980 = vmatpush1.bf16.msra.mxu1 %v1907_v42  ;;  %v1939_v52 = vcombine.low %v391_v44, %v407_v45  ;;  %v1912_v62 = vcombine.high %v361_v57, %v377_v58  ;;  %v408_v0 = vld [vmem:[%s2354_s26 + $0x190] sm:$0xff]  ;;  %v1911_v5 = vcombine.low %v361_v57, %v377_v58  ;;  %s2508_s5 = scalar_lea.vmem %s2538_s2, %s1904_s30 }
  0x51   : > { %940 = vmatprep.subr.bf16.mxu0 %v1938_v43  ;;  %v1970_v53 = vcombine.high %v422_v46, %v438_v48  ;;  %981 = vmatprep.subr.bf16.mxu1 %v1940_v47  ;;  %v1972_v54 = vcombine.high %v423_v49, %v439_v50  ;;  %v1969_v59 = vcombine.low %v422_v46, %v438_v48  ;;  %v393_v1 = vld [vmem:[%s2354_s26 + $0x118] sm:$0xff]  ;;  %v424_v8 = vld [vmem:[%s2354_s26 + $0x210] sm:$0xff]  ;;  %v362_v16 = vld [vmem:[%s2354_s26 + $0x20] sm:$0xff] }
  0x52   : > { %v1971_v60 = vcombine.low %v423_v49, %v439_v50  ;;  %v409_v2 = vld [vmem:[%s2354_s26 + $0x198] sm:$0xff]  ;;  %v1942_v6 = vcombine.high %v392_v63, %v408_v0  ;;  %v440_v9 = vld [vmem:[%s2354_s26 + $0x290] sm:$0xff]  ;;  %v1941_v12 = vcombine.low %v392_v63, %v408_v0  ;;  %v378_v17 = vld [vmem:[%s2354_s26 + $0xa0] sm:$0xff] }
  0x53   : > { %v1944_v7 = vcombine.high %v393_v1, %v409_v2  ;;  %v425_v10 = vld [vmem:[%s2354_s26 + $0x218] sm:$0xff]  ;;  %v1943_v13 = vcombine.low %v393_v1, %v409_v2  ;;  %v1974_v14 = vcombine.high %v424_v8, %v440_v9  ;;  %v363_v18 = vld [vmem:[%s2354_s26 + $0x28] sm:$0xff]  ;;  %v1973_v20 = vcombine.low %v424_v8, %v440_v9  ;;  %v394_v24 = vld [vmem:[%s2354_s26 + $0x120] sm:$0xff] }
  0x54   : > { %941 = vmatpush1.bf16.msra.mxu0 %v1937_v51  ;;  %982 = vmatpush1.bf16.msra.mxu1 %v1939_v52  ;;  %v441_v11 = vld [vmem:[%s2354_s26 + $0x298] sm:$0xff]  ;;  %v379_v19 = vld [vmem:[%s2354_s26 + $0xa8] sm:$0xff]  ;;  %v1914_v22 = vcombine.high %v362_v16, %v378_v17  ;;  %v410_v25 = vld [vmem:[%s2354_s26 + $0x1a0] sm:$0xff]  ;;  %v1913_v28 = vcombine.low %v362_v16, %v378_v17 }
  0x55   : > { %942 = vmatprep.subr.bf16.mxu0 %v1970_v53  ;;  %983 = vmatprep.subr.bf16.mxu1 %v1972_v54  ;;  %v1976_v15 = vcombine.high %v425_v10, %v441_v11  ;;  %v1975_v21 = vcombine.low %v425_v10, %v441_v11  ;;  %v1916_v23 = vcombine.high %v363_v18, %v379_v19  ;;  %v395_v26 = vld [vmem:[%s2354_s26 + $0x128] sm:$0xff]  ;;  %v426_v33 = vld [vmem:[%s2354_s26 + $0x220] sm:$0xff]  ;;  %v364_v41 = vld [vmem:[%s2354_s26 + $0x30] sm:$0xff] }
  0x56   : > { %v411_v27 = vld [vmem:[%s2354_s26 + $0x1a8] sm:$0xff]  ;;  %v1915_v29 = vcombine.low %v363_v18, %v379_v19  ;;  %v1946_v30 = vcombine.high %v394_v24, %v410_v25  ;;  %v442_v34 = vld [vmem:[%s2354_s26 + $0x2a0] sm:$0xff]  ;;  %v1945_v37 = vcombine.low %v394_v24, %v410_v25  ;;  %v380_v42 = vld [vmem:[%s2354_s26 + $0xb0] sm:$0xff] }
  0x57   : > { %v1948_v31 = vcombine.high %v395_v26, %v411_v27  ;;  %v427_v35 = vld [vmem:[%s2354_s26 + $0x228] sm:$0xff]  ;;  %v1947_v38 = vcombine.low %v395_v26, %v411_v27  ;;  %v1978_v39 = vcombine.high %v426_v33, %v442_v34  ;;  %v365_v43 = vld [vmem:[%s2354_s26 + $0x38] sm:$0xff]  ;;  %v1977_v45 = vcombine.low %v426_v33, %v442_v34  ;;  %v396_v49 = vld [vmem:[%s2354_s26 + $0x130] sm:$0xff] }
  0x58   : > { %943 = vmatpush1.bf16.msra.mxu0 %v1969_v59  ;;  %984 = vmatpush1.bf16.msra.mxu1 %v1971_v60  ;;  %v443_v36 = vld [vmem:[%s2354_s26 + $0x2a8] sm:$0xff]  ;;  %v381_v44 = vld [vmem:[%s2354_s26 + $0xb8] sm:$0xff]  ;;  %v1918_v47 = vcombine.high %v364_v41, %v380_v42  ;;  %v412_v50 = vld [vmem:[%s2354_s26 + $0x1b0] sm:$0xff]  ;;  %v1917_v53 = vcombine.low %v364_v41, %v380_v42 }
  0x59   : > { %1020 = vmatprep.subr.bf16.mxu0 %v1910_v61  ;;  %1061 = vmatprep.subr.bf16.mxu1 %v1912_v62  ;;  %v1980_v40 = vcombine.high %v427_v35, %v443_v36  ;;  %v1979_v46 = vcombine.low %v427_v35, %v443_v36  ;;  %v1920_v48 = vcombine.high %v365_v43, %v381_v44  ;;  %v397_v51 = vld [vmem:[%s2354_s26 + $0x138] sm:$0xff]  ;;  %v428_v57 = vld [vmem:[%s2354_s26 + $0x230] sm:$0xff]  ;;  %v366_v1 = vld [vmem:[%s2354_s26 + $0x40] sm:$0xff] }
  0x5a   : > { %v413_v52 = vld [vmem:[%s2354_s26 + $0x1b8] sm:$0xff]  ;;  %v1919_v54 = vcombine.low %v365_v43, %v381_v44  ;;  %v1950_v55 = vcombine.high %v396_v49, %v412_v50  ;;  %v444_v58 = vld [vmem:[%s2354_s26 + $0x2b0] sm:$0xff]  ;;  %v1949_v61 = vcombine.low %v396_v49, %v412_v50  ;;  %v382_v2 = vld [vmem:[%s2354_s26 + $0xc0] sm:$0xff] }
  0x5b   : > { %2001 = vmatmul.mubr.msk.bf16.vlgmr.msra.gmra.mrb[0].mxu0 %vm934_vm0, %v2379_v3  ;;  %2002 = vmatmul.mubr.msk.bf16.vlgmr.msra.gmra.mrb[0].mxu1 %vm934_vm0, %v2379_v3  ;;  %v1952_v56 = vcombine.high %v397_v51, %v413_v52  ;;  %v429_v59 = vld [vmem:[%s2354_s26 + $0x238] sm:$0xff]  ;;  %v1951_v62 = vcombine.low %v397_v51, %v413_v52  ;;  %v1982_v63 = vcombine.high %v428_v57, %v444_v58  ;;  %v398_v10 = vld [vmem:[%s2354_s26 + $0x140] sm:$0xff]  ;;  %v368_v26 = vld [vmem:[%s2354_s26 + $0x50] sm:$0xff] }
  0x5c   : > { %1021 = vmatpush1.bf16.msra.mxu0 %v1909_v4  ;;  %1062 = vmatpush1.bf16.msra.mxu1 %v1911_v5  ;;  %v445_v60 = vld [vmem:[%s2354_s26 + $0x2b8] sm:$0xff]  ;;  %v367_v4 = vld [vmem:[%s2354_s26 + $0x48] sm:$0xff]  ;;  %v1922_v8 = vcombine.high %v366_v1, %v382_v2  ;;  %v414_v11 = vld [vmem:[%s2354_s26 + $0x1c0] sm:$0xff] }
  0x5d   : > { %1022 = vmatprep.subr.bf16.mxu0 %v1942_v6  ;;  %1063 = vmatprep.subr.bf16.mxu1 %v1944_v7  ;;  %v1984_v0 = vcombine.high %v429_v59, %v445_v60  ;;  %v383_v5 = vld [vmem:[%s2354_s26 + $0xc8] sm:$0xff]  ;;  %v1981_v6 = vcombine.low %v428_v57, %v444_v58  ;;  %v1983_v7 = vcombine.low %v429_v59, %v445_v60  ;;  %v430_v18 = vld [vmem:[%s2354_s26 + $0x240] sm:$0xff]  ;;  %v384_v27 = vld [vmem:[%s2354_s26 + $0xd0] sm:$0xff] }
  0x5e   : > { %1052 = vmatprep.mubr.bf16.mxu0 %v2103_v32  ;;  %1093 = vmatprep.mubr.bf16.mxu1 %v2103_v32  ;;  %v1924_v9 = vcombine.high %v367_v4, %v383_v5  ;;  %v1954_v16 = vcombine.high %v398_v10, %v414_v11  ;;  %v446_v19 = vld [vmem:[%s2354_s26 + $0x2c0] sm:$0xff]  ;;  %v1926_v33 = vcombine.high %v368_v26, %v384_v27  ;;  %v400_v35 = vld [vmem:[%s2354_s26 + $0x150] sm:$0xff] }
  0x5f   : > { %v1986_v24 = vcombine.high %v430_v18, %v446_v19  ;;  %v416_v36 = vld [vmem:[%s2354_s26 + $0x1d0] sm:$0xff]  ;;  %v370_v51 = vld [vmem:[%s2354_s26 + $0x60] sm:$0xff] }
  0x60   : > { %1023 = vmatpush1.bf16.msra.mxu0 %v1941_v12  ;;  %1064 = vmatpush1.bf16.msra.mxu1 %v1943_v13  ;;  %v399_v12 = vld [vmem:[%s2354_s26 + $0x148] sm:$0xff]  ;;  %v1958_v41 = vcombine.high %v400_v35, %v416_v36  ;;  %v432_v43 = vld [vmem:[%s2354_s26 + $0x250] sm:$0xff]  ;;  %v386_v52 = vld [vmem:[%s2354_s26 + $0xe0] sm:$0xff] }
  0x61   : > { %1024 = vmatprep.subr.bf16.mxu0 %v1974_v14  ;;  %1065 = vmatprep.subr.bf16.mxu1 %v1976_v15  ;;  %v415_v13 = vld [vmem:[%s2354_s26 + $0x1c8] sm:$0xff]  ;;  %v1921_v14 = vcombine.low %v366_v1, %v382_v2  ;;  %v1923_v15 = vcombine.low %v367_v4, %v383_v5  ;;  %v448_v44 = vld [vmem:[%s2354_s26 + $0x2d0] sm:$0xff]  ;;  %v1930_v57 = vcombine.high %v370_v51, %v386_v52  ;;  %v402_v59 = vld [vmem:[%s2354_s26 + $0x160] sm:$0xff] }
  0x62   : > { %v1956_v17 = vcombine.high %v399_v12, %v415_v13  ;;  %v1990_v49 = vcombine.high %v432_v43, %v448_v44  ;;  %v418_v60 = vld [vmem:[%s2354_s26 + $0x1e0] sm:$0xff] }
  0x63   : > { %v1962_v1 = vcombine.high %v402_v59, %v418_v60  ;;  %v434_v4 = vld [vmem:[%s2354_s26 + $0x260] sm:$0xff] }
  0x64   : > { %1025 = vmatpush1.bf16.msra.mxu0 %v1973_v20  ;;  %1066 = vmatpush1.bf16.msra.mxu1 %v1975_v21  ;;  %v431_v20 = vld [vmem:[%s2354_s26 + $0x248] sm:$0xff]  ;;  %v450_v5 = vld [vmem:[%s2354_s26 + $0x2e0] sm:$0xff] }
  0x65   : > { %1102 = vmatprep.subr.bf16.mxu0 %v1914_v22  ;;  %1143 = vmatprep.subr.bf16.mxu1 %v1916_v23  ;;  %v447_v21 = vld [vmem:[%s2354_s26 + $0x2c8] sm:$0xff]  ;;  %v1953_v22 = vcombine.low %v398_v10, %v414_v11  ;;  %v1955_v23 = vcombine.low %v399_v12, %v415_v13  ;;  %v1994_v10 = vcombine.high %v434_v4, %v450_v5  ;;  %v372_v12 = vld [vmem:[%s2354_s26 + $0x70] sm:$0xff] }
  0x66   : > { %v1988_v25 = vcombine.high %v431_v20, %v447_v21  ;;  %v388_v13 = vld [vmem:[%s2354_s26 + $0xf0] sm:$0xff] }
  0x67   : > { %2003 = vmatmul.mubr.msk.bf16.vlgmr.msra.gmra.mrb[4].mxu0 %vm934_vm0, %v2379_v3  ;;  %2004 = vmatmul.mubr.msk.bf16.vlgmr.msra.gmra.mrb[4].mxu1 %vm934_vm0, %v2379_v3 }
  0x68   : > { %1103 = vmatpush1.bf16.msra.mxu0 %v1913_v28  ;;  %1144 = vmatpush1.bf16.msra.mxu1 %v1915_v29  ;;  %v369_v28 = vld [vmem:[%s2354_s26 + $0x58] sm:$0xff] }
  0x69   : > { %1104 = vmatprep.subr.bf16.mxu0 %v1946_v30  ;;  %1145 = vmatprep.subr.bf16.mxu1 %v1948_v31  ;;  %v385_v29 = vld [vmem:[%s2354_s26 + $0xd8] sm:$0xff]  ;;  %v1985_v30 = vcombine.low %v430_v18, %v446_v19  ;;  %v1987_v31 = vcombine.low %v431_v20, %v447_v21  ;;  %v1934_v18 = vcombine.high %v372_v12, %v388_v13  ;;  %v404_v20 = vld [vmem:[%s2354_s26 + $0x170] sm:$0xff] }
  0x6a   : > { %1134 = vmatprep.mubr.bf16.mxu0 %v2103_v32  ;;  %1175 = vmatprep.mubr.bf16.mxu1 %v2103_v32  ;;  %v1928_v34 = vcombine.high %v369_v28, %v385_v29  ;;  %v420_v21 = vld [vmem:[%s2354_s26 + $0x1f0] sm:$0xff] }
  0x6c   : > { %1105 = vmatpush1.bf16.msra.mxu0 %v1945_v37  ;;  %1146 = vmatpush1.bf16.msra.mxu1 %v1947_v38  ;;  %v401_v37 = vld [vmem:[%s2354_s26 + $0x158] sm:$0xff] }
  0x6d   : > { %1106 = vmatprep.subr.bf16.mxu0 %v1978_v39  ;;  %1147 = vmatprep.subr.bf16.mxu1 %v1980_v40  ;;  %v417_v38 = vld [vmem:[%s2354_s26 + $0x1d8] sm:$0xff]  ;;  %v1925_v39 = vcombine.low %v368_v26, %v384_v27  ;;  %v1927_v40 = vcombine.low %v369_v28, %v385_v29  ;;  %v1966_v26 = vcombine.high %v404_v20, %v420_v21  ;;  %v436_v28 = vld [vmem:[%s2354_s26 + $0x270] sm:$0xff] }
  0x6e   : > { %v1960_v42 = vcombine.high %v401_v37, %v417_v38  ;;  %v452_v29 = vld [vmem:[%s2354_s26 + $0x2f0] sm:$0xff] }
  0x70   : > { %1107 = vmatpush1.bf16.msra.mxu0 %v1977_v45  ;;  %1148 = vmatpush1.bf16.msra.mxu1 %v1979_v46  ;;  %v433_v45 = vld [vmem:[%s2354_s26 + $0x258] sm:$0xff] }
  0x71   : > { %1184 = vmatprep.subr.bf16.mxu0 %v1918_v47  ;;  %1225 = vmatprep.subr.bf16.mxu1 %v1920_v48  ;;  %v449_v46 = vld [vmem:[%s2354_s26 + $0x2d8] sm:$0xff]  ;;  %v1957_v47 = vcombine.low %v400_v35, %v416_v36  ;;  %v1959_v48 = vcombine.low %v401_v37, %v417_v38  ;;  %v1998_v35 = vcombine.high %v436_v28, %v452_v29 }
  0x72   : > { %v1992_v50 = vcombine.high %v433_v45, %v449_v46  ;;  %v1997_v37 = vcombine.low %v436_v28, %v452_v29 }
  0x73   : > { %2005 = vmatmul.mubr.msk.bf16.vlgmr.msra.gmra.mrb[8].mxu0 %vm934_vm0, %v2379_v3  ;;  %2006 = vmatmul.mubr.msk.bf16.vlgmr.msra.gmra.mrb[8].mxu1 %vm934_vm0, %v2379_v3 }
  0x74   : > { %1185 = vmatpush1.bf16.msra.mxu0 %v1917_v53  ;;  %1226 = vmatpush1.bf16.msra.mxu1 %v1919_v54  ;;  %v371_v53 = vld [vmem:[%s2354_s26 + $0x68] sm:$0xff] }
  0x75   : > { %1186 = vmatprep.subr.bf16.mxu0 %v1950_v55  ;;  %1227 = vmatprep.subr.bf16.mxu1 %v1952_v56  ;;  %v387_v54 = vld [vmem:[%s2354_s26 + $0xe8] sm:$0xff]  ;;  %v1989_v55 = vcombine.low %v432_v43, %v448_v44  ;;  %v1991_v56 = vcombine.low %v433_v45, %v449_v46 }
  0x76   : > { %1216 = vmatprep.mubr.bf16.mxu0 %v2103_v32  ;;  %1257 = vmatprep.mubr.bf16.mxu1 %v2103_v32  ;;  %v1932_v58 = vcombine.high %v371_v53, %v387_v54 }
  0x78   : > { %1187 = vmatpush1.bf16.msra.mxu0 %v1949_v61  ;;  %1228 = vmatpush1.bf16.msra.mxu1 %v1951_v62  ;;  %v403_v61 = vld [vmem:[%s2354_s26 + $0x168] sm:$0xff] }
  0x79   : > { %1188 = vmatprep.subr.bf16.mxu0 %v1982_v63  ;;  %1229 = vmatprep.subr.bf16.mxu1 %v1984_v0  ;;  %v419_v62 = vld [vmem:[%s2354_s26 + $0x1e8] sm:$0xff]  ;;  %v1929_v63 = vcombine.low %v370_v51, %v386_v52  ;;  %v1931_v0 = vcombine.low %v371_v53, %v387_v54 }
  0x7a   : > { %v1964_v2 = vcombine.high %v403_v61, %v419_v62 }
  0x7c   : > { %1189 = vmatpush1.bf16.msra.mxu0 %v1981_v6  ;;  %1230 = vmatpush1.bf16.msra.mxu1 %v1983_v7  ;;  %v435_v6 = vld [vmem:[%s2354_s26 + $0x268] sm:$0xff] }
  0x7d   : > { %1266 = vmatprep.subr.bf16.mxu0 %v1922_v8  ;;  %1307 = vmatprep.subr.bf16.mxu1 %v1924_v9  ;;  %v451_v7 = vld [vmem:[%s2354_s26 + $0x2e8] sm:$0xff]  ;;  %v1961_v8 = vcombine.low %v402_v59, %v418_v60  ;;  %v1963_v9 = vcombine.low %v403_v61, %v419_v62 }
  0x7e   : > { %v1996_v11 = vcombine.high %v435_v6, %v451_v7 }
  0x7f   : > { %2007 = vmatmul.mubr.msk.bf16.vlgmr.msra.gmra.mrb[12].mxu0 %vm934_vm0, %v2379_v3  ;;  %2008 = vmatmul.mubr.msk.bf16.vlgmr.msra.gmra.mrb[12].mxu1 %vm934_vm0, %v2379_v3 }
  0x80   : > { %1267 = vmatpush1.bf16.msra.mxu0 %v1921_v14  ;;  %1308 = vmatpush1.bf16.msra.mxu1 %v1923_v15  ;;  %v373_v14 = vld [vmem:[%s2354_s26 + $0x78] sm:$0xff] }
  0x81   : > { %1268 = vmatprep.subr.bf16.mxu0 %v1954_v16  ;;  %1309 = vmatprep.subr.bf16.mxu1 %v1956_v17  ;;  %v389_v15 = vld [vmem:[%s2354_s26 + $0xf8] sm:$0xff]  ;;  %v1993_v16 = vcombine.low %v434_v4, %v450_v5  ;;  %v1995_v17 = vcombine.low %v435_v6, %v451_v7 }
  0x82   : > { %1298 = vmatprep.mubr.bf16.mxu0 %v2103_v32  ;;  %1339 = vmatprep.mubr.bf16.mxu1 %v2103_v32  ;;  %v1936_v19 = vcombine.high %v373_v14, %v389_v15 }
  0x84   : > { %1269 = vmatpush1.bf16.msra.mxu0 %v1953_v22  ;;  %1310 = vmatpush1.bf16.msra.mxu1 %v1955_v23  ;;  %v405_v22 = vld [vmem:[%s2354_s26 + $0x178] sm:$0xff] }
  0x85   : > { %1270 = vmatprep.subr.bf16.mxu0 %v1986_v24  ;;  %1311 = vmatprep.subr.bf16.mxu1 %v1988_v25  ;;  %v421_v23 = vld [vmem:[%s2354_s26 + $0x1f8] sm:$0xff]  ;;  %v1933_v24 = vcombine.low %v372_v12, %v388_v13  ;;  %v1935_v25 = vcombine.low %v373_v14, %v389_v15 }
  0x86   : > { %v1968_v27 = vcombine.high %v405_v22, %v421_v23 }
  0x88   : > { %1271 = vmatpush1.bf16.msra.mxu0 %v1985_v30  ;;  %1312 = vmatpush1.bf16.msra.mxu1 %v1987_v31  ;;  %v437_v30 = vld [vmem:[%s2354_s26 + $0x278] sm:$0xff] }
  0x89   : > { %1348 = vmatprep.subr.bf16.mxu0 %v1926_v33  ;;  %1389 = vmatprep.subr.bf16.mxu1 %v1928_v34  ;;  %v453_v31 = vld [vmem:[%s2354_s26 + $0x2f8] sm:$0xff]  ;;  %v1965_v33 = vcombine.low %v404_v20, %v420_v21  ;;  %v1967_v34 = vcombine.low %v405_v22, %v421_v23 }
  0x8a   : > { %v2000_v36 = vcombine.high %v437_v30, %v453_v31  ;;  %v1999_v38 = vcombine.low %v437_v30, %v453_v31 }
  0x8b   : > { %2009 = vmatmul.mubr.msk.bf16.vlgmr.msra.gmra.mrb[16].mxu0 %vm934_vm0, %v2379_v3  ;;  %2010 = vmatmul.mubr.msk.bf16.vlgmr.msra.gmra.mrb[16].mxu1 %vm934_vm0, %v2379_v3 }
  0x8c   : > { %1349 = vmatpush1.bf16.msra.mxu0 %v1925_v39  ;;  %1390 = vmatpush1.bf16.msra.mxu1 %v1927_v40 }
  0x8d   : > { %1350 = vmatprep.subr.bf16.mxu0 %v1958_v41  ;;  %1391 = vmatprep.subr.bf16.mxu1 %v1960_v42 }
  0x8e   : > { %1380 = vmatprep.mubr.bf16.mxu0 %v2103_v32  ;;  %1421 = vmatprep.mubr.bf16.mxu1 %v2103_v32 }
  0x90   : > { %1351 = vmatpush1.bf16.msra.mxu0 %v1957_v47  ;;  %1392 = vmatpush1.bf16.msra.mxu1 %v1959_v48 }
  0x91   : > { %1352 = vmatprep.subr.bf16.mxu0 %v1990_v49  ;;  %1393 = vmatprep.subr.bf16.mxu1 %v1992_v50 }
  0x94   : > { %1353 = vmatpush1.bf16.msra.mxu0 %v1989_v55  ;;  %1394 = vmatpush1.bf16.msra.mxu1 %v1991_v56 }
  0x95   : > { %1430 = vmatprep.subr.bf16.mxu0 %v1930_v57  ;;  %1471 = vmatprep.subr.bf16.mxu1 %v1932_v58 }
  0x97   : > { %2011 = vmatmul.mubr.msk.bf16.vlgmr.msra.gmra.mrb[20].mxu0 %vm934_vm0, %v2379_v3  ;;  %2012 = vmatmul.mubr.msk.bf16.vlgmr.msra.gmra.mrb[20].mxu1 %vm934_vm0, %v2379_v3 }
  0x98   : > { %1431 = vmatpush1.bf16.msra.mxu0 %v1929_v63  ;;  %1472 = vmatpush1.bf16.msra.mxu1 %v1931_v0 }
  0x99   : > { %1432 = vmatprep.subr.bf16.mxu0 %v1962_v1  ;;  %1473 = vmatprep.subr.bf16.mxu1 %v1964_v2 }
  0x9a   : > { %1462 = vmatprep.mubr.bf16.mxu0 %v2103_v32  ;;  %1503 = vmatprep.mubr.bf16.mxu1 %v2103_v32 }
  0x9c   : > { %1433 = vmatpush1.bf16.msra.mxu0 %v1961_v8  ;;  %1474 = vmatpush1.bf16.msra.mxu1 %v1963_v9 }
  0x9d   : > { %1434 = vmatprep.subr.bf16.mxu0 %v1994_v10  ;;  %1475 = vmatprep.subr.bf16.mxu1 %v1996_v11 }
  0xa0   : > { %1435 = vmatpush1.bf16.msra.mxu0 %v1993_v16  ;;  %1476 = vmatpush1.bf16.msra.mxu1 %v1995_v17 }
  0xa1   : > { %1512 = vmatprep.subr.bf16.mxu0 %v1934_v18  ;;  %1553 = vmatprep.subr.bf16.mxu1 %v1936_v19 }
  0xa3   : > { %2013 = vmatmul.mubr.msk.bf16.vlgmr.msra.gmra.mrb[24].mxu0 %vm934_vm0, %v2379_v3  ;;  %2014 = vmatmul.mubr.msk.bf16.vlgmr.msra.gmra.mrb[24].mxu1 %vm934_vm0, %v2379_v3 }
  0xa4   : > { %1513 = vmatpush1.bf16.msra.mxu0 %v1933_v24  ;;  %1554 = vmatpush1.bf16.msra.mxu1 %v1935_v25 }
  0xa5   : > { %1514 = vmatprep.subr.bf16.mxu0 %v1966_v26  ;;  %1555 = vmatprep.subr.bf16.mxu1 %v1968_v27 }
  0xa6   : > { %1544 = vmatprep.mubr.bf16.mxu0 %v2103_v32  ;;  %1585 = vmatprep.mubr.bf16.mxu1 %v2103_v32 }
  0xa8   : > { %1515 = vmatpush1.bf16.msra.mxu0 %v1965_v33  ;;  %1556 = vmatpush1.bf16.msra.mxu1 %v1967_v34 }
  0xa9   : > { %1516 = vmatprep.subr.bf16.mxu0 %v1998_v35  ;;  %1557 = vmatprep.subr.bf16.mxu1 %v2000_v36 }
  0xac   : > { %1517 = vmatpush1.bf16.msra.mxu0 %v1997_v37  ;;  %1558 = vmatpush1.bf16.msra.mxu1 %v1999_v38 }
  0xaf   : > { %2015 = vmatmul.mubr.msk.bf16.vlgmr.msra.gmra.mrb[28].mxu0 %vm934_vm0, %v2379_v3  ;;  %2016 = vmatmul.mubr.msk.bf16.vlgmr.msra.gmra.mrb[28].mxu1 %vm934_vm0, %v2379_v3 }
 0x12e   : > { %v972_v39 = vpop.f32.mrb[0].mxu0  ;;  %v1013_v40 = vpop.f32.mrb[0].mxu1 }
 0x12f   : > { %vm1594_vm1 = vcmp.gt.f32.partialorder %v972_v39, 0.0  ;;  %v1626_v32 = vmul.f32 0.2, %v972_v39  ;;  %v974_v41 = vpop.f32.mrb[1].mxu0  ;;  %vm1596_vm2 = vcmp.gt.f32.partialorder %v1013_v40, 0.0  ;;  %v1015_v45 = vpop.f32.mrb[1].mxu1 }
 0x130   : > { %v1628_v42 = vmul.f32 0.2, %v1013_v40  ;;  %vm1595_vm3 = vcmp.gt.f32.partialorder %v974_v41, 0.0  ;;  %v1627_v43 = vmul.f32 0.2, %v974_v41  ;;  %v976_v46 = vpop.f32.mrb[2].mxu0 }
 0x131   : > { %v1658_v44 = vsel %vm1594_vm1, %v972_v39, %v1626_v32  ;;  %vm1597_vm4 = vcmp.gt.f32.partialorder %v1015_v45, 0.0  ;;  %v1629_v48 = vmul.f32 0.2, %v1015_v45  ;;  %v1017_v49 = vpop.f32.mrb[2].mxu1  ;;  %v977_v50 = vpop.f32.mrb[3].mxu0 }
 0x132   : > { %v1660_v47 = vsel %vm1596_vm2, %v1013_v40, %v1628_v42  ;;  %v1659_v3 = vsel %vm1595_vm3, %v974_v41, %v1627_v43  ;;  %v1018_v52 = vpop.f32.mrb[3].mxu1 }
 0x133   : > { %v2036_v51 = vpack.c.bf16 %v1659_v3, %v1658_v44  ;;  %v1661_v53 = vsel %vm1597_vm4, %v1015_v45, %v1629_v48 }
 0x134   : > { %v2037_v54 = vpack.c.bf16 %v1661_v53, %v1660_v47 }
 0x135   : > { %1818 = vst [vmem:[%s2508_s5] sm:$0xff] %v2036_v51 }
 0x136   : > { %1819 = vst [vmem:[%s2508_s5 + $0x8] sm:$0xff] %v2037_v54 }
 0x13a   : > { %v1054_v55 = vpop.f32.mrb[4].mxu0  ;;  %v1095_v57 = vpop.f32.mrb[4].mxu1 }
 0x13b   : > { %vm1598_vm5 = vcmp.gt.f32.partialorder %v1054_v55, 0.0  ;;  %v1630_v56 = vmul.f32 0.2, %v1054_v55  ;;  %v1056_v58 = vpop.f32.mrb[5].mxu0  ;;  %vm1600_vm6 = vcmp.gt.f32.partialorder %v1095_v57, 0.0  ;;  %v1097_v62 = vpop.f32.mrb[5].mxu1 }
 0x13c   : > { %v1632_v59 = vmul.f32 0.2, %v1095_v57  ;;  %vm1599_vm7 = vcmp.gt.f32.partialorder %v1056_v58, 0.0  ;;  %v1631_v60 = vmul.f32 0.2, %v1056_v58  ;;  %v1058_v63 = vpop.f32.mrb[6].mxu0 }
 0x13d   : > { %v1662_v61 = vsel %vm1598_vm5, %v1054_v55, %v1630_v56  ;;  %vm1601_vm8 = vcmp.gt.f32.partialorder %v1097_v62, 0.0  ;;  %v1633_v2 = vmul.f32 0.2, %v1097_v62  ;;  %v1099_v4 = vpop.f32.mrb[6].mxu1  ;;  %v1059_v5 = vpop.f32.mrb[7].mxu0 }
 0x13e   : > { %v1664_v0 = vsel %vm1600_vm6, %v1095_v57, %v1632_v59  ;;  %v1663_v1 = vsel %vm1599_vm7, %v1056_v58, %v1631_v60  ;;  %v1100_v7 = vpop.f32.mrb[7].mxu1 }
 0x13f   : > { %v2038_v6 = vpack.c.bf16 %v1663_v1, %v1662_v61  ;;  %v1665_v8 = vsel %vm1601_vm8, %v1097_v62, %v1633_v2 }
 0x140   : > { %v2039_v9 = vpack.c.bf16 %v1665_v8, %v1664_v0 }
 0x141   : > { %1820 = vst [vmem:[%s2508_s5 + $0x10] sm:$0xff] %v2038_v6 }
 0x142   : > { %1821 = vst [vmem:[%s2508_s5 + $0x18] sm:$0xff] %v2039_v9 }
 0x146   : > { %v1136_v10 = vpop.f32.mrb[8].mxu0  ;;  %v1177_v12 = vpop.f32.mrb[8].mxu1 }
 0x147   : > { %vm1602_vm9 = vcmp.gt.f32.partialorder %v1136_v10, 0.0  ;;  %v1634_v11 = vmul.f32 0.2, %v1136_v10  ;;  %v1138_v13 = vpop.f32.mrb[9].mxu0  ;;  %vm1604_vm10 = vcmp.gt.f32.partialorder %v1177_v12, 0.0  ;;  %v1179_v17 = vpop.f32.mrb[9].mxu1 }
 0x148   : > { %v1636_v14 = vmul.f32 0.2, %v1177_v12  ;;  %vm1603_vm11 = vcmp.gt.f32.partialorder %v1138_v13, 0.0  ;;  %v1635_v15 = vmul.f32 0.2, %v1138_v13  ;;  %v1140_v18 = vpop.f32.mrb[10].mxu0 }
 0x149   : > { %v1666_v16 = vsel %vm1602_vm9, %v1136_v10, %v1634_v11  ;;  %vm1605_vm12 = vcmp.gt.f32.partialorder %v1179_v17, 0.0  ;;  %v1637_v21 = vmul.f32 0.2, %v1179_v17  ;;  %v1181_v22 = vpop.f32.mrb[10].mxu1  ;;  %v1141_v23 = vpop.f32.mrb[11].mxu0 }
 0x14a   : > { %v1668_v19 = vsel %vm1604_vm10, %v1177_v12, %v1636_v14  ;;  %v1667_v20 = vsel %vm1603_vm11, %v1138_v13, %v1635_v15  ;;  %v1182_v25 = vpop.f32.mrb[11].mxu1 }
 0x14b   : > { %v2040_v24 = vpack.c.bf16 %v1667_v20, %v1666_v16  ;;  %v1669_v26 = vsel %vm1605_vm12, %v1179_v17, %v1637_v21 }
 0x14c   : > { %v2041_v27 = vpack.c.bf16 %v1669_v26, %v1668_v19 }
 0x14d   : > { %1822 = vst [vmem:[%s2508_s5 + $0x20] sm:$0xff] %v2040_v24 }
 0x14e   : > { %1823 = vst [vmem:[%s2508_s5 + $0x28] sm:$0xff] %v2041_v27 }
 0x152   : > { %v1218_v28 = vpop.f32.mrb[12].mxu0  ;;  %v1259_v30 = vpop.f32.mrb[12].mxu1 }
 0x153   : > { %vm1606_vm13 = vcmp.gt.f32.partialorder %v1218_v28, 0.0  ;;  %v1638_v29 = vmul.f32 0.2, %v1218_v28  ;;  %v1220_v31 = vpop.f32.mrb[13].mxu0  ;;  %vm1608_vm14 = vcmp.gt.f32.partialorder %v1259_v30, 0.0  ;;  %v1261_v36 = vpop.f32.mrb[13].mxu1 }
 0x154   : > { %v1640_v33 = vmul.f32 0.2, %v1259_v30  ;;  %vm1607_vm15 = vcmp.gt.f32.partialorder %v1220_v31, 0.0  ;;  %v1639_v34 = vmul.f32 0.2, %v1220_v31  ;;  %v1222_v37 = vpop.f32.mrb[14].mxu0 }
 0x155   : > { %v1670_v35 = vsel %vm1606_vm13, %v1218_v28, %v1638_v29  ;;  %vm1609_vm0 = vcmp.gt.f32.partialorder %v1261_v36, 0.0  ;;  %v1641_v32 = vmul.f32 0.2, %v1261_v36  ;;  %v1263_v40 = vpop.f32.mrb[14].mxu1  ;;  %v1223_v41 = vpop.f32.mrb[15].mxu0 }
 0x156   : > { %v1672_v38 = vsel %vm1608_vm14, %v1259_v30, %v1640_v33  ;;  %v1671_v39 = vsel %vm1607_vm15, %v1220_v31, %v1639_v34  ;;  %v1264_v43 = vpop.f32.mrb[15].mxu1 }
 0x157   : > { %v2042_v42 = vpack.c.bf16 %v1671_v39, %v1670_v35  ;;  %v1673_v44 = vsel %vm1609_vm0, %v1261_v36, %v1641_v32 }
 0x158   : > { %v2043_v45 = vpack.c.bf16 %v1673_v44, %v1672_v38 }
 0x159   : > { %1824 = vst [vmem:[%s2508_s5 + $0x30] sm:$0xff] %v2042_v42 }
 0x15a   : > { %1825 = vst [vmem:[%s2508_s5 + $0x38] sm:$0xff] %v2043_v45 }
 0x15e   : > { %v1300_v46 = vpop.f32.mrb[16].mxu0  ;;  %v1341_v3 = vpop.f32.mrb[16].mxu1 }
 0x15f   : > { %vm1610_vm1 = vcmp.gt.f32.partialorder %v1300_v46, 0.0  ;;  %v1642_v47 = vmul.f32 0.2, %v1300_v46  ;;  %v1302_v48 = vpop.f32.mrb[17].mxu0  ;;  %vm1612_vm2 = vcmp.gt.f32.partialorder %v1341_v3, 0.0  ;;  %v1343_v52 = vpop.f32.mrb[17].mxu1 }
 0x160   : > { %v1644_v49 = vmul.f32 0.2, %v1341_v3  ;;  %vm1611_vm3 = vcmp.gt.f32.partialorder %v1302_v48, 0.0  ;;  %v1643_v50 = vmul.f32 0.2, %v1302_v48  ;;  %v1304_v53 = vpop.f32.mrb[18].mxu0 }
 0x161   : > { %v1674_v51 = vsel %vm1610_vm1, %v1300_v46, %v1642_v47  ;;  %vm1613_vm4 = vcmp.gt.f32.partialorder %v1343_v52, 0.0  ;;  %v1645_v56 = vmul.f32 0.2, %v1343_v52  ;;  %v1345_v57 = vpop.f32.mrb[18].mxu1  ;;  %v1305_v58 = vpop.f32.mrb[19].mxu0 }
 0x162   : > { %v1676_v54 = vsel %vm1612_vm2, %v1341_v3, %v1644_v49  ;;  %v1675_v55 = vsel %vm1611_vm3, %v1302_v48, %v1643_v50  ;;  %v1346_v60 = vpop.f32.mrb[19].mxu1 }
 0x163   : > { %v2044_v59 = vpack.c.bf16 %v1675_v55, %v1674_v51  ;;  %v1677_v61 = vsel %vm1613_vm4, %v1343_v52, %v1645_v56 }
 0x164   : > { %v2045_v62 = vpack.c.bf16 %v1677_v61, %v1676_v54 }
 0x165   : > { %1826 = vst [vmem:[%s2508_s5 + $0x40] sm:$0xff] %v2044_v59 }
 0x166   : > { %1827 = vst [vmem:[%s2508_s5 + $0x48] sm:$0xff] %v2045_v62 }
 0x16a   : > { %v1382_v63 = vpop.f32.mrb[20].mxu0  ;;  %v1423_v1 = vpop.f32.mrb[20].mxu1 }
 0x16b   : > { %vm1614_vm5 = vcmp.gt.f32.partialorder %v1382_v63, 0.0  ;;  %v1646_v0 = vmul.f32 0.2, %v1382_v63  ;;  %v1384_v2 = vpop.f32.mrb[21].mxu0  ;;  %vm1616_vm6 = vcmp.gt.f32.partialorder %v1423_v1, 0.0  ;;  %v1425_v7 = vpop.f32.mrb[21].mxu1 }
 0x16c   : > { %v1648_v4 = vmul.f32 0.2, %v1423_v1  ;;  %vm1615_vm7 = vcmp.gt.f32.partialorder %v1384_v2, 0.0  ;;  %v1647_v5 = vmul.f32 0.2, %v1384_v2  ;;  %v1386_v8 = vpop.f32.mrb[22].mxu0 }
 0x16d   : > { %v1678_v6 = vsel %vm1614_vm5, %v1382_v63, %v1646_v0  ;;  %vm1617_vm8 = vcmp.gt.f32.partialorder %v1425_v7, 0.0  ;;  %v1649_v11 = vmul.f32 0.2, %v1425_v7  ;;  %v1427_v12 = vpop.f32.mrb[22].mxu1  ;;  %v1387_v13 = vpop.f32.mrb[23].mxu0 }
 0x16e   : > { %v1680_v9 = vsel %vm1616_vm6, %v1423_v1, %v1648_v4  ;;  %v1679_v10 = vsel %vm1615_vm7, %v1384_v2, %v1647_v5  ;;  %v1428_v15 = vpop.f32.mrb[23].mxu1 }
 0x16f   : > { %v2046_v14 = vpack.c.bf16 %v1679_v10, %v1678_v6  ;;  %v1681_v16 = vsel %vm1617_vm8, %v1425_v7, %v1649_v11 }
 0x170   : > { %v2047_v17 = vpack.c.bf16 %v1681_v16, %v1680_v9 }
 0x171   : > { %1828 = vst [vmem:[%s2508_s5 + $0x50] sm:$0xff] %v2046_v14 }
 0x172   : > { %1829 = vst [vmem:[%s2508_s5 + $0x58] sm:$0xff] %v2047_v17 }
 0x176   : > { %v1464_v18 = vpop.f32.mrb[24].mxu0  ;;  %v1505_v20 = vpop.f32.mrb[24].mxu1 }
 0x177   : > { %vm1618_vm9 = vcmp.gt.f32.partialorder %v1464_v18, 0.0  ;;  %v1650_v19 = vmul.f32 0.2, %v1464_v18  ;;  %v1466_v21 = vpop.f32.mrb[25].mxu0  ;;  %vm1620_vm10 = vcmp.gt.f32.partialorder %v1505_v20, 0.0  ;;  %v1507_v25 = vpop.f32.mrb[25].mxu1 }
 0x178   : > { %v1652_v22 = vmul.f32 0.2, %v1505_v20  ;;  %vm1619_vm11 = vcmp.gt.f32.partialorder %v1466_v21, 0.0  ;;  %v1651_v23 = vmul.f32 0.2, %v1466_v21  ;;  %v1468_v26 = vpop.f32.mrb[26].mxu0 }
 0x179   : > { %v1682_v24 = vsel %vm1618_vm9, %v1464_v18, %v1650_v19  ;;  %vm1621_vm12 = vcmp.gt.f32.partialorder %v1507_v25, 0.0  ;;  %v1653_v29 = vmul.f32 0.2, %v1507_v25  ;;  %v1509_v30 = vpop.f32.mrb[26].mxu1  ;;  %v1469_v31 = vpop.f32.mrb[27].mxu0 }
 0x17a   : > { %v1684_v27 = vsel %vm1620_vm10, %v1505_v20, %v1652_v22  ;;  %v1683_v28 = vsel %vm1619_vm11, %v1466_v21, %v1651_v23  ;;  %v1510_v34 = vpop.f32.mrb[27].mxu1 }
 0x17b   : > { %v2048_v33 = vpack.c.bf16 %v1683_v28, %v1682_v24  ;;  %v1685_v35 = vsel %vm1621_vm12, %v1507_v25, %v1653_v29 }
 0x17c   : > { %v2049_v36 = vpack.c.bf16 %v1685_v35, %v1684_v27 }
 0x17d   : > { %1830 = vst [vmem:[%s2508_s5 + $0x60] sm:$0xff] %v2048_v33 }
 0x17e   : > { %1831 = vst [vmem:[%s2508_s5 + $0x68] sm:$0xff] %v2049_v36 }
 0x182   : > { %v1546_v37 = vpop.f32.mrb[28].mxu0  ;;  %v1587_v39 = vpop.f32.mrb[28].mxu1 }
 0x183   : > { %vm1622_vm13 = vcmp.gt.f32.partialorder %v1546_v37, 0.0  ;;  %v1654_v38 = vmul.f32 0.2, %v1546_v37  ;;  %v1548_v32 = vpop.f32.mrb[29].mxu0  ;;  %vm1624_vm14 = vcmp.gt.f32.partialorder %v1587_v39, 0.0  ;;  %v1589_v43 = vpop.f32.mrb[29].mxu1 }
 0x184   : > { %v1656_v40 = vmul.f32 0.2, %v1587_v39  ;;  %vm1623_vm15 = vcmp.gt.f32.partialorder %v1548_v32, 0.0  ;;  %v1655_v41 = vmul.f32 0.2, %v1548_v32  ;;  %v1550_v44 = vpop.f32.mrb[30].mxu0 }
 0x185   : > { %v1686_v42 = vsel %vm1622_vm13, %v1546_v37, %v1654_v38  ;;  %vm1625_vm0 = vcmp.gt.f32.partialorder %v1589_v43, 0.0  ;;  %v1657_v47 = vmul.f32 0.2, %v1589_v43  ;;  %v1591_v3 = vpop.f32.mrb[30].mxu1  ;;  %v1551_v48 = vpop.f32.mrb[31].mxu0 }
 0x186   : > { %v1688_v45 = vsel %vm1624_vm14, %v1587_v39, %v1656_v40  ;;  %v1687_v46 = vsel %vm1623_vm15, %v1548_v32, %v1655_v41  ;;  %v1592_v50 = vpop.f32.mrb[31].mxu1 }
 0x187   : > { %v2050_v49 = vpack.c.bf16 %v1687_v46, %v1686_v42  ;;  %v1689_v51 = vsel %vm1625_vm0, %v1589_v43, %v1657_v47 }
 0x188   : > { %v2051_v52 = vpack.c.bf16 %v1689_v51, %v1688_v45 }
 0x189   : > { %1832 = vst [vmem:[%s2508_s5 + $0x70] sm:$0xff] %v2050_v49 }
 0x18a   : > { %1833 = vst [vmem:[%s2508_s5 + $0x78] sm:$0xff] %v2051_v52 }
 0x18b PF: > { %p9_p9 = scmp.ge.s32.totalorder %s2136_s13, 4   ;;  %s2539_s9 = smov %s2097_s10 }
 0x18c   : > { %s2540_s10 = smov %s2145_s16  ;;  %s2541_s11 = smov %s2136_s13 }
 0x18d   :  { %11 = sbr.rel (!%p9_p9) target bundleno = 2 (0x2), region = 86 }

// kernel: discriminator_forward.6
= control target key start
LH: loop header
LB: loop body
LE: loop exit
PB: predicated region body
PF: predicated region fallthrough
CT: control target
= control target key end

     0   :  { %v1785_v3 = vmov 0   ;;  %s2644_s1 = inlined_call_operand.vmem [shape: bf16[128,2048], index: 1, kind: input, shape index: {}]   ;;  %s2645_s0 = inlined_call_operand.vmem [shape: bf16[16,128], index: 0, kind: input, shape index: {}]   ;;  %s2646_s2 = inlined_call_operand.vmem [shape: f32[16,1], index: 2, kind: input, shape index: {}]   ;;  %s2647_s3 = inlined_call_operand.vmem [shape: f32[16,1], index: 3, kind: input, shape index: {}]   ;;  %s2648_s4 = inlined_call_operand.vmem [shape: bf16[16,2048], index: 4, kind: output, shape index: {}]  }
   0x1   :  { %v20_v0 = vld [vmem:[%s2644_s1] sm:$0xff]  ;;  %v21_v2 = vld [vmem:[%s2644_s1 + $0x8] sm:$0xff]  ;;  %826 = vmatprep.mubr.bf16.mxu0 %v1785_v3  ;;  %869 = vmatprep.mubr.bf16.mxu1 %v1785_v3  ;;  %v22_v63 = vld [vmem:[%s2644_s1 + $0x10] sm:$0xff] }
   0x2   :  { %v28_v1 = vld [vmem:[%s2644_s1 + $0x40] sm:$0xff]  ;;  %v29_v6 = vld [vmem:[%s2644_s1 + $0x48] sm:$0xff]  ;;  %1779 = vset.pattern.permute.xlu1 %v1785_v3  ;;  %1778 = vset.pattern.permute.xlu0 %v1785_v3 }
   0x3   :  { %v1618_v4 = vcombine.high %v20_v0, %v28_v1  ;;  %v1617_v5 = vcombine.low %v20_v0, %v28_v1  ;;  %v36_v7 = vld [vmem:[%s2644_s1 + $0x80] sm:$0xff]  ;;  %v1620_v9 = vcombine.high %v21_v2, %v29_v6  ;;  %v1619_v10 = vcombine.low %v21_v2, %v29_v6  ;;  %v37_v12 = vld [vmem:[%s2644_s1 + $0x88] sm:$0xff]  ;;  %v30_v0 = vld [vmem:[%s2644_s1 + $0x50] sm:$0xff] }
   0x4   :  { %v44_v8 = vld [vmem:[%s2644_s1 + $0xc0] sm:$0xff]  ;;  %v45_v13 = vld [vmem:[%s2644_s1 + $0xc8] sm:$0xff]  ;;  %v23_v1 = vld [vmem:[%s2644_s1 + $0x18] sm:$0xff]  ;;  %v1622_v6 = vcombine.high %v22_v63, %v30_v0 }
   0x5   :  { %v1634_v11 = vcombine.high %v36_v7, %v44_v8  ;;  %v52_v14 = vld [vmem:[%s2644_s1 + $0x100] sm:$0xff]  ;;  %794 = vmatprep.subr.bf16.mxu0 %v1618_v4  ;;  %v1636_v15 = vcombine.high %v37_v12, %v45_v13  ;;  %v53_v17 = vld [vmem:[%s2644_s1 + $0x108] sm:$0xff]  ;;  %837 = vmatprep.subr.bf16.mxu1 %v1620_v9  ;;  %v1633_v19 = vcombine.low %v36_v7, %v44_v8  ;;  %v31_v2 = vld [vmem:[%s2644_s1 + $0x58] sm:$0xff] }
   0x6   :  { %v60_v16 = vld [vmem:[%s2644_s1 + $0x140] sm:$0xff]  ;;  %v61_v18 = vld [vmem:[%s2644_s1 + $0x148] sm:$0xff]  ;;  %795 = vmatpush1.bf16.msra.mxu0 %v1617_v5  ;;  %838 = vmatpush1.bf16.msra.mxu1 %v1619_v10  ;;  %v1635_v20 = vcombine.low %v37_v12, %v45_v13  ;;  %v1624_v7 = vcombine.high %v23_v1, %v31_v2  ;;  %v38_v8 = vld [vmem:[%s2644_s1 + $0x90] sm:$0xff]  ;;  %v1621_v13 = vcombine.low %v22_v63, %v30_v0 }
   0x7   :  { %796 = vmatprep.subr.bf16.mxu0 %v1634_v11  ;;  %v1650_v21 = vcombine.high %v52_v14, %v60_v16  ;;  %839 = vmatprep.subr.bf16.mxu1 %v1636_v15  ;;  %v1652_v22 = vcombine.high %v53_v17, %v61_v18  ;;  %v68_v23 = vld [vmem:[%s2644_s1 + $0x180] sm:$0xff]  ;;  %v69_v25 = vld [vmem:[%s2644_s1 + $0x188] sm:$0xff]  ;;  %v1649_v27 = vcombine.low %v52_v14, %v60_v16  ;;  %v46_v9 = vld [vmem:[%s2644_s1 + $0xd0] sm:$0xff] }
   0x8   :  { %v76_v24 = vld [vmem:[%s2644_s1 + $0x1c0] sm:$0xff]  ;;  %v77_v26 = vld [vmem:[%s2644_s1 + $0x1c8] sm:$0xff]  ;;  %v1651_v28 = vcombine.low %v53_v17, %v61_v18  ;;  %v39_v11 = vld [vmem:[%s2644_s1 + $0x98] sm:$0xff]  ;;  %v1623_v14 = vcombine.low %v23_v1, %v31_v2  ;;  %v1638_v15 = vcombine.high %v38_v8, %v46_v9 }
   0x9   :  { %v1666_v29 = vcombine.high %v68_v23, %v76_v24  ;;  %v1668_v30 = vcombine.high %v69_v25, %v77_v26  ;;  %v84_v31 = vld [vmem:[%s2644_s1 + $0x200] sm:$0xff]  ;;  %v85_v33 = vld [vmem:[%s2644_s1 + $0x208] sm:$0xff]  ;;  %v1665_v35 = vcombine.low %v68_v23, %v76_v24  ;;  %v1667_v36 = vcombine.low %v69_v25, %v77_v26  ;;  %v47_v12 = vld [vmem:[%s2644_s1 + $0xd8] sm:$0xff] }
   0xa   :  { %797 = vmatpush1.bf16.msra.mxu0 %v1633_v19  ;;  %840 = vmatpush1.bf16.msra.mxu1 %v1635_v20  ;;  %v92_v32 = vld [vmem:[%s2644_s1 + $0x240] sm:$0xff]  ;;  %v93_v34 = vld [vmem:[%s2644_s1 + $0x248] sm:$0xff]  ;;  %v1640_v16 = vcombine.high %v39_v11, %v47_v12  ;;  %v54_v17 = vld [vmem:[%s2644_s1 + $0x110] sm:$0xff] }
   0xb   :  { %798 = vmatprep.subr.bf16.mxu0 %v1650_v21  ;;  %841 = vmatprep.subr.bf16.mxu1 %v1652_v22  ;;  %v1682_v37 = vcombine.high %v84_v31, %v92_v32  ;;  %v1684_v38 = vcombine.high %v85_v33, %v93_v34  ;;  %v100_v39 = vld [vmem:[%s2644_s1 + $0x280] sm:$0xff]  ;;  %v101_v41 = vld [vmem:[%s2644_s1 + $0x288] sm:$0xff]  ;;  %v1681_v43 = vcombine.low %v84_v31, %v92_v32  ;;  %v62_v18 = vld [vmem:[%s2644_s1 + $0x150] sm:$0xff] }
   0xc   :  { %v108_v40 = vld [vmem:[%s2644_s1 + $0x2c0] sm:$0xff]  ;;  %v109_v42 = vld [vmem:[%s2644_s1 + $0x2c8] sm:$0xff]  ;;  %v1683_v44 = vcombine.low %v85_v33, %v93_v34  ;;  %v55_v19 = vld [vmem:[%s2644_s1 + $0x118] sm:$0xff]  ;;  %v1637_v21 = vcombine.low %v38_v8, %v46_v9  ;;  %v1639_v22 = vcombine.low %v39_v11, %v47_v12  ;;  %v1654_v23 = vcombine.high %v54_v17, %v62_v18 }
   0xd   :  { %v1698_v45 = vcombine.high %v100_v39, %v108_v40  ;;  %v1700_v46 = vcombine.high %v101_v41, %v109_v42  ;;  %v116_v47 = vld [vmem:[%s2644_s1 + $0x300] sm:$0xff]  ;;  %v117_v49 = vld [vmem:[%s2644_s1 + $0x308] sm:$0xff]  ;;  %v1697_v51 = vcombine.low %v100_v39, %v108_v40  ;;  %v1699_v52 = vcombine.low %v101_v41, %v109_v42  ;;  %v63_v20 = vld [vmem:[%s2644_s1 + $0x158] sm:$0xff] }
   0xe   :  { %799 = vmatpush1.bf16.msra.mxu0 %v1649_v27  ;;  %842 = vmatpush1.bf16.msra.mxu1 %v1651_v28  ;;  %v124_v48 = vld [vmem:[%s2644_s1 + $0x340] sm:$0xff]  ;;  %v125_v50 = vld [vmem:[%s2644_s1 + $0x348] sm:$0xff]  ;;  %v1656_v24 = vcombine.high %v55_v19, %v63_v20  ;;  %v70_v25 = vld [vmem:[%s2644_s1 + $0x190] sm:$0xff] }
   0xf   :  { %800 = vmatprep.subr.bf16.mxu0 %v1666_v29  ;;  %843 = vmatprep.subr.bf16.mxu1 %v1668_v30  ;;  %v1714_v53 = vcombine.high %v116_v47, %v124_v48  ;;  %v1716_v54 = vcombine.high %v117_v49, %v125_v50  ;;  %v132_v55 = vld [vmem:[%s2644_s1 + $0x380] sm:$0xff]  ;;  %v133_v57 = vld [vmem:[%s2644_s1 + $0x388] sm:$0xff]  ;;  %v1713_v59 = vcombine.low %v116_v47, %v124_v48  ;;  %v78_v26 = vld [vmem:[%s2644_s1 + $0x1d0] sm:$0xff] }
  0x10   :  { %v140_v56 = vld [vmem:[%s2644_s1 + $0x3c0] sm:$0xff]  ;;  %v141_v58 = vld [vmem:[%s2644_s1 + $0x3c8] sm:$0xff]  ;;  %v1715_v60 = vcombine.low %v117_v49, %v125_v50  ;;  %v71_v27 = vld [vmem:[%s2644_s1 + $0x198] sm:$0xff]  ;;  %v1653_v29 = vcombine.low %v54_v17, %v62_v18  ;;  %v1655_v30 = vcombine.low %v55_v19, %v63_v20  ;;  %v1670_v31 = vcombine.high %v70_v25, %v78_v26 }
  0x11   :  { %v1730_v61 = vcombine.high %v132_v55, %v140_v56  ;;  %v1732_v62 = vcombine.high %v133_v57, %v141_v58  ;;  %v1729_v4 = vcombine.low %v132_v55, %v140_v56  ;;  %v1731_v5 = vcombine.low %v133_v57, %v141_v58  ;;  %v1932_v10 = vld [vmem:[%s2645_s0] sm:$0xff]   ;;  %v79_v28 = vld [vmem:[%s2644_s1 + $0x1d8] sm:$0xff]  ;;  %v86_v33 = vld [vmem:[%s2644_s1 + $0x210] sm:$0xff] }
  0x12   :  { %801 = vmatpush1.bf16.msra.mxu0 %v1665_v35  ;;  %844 = vmatpush1.bf16.msra.mxu1 %v1667_v36  ;;  %v1672_v32 = vcombine.high %v71_v27, %v79_v28  ;;  %v94_v34 = vld [vmem:[%s2644_s1 + $0x250] sm:$0xff]  ;;  %v87_v35 = vld [vmem:[%s2644_s1 + $0x218] sm:$0xff]  ;;  %v24_v1 = vld [vmem:[%s2644_s1 + $0x20] sm:$0xff] }
  0x13   :  { %802 = vmatprep.subr.bf16.mxu0 %v1682_v37  ;;  %845 = vmatprep.subr.bf16.mxu1 %v1684_v38  ;;  %v95_v36 = vld [vmem:[%s2644_s1 + $0x258] sm:$0xff]  ;;  %v1669_v37 = vcombine.low %v70_v25, %v78_v26  ;;  %v1671_v38 = vcombine.low %v71_v27, %v79_v28  ;;  %v1686_v39 = vcombine.high %v86_v33, %v94_v34  ;;  %v102_v41 = vld [vmem:[%s2644_s1 + $0x290] sm:$0xff]  ;;  %v32_v2 = vld [vmem:[%s2644_s1 + $0x60] sm:$0xff] }
  0x14   :  { %v1688_v40 = vcombine.high %v87_v35, %v95_v36  ;;  %v110_v42 = vld [vmem:[%s2644_s1 + $0x2d0] sm:$0xff]  ;;  %v1626_v8 = vcombine.high %v24_v1, %v32_v2  ;;  %v40_v11 = vld [vmem:[%s2644_s1 + $0xa0] sm:$0xff] }
  0x15   :  { %v1702_v47 = vcombine.high %v102_v41, %v110_v42  ;;  %v118_v49 = vld [vmem:[%s2644_s1 + $0x310] sm:$0xff]  ;;  %v48_v12 = vld [vmem:[%s2644_s1 + $0xe0] sm:$0xff] }
  0x16   :  { %803 = vmatpush1.bf16.msra.mxu0 %v1681_v43  ;;  %846 = vmatpush1.bf16.msra.mxu1 %v1683_v44  ;;  %v103_v43 = vld [vmem:[%s2644_s1 + $0x298] sm:$0xff]  ;;  %v126_v50 = vld [vmem:[%s2644_s1 + $0x350] sm:$0xff]  ;;  %v1642_v17 = vcombine.high %v40_v11, %v48_v12  ;;  %v56_v19 = vld [vmem:[%s2644_s1 + $0x120] sm:$0xff] }
  0x17   :  { %804 = vmatprep.subr.bf16.mxu0 %v1698_v45  ;;  %847 = vmatprep.subr.bf16.mxu1 %v1700_v46  ;;  %v111_v44 = vld [vmem:[%s2644_s1 + $0x2d8] sm:$0xff]  ;;  %v1685_v45 = vcombine.low %v86_v33, %v94_v34  ;;  %v1687_v46 = vcombine.low %v87_v35, %v95_v36  ;;  %v1718_v55 = vcombine.high %v118_v49, %v126_v50  ;;  %v134_v57 = vld [vmem:[%s2644_s1 + $0x390] sm:$0xff]  ;;  %v64_v20 = vld [vmem:[%s2644_s1 + $0x160] sm:$0xff] }
  0x18   :  { %v1704_v48 = vcombine.high %v103_v43, %v111_v44  ;;  %v142_v58 = vld [vmem:[%s2644_s1 + $0x3d0] sm:$0xff]  ;;  %v1658_v25 = vcombine.high %v56_v19, %v64_v20  ;;  %v72_v27 = vld [vmem:[%s2644_s1 + $0x1a0] sm:$0xff] }
  0x19   :  { %v1734_v63 = vcombine.high %v134_v57, %v142_v58  ;;  %v80_v28 = vld [vmem:[%s2644_s1 + $0x1e0] sm:$0xff] }
  0x1a   :  { %805 = vmatpush1.bf16.msra.mxu0 %v1697_v51  ;;  %848 = vmatpush1.bf16.msra.mxu1 %v1699_v52  ;;  %v119_v51 = vld [vmem:[%s2644_s1 + $0x318] sm:$0xff]  ;;  %v1674_v33 = vcombine.high %v72_v27, %v80_v28  ;;  %v88_v35 = vld [vmem:[%s2644_s1 + $0x220] sm:$0xff] }
  0x1b   :  { %806 = vmatprep.subr.bf16.mxu0 %v1714_v53  ;;  %849 = vmatprep.subr.bf16.mxu1 %v1716_v54  ;;  %v127_v52 = vld [vmem:[%s2644_s1 + $0x358] sm:$0xff]  ;;  %v1701_v53 = vcombine.low %v102_v41, %v110_v42  ;;  %v1703_v54 = vcombine.low %v103_v43, %v111_v44  ;;  %v96_v36 = vld [vmem:[%s2644_s1 + $0x260] sm:$0xff] }
  0x1c   :  { %v1720_v56 = vcombine.high %v119_v51, %v127_v52  ;;  %v1690_v41 = vcombine.high %v88_v35, %v96_v36  ;;  %v104_v43 = vld [vmem:[%s2644_s1 + $0x2a0] sm:$0xff] }
  0x1d   :  { %v112_v44 = vld [vmem:[%s2644_s1 + $0x2e0] sm:$0xff] }
  0x1e   :  { %807 = vmatpush1.bf16.msra.mxu0 %v1713_v59  ;;  %850 = vmatpush1.bf16.msra.mxu1 %v1715_v60  ;;  %v135_v59 = vld [vmem:[%s2644_s1 + $0x398] sm:$0xff] }
  0x1f   :  { %808 = vmatprep.subr.bf16.mxu0 %v1730_v61  ;;  %851 = vmatprep.subr.bf16.mxu1 %v1732_v62  ;;  %v143_v60 = vld [vmem:[%s2644_s1 + $0x3d8] sm:$0xff]  ;;  %v1717_v61 = vcombine.low %v118_v49, %v126_v50  ;;  %v1719_v62 = vcombine.low %v119_v51, %v127_v52  ;;  %v1706_v49 = vcombine.high %v104_v43, %v112_v44  ;;  %v120_v51 = vld [vmem:[%s2644_s1 + $0x320] sm:$0xff] }
  0x20   :  { %v1736_v0 = vcombine.high %v135_v59, %v143_v60  ;;  %v128_v52 = vld [vmem:[%s2644_s1 + $0x360] sm:$0xff] }
  0x22   :  { %809 = vmatpush1.bf16.msra.mxu0 %v1729_v4  ;;  %852 = vmatpush1.bf16.msra.mxu1 %v1731_v5  ;;  %v25_v4 = vld [vmem:[%s2644_s1 + $0x28] sm:$0xff] }
  0x23   :  { %880 = vmatprep.subr.bf16.mxu0 %v1622_v6  ;;  %923 = vmatprep.subr.bf16.mxu1 %v1624_v7  ;;  %v33_v5 = vld [vmem:[%s2644_s1 + $0x68] sm:$0xff]  ;;  %v1733_v6 = vcombine.low %v134_v57, %v142_v58  ;;  %v1735_v7 = vcombine.low %v135_v59, %v143_v60  ;;  %v1722_v57 = vcombine.high %v120_v51, %v128_v52  ;;  %v136_v59 = vld [vmem:[%s2644_s1 + $0x3a0] sm:$0xff] }
  0x24   :  { %v1628_v9 = vcombine.high %v25_v4, %v33_v5  ;;  %v144_v60 = vld [vmem:[%s2644_s1 + $0x3e0] sm:$0xff] }
  0x25   :  { %827 = vmatmul.mubr.bf16.vlgmr.msra.gmra.mrb[0].mxu0 %v1932_v10  ;;  %870 = vmatmul.mubr.bf16.vlgmr.msra.gmra.mrb[0].mxu1 %v1932_v10 }
  0x26   :  { %881 = vmatpush1.bf16.msra.mxu0 %v1621_v13  ;;  %924 = vmatpush1.bf16.msra.mxu1 %v1623_v14  ;;  %v41_v13 = vld [vmem:[%s2644_s1 + $0xa8] sm:$0xff] }
  0x27   :  { %882 = vmatprep.subr.bf16.mxu0 %v1638_v15  ;;  %925 = vmatprep.subr.bf16.mxu1 %v1640_v16  ;;  %v49_v14 = vld [vmem:[%s2644_s1 + $0xe8] sm:$0xff]  ;;  %v1625_v15 = vcombine.low %v24_v1, %v32_v2  ;;  %v1627_v16 = vcombine.low %v25_v4, %v33_v5  ;;  %v1738_v1 = vcombine.high %v136_v59, %v144_v60  ;;  %v26_v4 = vld [vmem:[%s2644_s1 + $0x30] sm:$0xff] }
  0x28   :  { %912 = vmatprep.mubr.bf16.mxu0 %v1785_v3  ;;  %955 = vmatprep.mubr.bf16.mxu1 %v1785_v3  ;;  %v1644_v18 = vcombine.high %v41_v13, %v49_v14  ;;  %v34_v5 = vld [vmem:[%s2644_s1 + $0x70] sm:$0xff] }
  0x2a   :  { %883 = vmatpush1.bf16.msra.mxu0 %v1637_v21  ;;  %926 = vmatpush1.bf16.msra.mxu1 %v1639_v22  ;;  %v57_v21 = vld [vmem:[%s2644_s1 + $0x128] sm:$0xff] }
  0x2b   :  { %884 = vmatprep.subr.bf16.mxu0 %v1654_v23  ;;  %927 = vmatprep.subr.bf16.mxu1 %v1656_v24  ;;  %v65_v22 = vld [vmem:[%s2644_s1 + $0x168] sm:$0xff]  ;;  %v1641_v23 = vcombine.low %v40_v11, %v48_v12  ;;  %v1643_v24 = vcombine.low %v41_v13, %v49_v14  ;;  %v1630_v11 = vcombine.high %v26_v4, %v34_v5  ;;  %v42_v13 = vld [vmem:[%s2644_s1 + $0xb0] sm:$0xff] }
  0x2c   :  { %v1660_v26 = vcombine.high %v57_v21, %v65_v22  ;;  %v50_v14 = vld [vmem:[%s2644_s1 + $0xf0] sm:$0xff] }
  0x2e   :  { %885 = vmatpush1.bf16.msra.mxu0 %v1653_v29  ;;  %928 = vmatpush1.bf16.msra.mxu1 %v1655_v30  ;;  %v73_v29 = vld [vmem:[%s2644_s1 + $0x1a8] sm:$0xff] }
  0x2f   :  { %886 = vmatprep.subr.bf16.mxu0 %v1670_v31  ;;  %929 = vmatprep.subr.bf16.mxu1 %v1672_v32  ;;  %v81_v30 = vld [vmem:[%s2644_s1 + $0x1e8] sm:$0xff]  ;;  %v1657_v31 = vcombine.low %v56_v19, %v64_v20  ;;  %v1659_v32 = vcombine.low %v57_v21, %v65_v22  ;;  %v1646_v19 = vcombine.high %v42_v13, %v50_v14  ;;  %v58_v21 = vld [vmem:[%s2644_s1 + $0x130] sm:$0xff] }
  0x30   :  { %v1676_v34 = vcombine.high %v73_v29, %v81_v30  ;;  %v66_v22 = vld [vmem:[%s2644_s1 + $0x170] sm:$0xff] }
  0x32   :  { %887 = vmatpush1.bf16.msra.mxu0 %v1669_v37  ;;  %930 = vmatpush1.bf16.msra.mxu1 %v1671_v38  ;;  %v89_v37 = vld [vmem:[%s2644_s1 + $0x228] sm:$0xff] }
  0x33   :  { %888 = vmatprep.subr.bf16.mxu0 %v1686_v39  ;;  %931 = vmatprep.subr.bf16.mxu1 %v1688_v40  ;;  %v97_v38 = vld [vmem:[%s2644_s1 + $0x268] sm:$0xff]  ;;  %v1673_v39 = vcombine.low %v72_v27, %v80_v28  ;;  %v1675_v40 = vcombine.low %v73_v29, %v81_v30  ;;  %v1662_v27 = vcombine.high %v58_v21, %v66_v22  ;;  %v74_v29 = vld [vmem:[%s2644_s1 + $0x1b0] sm:$0xff] }
  0x34   :  { %v1692_v42 = vcombine.high %v89_v37, %v97_v38  ;;  %v82_v30 = vld [vmem:[%s2644_s1 + $0x1f0] sm:$0xff] }
  0x36   :  { %889 = vmatpush1.bf16.msra.mxu0 %v1685_v45  ;;  %932 = vmatpush1.bf16.msra.mxu1 %v1687_v46  ;;  %v105_v45 = vld [vmem:[%s2644_s1 + $0x2a8] sm:$0xff] }
  0x37   :  { %890 = vmatprep.subr.bf16.mxu0 %v1702_v47  ;;  %933 = vmatprep.subr.bf16.mxu1 %v1704_v48  ;;  %v113_v46 = vld [vmem:[%s2644_s1 + $0x2e8] sm:$0xff]  ;;  %v1689_v47 = vcombine.low %v88_v35, %v96_v36  ;;  %v1691_v48 = vcombine.low %v89_v37, %v97_v38  ;;  %v1678_v35 = vcombine.high %v74_v29, %v82_v30  ;;  %v90_v37 = vld [vmem:[%s2644_s1 + $0x230] sm:$0xff] }
  0x38   :  { %v1708_v50 = vcombine.high %v105_v45, %v113_v46  ;;  %v98_v38 = vld [vmem:[%s2644_s1 + $0x270] sm:$0xff] }
  0x3a   :  { %891 = vmatpush1.bf16.msra.mxu0 %v1701_v53  ;;  %934 = vmatpush1.bf16.msra.mxu1 %v1703_v54  ;;  %v121_v53 = vld [vmem:[%s2644_s1 + $0x328] sm:$0xff] }
  0x3b   :  { %892 = vmatprep.subr.bf16.mxu0 %v1718_v55  ;;  %935 = vmatprep.subr.bf16.mxu1 %v1720_v56  ;;  %v129_v54 = vld [vmem:[%s2644_s1 + $0x368] sm:$0xff]  ;;  %v1705_v55 = vcombine.low %v104_v43, %v112_v44  ;;  %v1707_v56 = vcombine.low %v105_v45, %v113_v46  ;;  %v106_v44 = vld [vmem:[%s2644_s1 + $0x2b0] sm:$0xff]  ;;  %v107_v46 = vld [vmem:[%s2644_s1 + $0x2b8] sm:$0xff] }
  0x3c   :  { %v1724_v58 = vcombine.high %v121_v53, %v129_v54  ;;  %v114_v45 = vld [vmem:[%s2644_s1 + $0x2f0] sm:$0xff] }
  0x3e   :  { %893 = vmatpush1.bf16.msra.mxu0 %v1717_v61  ;;  %936 = vmatpush1.bf16.msra.mxu1 %v1719_v62  ;;  %v137_v61 = vld [vmem:[%s2644_s1 + $0x3a8] sm:$0xff] }
  0x3f   :  { %894 = vmatprep.subr.bf16.mxu0 %v1734_v63  ;;  %937 = vmatprep.subr.bf16.mxu1 %v1736_v0  ;;  %v145_v62 = vld [vmem:[%s2644_s1 + $0x3e8] sm:$0xff]  ;;  %v1721_v63 = vcombine.low %v120_v51, %v128_v52  ;;  %v1723_v0 = vcombine.low %v121_v53, %v129_v54  ;;  %v122_v52 = vld [vmem:[%s2644_s1 + $0x330] sm:$0xff]  ;;  %v123_v54 = vld [vmem:[%s2644_s1 + $0x338] sm:$0xff] }
  0x40   :  { %v1740_v2 = vcombine.high %v137_v61, %v145_v62  ;;  %v130_v53 = vld [vmem:[%s2644_s1 + $0x370] sm:$0xff] }
  0x42   :  { %895 = vmatpush1.bf16.msra.mxu0 %v1733_v6  ;;  %938 = vmatpush1.bf16.msra.mxu1 %v1735_v7  ;;  %v27_v6 = vld [vmem:[%s2644_s1 + $0x38] sm:$0xff] }
  0x43   :  { %966 = vmatprep.subr.bf16.mxu0 %v1626_v8  ;;  %1009 = vmatprep.subr.bf16.mxu1 %v1628_v9  ;;  %v35_v7 = vld [vmem:[%s2644_s1 + $0x78] sm:$0xff]  ;;  %v1737_v8 = vcombine.low %v136_v59, %v144_v60  ;;  %v1739_v9 = vcombine.low %v137_v61, %v145_v62  ;;  %v138_v60 = vld [vmem:[%s2644_s1 + $0x3b0] sm:$0xff] }
  0x44   :  { %v1632_v12 = vcombine.high %v27_v6, %v35_v7  ;;  %v146_v61 = vld [vmem:[%s2644_s1 + $0x3f0] sm:$0xff]  ;;  %v139_v62 = vld [vmem:[%s2644_s1 + $0x3b8] sm:$0xff] }
  0x45   :  { %913 = vmatmul.mubr.bf16.vlgmr.msra.gmra.mrb[4].mxu0 %v1932_v10  ;;  %956 = vmatmul.mubr.bf16.vlgmr.msra.gmra.mrb[4].mxu1 %v1932_v10 }
  0x46   :  { %967 = vmatpush1.bf16.msra.mxu0 %v1625_v15  ;;  %1010 = vmatpush1.bf16.msra.mxu1 %v1627_v16  ;;  %v43_v15 = vld [vmem:[%s2644_s1 + $0xb8] sm:$0xff] }
  0x47   :  { %968 = vmatprep.subr.bf16.mxu0 %v1642_v17  ;;  %1011 = vmatprep.subr.bf16.mxu1 %v1644_v18  ;;  %v51_v16 = vld [vmem:[%s2644_s1 + $0xf8] sm:$0xff]  ;;  %v1629_v17 = vcombine.low %v26_v4, %v34_v5  ;;  %v1631_v18 = vcombine.low %v27_v6, %v35_v7  ;;  %v1741_v5 = vcombine.low %v138_v60, %v146_v61  ;;  %v1317_v7 = vld [vmem:[%s2646_s2 + $0x8] sm:$0xff] }
  0x48   :  { %998 = vmatprep.mubr.bf16.mxu0 %v1785_v3  ;;  %1041 = vmatprep.mubr.bf16.mxu1 %v1785_v3  ;;  %v1648_v20 = vcombine.high %v43_v15, %v51_v16 }
  0x49   :  { %1325 = vperm.xlu1 %1779, %v1317_v7  }
  0x4a   :  { %969 = vmatpush1.bf16.msra.mxu0 %v1641_v23  ;;  %1012 = vmatpush1.bf16.msra.mxu1 %v1643_v24  ;;  %v59_v23 = vld [vmem:[%s2644_s1 + $0x138] sm:$0xff] }
  0x4b   :  { %970 = vmatprep.subr.bf16.mxu0 %v1658_v25  ;;  %1013 = vmatprep.subr.bf16.mxu1 %v1660_v26  ;;  %v67_v24 = vld [vmem:[%s2644_s1 + $0x178] sm:$0xff]  ;;  %v1645_v25 = vcombine.low %v42_v13, %v50_v14  ;;  %v1647_v26 = vcombine.low %v43_v15, %v51_v16 }
  0x4c   :  { %v1664_v28 = vcombine.high %v59_v23, %v67_v24 }
  0x4e   :  { %971 = vmatpush1.bf16.msra.mxu0 %v1657_v31  ;;  %1014 = vmatpush1.bf16.msra.mxu1 %v1659_v32  ;;  %v75_v31 = vld [vmem:[%s2644_s1 + $0x1b8] sm:$0xff] }
  0x4f   :  { %972 = vmatprep.subr.bf16.mxu0 %v1674_v33  ;;  %1015 = vmatprep.subr.bf16.mxu1 %v1676_v34  ;;  %v83_v32 = vld [vmem:[%s2644_s1 + $0x1f8] sm:$0xff]  ;;  %v1661_v33 = vcombine.low %v58_v21, %v66_v22  ;;  %v1663_v34 = vcombine.low %v59_v23, %v67_v24 }
  0x50   :  { %v1680_v36 = vcombine.high %v75_v31, %v83_v32 }
  0x52   :  { %973 = vmatpush1.bf16.msra.mxu0 %v1673_v39  ;;  %1016 = vmatpush1.bf16.msra.mxu1 %v1675_v40  ;;  %v99_v39 = vld [vmem:[%s2644_s1 + $0x278] sm:$0xff]  ;;  %v1677_v40 = vcombine.low %v74_v29, %v82_v30 }
  0x53   :  { %974 = vmatprep.subr.bf16.mxu0 %v1690_v41  ;;  %1017 = vmatprep.subr.bf16.mxu1 %v1692_v42  ;;  %v1679_v41 = vcombine.low %v75_v31, %v83_v32  ;;  %v1694_v42 = vcombine.high %v90_v37, %v98_v38 }
  0x56   :  { %975 = vmatpush1.bf16.msra.mxu0 %v1689_v47  ;;  %1018 = vmatpush1.bf16.msra.mxu1 %v1691_v48  ;;  %v115_v47 = vld [vmem:[%s2644_s1 + $0x2f8] sm:$0xff]  ;;  %v1693_v48 = vcombine.low %v90_v37, %v98_v38 }
  0x57   :  { %976 = vmatprep.subr.bf16.mxu0 %v1706_v49  ;;  %1019 = vmatprep.subr.bf16.mxu1 %v1708_v50  ;;  %v1710_v50 = vcombine.high %v106_v44, %v114_v45  ;;  %v1712_v51 = vcombine.high %v107_v46, %v115_v47 }
  0x5a   :  { %977 = vmatpush1.bf16.msra.mxu0 %v1705_v55  ;;  %1020 = vmatpush1.bf16.msra.mxu1 %v1707_v56  ;;  %v131_v55 = vld [vmem:[%s2644_s1 + $0x378] sm:$0xff]  ;;  %v1709_v56 = vcombine.low %v106_v44, %v114_v45 }
  0x5b   :  { %978 = vmatprep.subr.bf16.mxu0 %v1722_v57  ;;  %1021 = vmatprep.subr.bf16.mxu1 %v1724_v58  ;;  %v1711_v57 = vcombine.low %v107_v46, %v115_v47  ;;  %v1726_v58 = vcombine.high %v122_v52, %v130_v53  ;;  %v1728_v59 = vcombine.high %v123_v54, %v131_v55 }
  0x5e   :  { %979 = vmatpush1.bf16.msra.mxu0 %v1721_v63  ;;  %1022 = vmatpush1.bf16.msra.mxu1 %v1723_v0  ;;  %v147_v63 = vld [vmem:[%s2644_s1 + $0x3f8] sm:$0xff]  ;;  %v1725_v0 = vcombine.low %v122_v52, %v130_v53 }
  0x5f   :  { %980 = vmatprep.subr.bf16.mxu0 %v1738_v1  ;;  %1023 = vmatprep.subr.bf16.mxu1 %v1740_v2  ;;  %v1727_v1 = vcombine.low %v123_v54, %v131_v55  ;;  %v1742_v2 = vcombine.high %v138_v60, %v146_v61  ;;  %v1744_v4 = vcombine.high %v139_v62, %v147_v63 }
  0x60   :  { %v1743_v6 = vcombine.low %v139_v62, %v147_v63 }
  0x62   :  { %981 = vmatpush1.bf16.msra.mxu0 %v1737_v8  ;;  %1024 = vmatpush1.bf16.msra.mxu1 %v1739_v9  ;;  %v1360_v8 = vld [vmem:[%s2647_s3] sm:$0xff] }
  0x63   :  { %1052 = vmatprep.subr.bf16.mxu0 %v1630_v11  ;;  %1095 = vmatprep.subr.bf16.mxu1 %v1632_v12 }
  0x64   :  { %1364 = vperm.xlu1 %1779, %v1360_v8  }
  0x65   :  { %999 = vmatmul.mubr.bf16.vlgmr.msra.gmra.mrb[8].mxu0 %v1932_v10  ;;  %1042 = vmatmul.mubr.bf16.vlgmr.msra.gmra.mrb[8].mxu1 %v1932_v10 }
  0x66   :  { %1053 = vmatpush1.bf16.msra.mxu0 %v1629_v17  ;;  %1096 = vmatpush1.bf16.msra.mxu1 %v1631_v18 }
  0x67   :  { %1054 = vmatprep.subr.bf16.mxu0 %v1646_v19  ;;  %1097 = vmatprep.subr.bf16.mxu1 %v1648_v20 }
  0x68   :  { %1084 = vmatprep.mubr.bf16.mxu0 %v1785_v3  ;;  %1127 = vmatprep.mubr.bf16.mxu1 %v1785_v3  ;;  %v91_v3 = vld [vmem:[%s2644_s1 + $0x238] sm:$0xff] }
  0x69   :  { %v1696_v43 = vcombine.high %v91_v3, %v99_v39  ;;  %v1695_v49 = vcombine.low %v91_v3, %v99_v39 }
  0x6a   :  { %1055 = vmatpush1.bf16.msra.mxu0 %v1645_v25  ;;  %1098 = vmatpush1.bf16.msra.mxu1 %v1647_v26 }
  0x6b   :  { %1056 = vmatprep.subr.bf16.mxu0 %v1662_v27  ;;  %1099 = vmatprep.subr.bf16.mxu1 %v1664_v28 }
  0x6e   :  { %1057 = vmatpush1.bf16.msra.mxu0 %v1661_v33  ;;  %1100 = vmatpush1.bf16.msra.mxu1 %v1663_v34 }
  0x6f   :  { %1058 = vmatprep.subr.bf16.mxu0 %v1678_v35  ;;  %1101 = vmatprep.subr.bf16.mxu1 %v1680_v36 }
  0x72   :  { %1059 = vmatpush1.bf16.msra.mxu0 %v1677_v40  ;;  %1102 = vmatpush1.bf16.msra.mxu1 %v1679_v41 }
  0x73   :  { %1060 = vmatprep.subr.bf16.mxu0 %v1694_v42  ;;  %1103 = vmatprep.subr.bf16.mxu1 %v1696_v43 }
  0x76   :  { %1061 = vmatpush1.bf16.msra.mxu0 %v1693_v48  ;;  %1104 = vmatpush1.bf16.msra.mxu1 %v1695_v49 }
  0x77   :  { %1062 = vmatprep.subr.bf16.mxu0 %v1710_v50  ;;  %1105 = vmatprep.subr.bf16.mxu1 %v1712_v51 }
  0x7a   :  { %1063 = vmatpush1.bf16.msra.mxu0 %v1709_v56  ;;  %1106 = vmatpush1.bf16.msra.mxu1 %v1711_v57 }
  0x7b   :  { %1064 = vmatprep.subr.bf16.mxu0 %v1726_v58  ;;  %1107 = vmatprep.subr.bf16.mxu1 %v1728_v59 }
  0x7e   :  { %1065 = vmatpush1.bf16.msra.mxu0 %v1725_v0  ;;  %1108 = vmatpush1.bf16.msra.mxu1 %v1727_v1 }
  0x7f   :  { %1066 = vmatprep.subr.bf16.mxu0 %v1742_v2  ;;  %1109 = vmatprep.subr.bf16.mxu1 %v1744_v4 }
  0x82   :  { %1067 = vmatpush1.bf16.msra.mxu0 %v1741_v5  ;;  %1110 = vmatpush1.bf16.msra.mxu1 %v1743_v6 }
  0x85   :  { %1085 = vmatmul.mubr.bf16.vlgmr.msra.gmra.mrb[12].mxu0 %v1932_v10  ;;  %1128 = vmatmul.mubr.bf16.vlgmr.msra.gmra.mrb[12].mxu1 %v1932_v10 }
  0xf8   :  { %v2224_v9 = vpop.f32.mrb[0].mxu0  ;;  %v2230_v13 = vpop.f32.mrb[0].mxu1 }
  0xf9   :  { %v1172_v11 = vmul.f32 %v2224_v9, %v2224_v9  ;;  %v2228_v12 = vpop.f32.mrb[1].mxu0  ;;  %v1174_v16 = vmul.f32 %v2230_v13, %v2230_v13  ;;  %v2240_v17 = vpop.f32.mrb[1].mxu1 }
  0xfa   :  { %v1138_v10 = vadd.f32 %v2228_v12, %v2224_v9  ;;  %v1173_v14 = vmul.f32 %v2228_v12, %v2228_v12  ;;  %v2236_v15 = vpop.f32.mrb[2].mxu0  ;;  %v1175_v20 = vmul.f32 %v2240_v17, %v2240_v17  ;;  %v2248_v21 = vpop.f32.mrb[2].mxu1 }
  0xfb   :  { %v1188_v18 = vmul.f32 %v2236_v15, %v2236_v15  ;;  %v2244_v19 = vpop.f32.mrb[3].mxu0  ;;  %v2255_v26 = vpop.f32.mrb[3].mxu1  ;;  %v1190_v27 = vmul.f32 %v2248_v21, %v2248_v21 }
  0xfc   :  { %v1204_v22 = vadd.f32 %v1173_v14, %v1172_v11  ;;  %v1139_v23 = vadd.f32 %v1138_v10, %v2230_v13  ;;  %v1155_v24 = vadd.f32 %v2244_v19, %v2236_v15  ;;  %v1189_v25 = vmul.f32 %v2244_v19, %v2244_v19 }
  0xfd   :  { %v1191_v35 = vmul.f32 %v2255_v26, %v2255_v26 }
  0xfe   :  { %v1205_v28 = vadd.f32 %v1204_v22, %v1174_v16  ;;  %v1221_v29 = vadd.f32 %v1189_v25, %v1188_v18  ;;  %v1140_v30 = vadd.f32 %v1139_v23, %v2240_v17  ;;  %v1156_v31 = vadd.f32 %v1155_v24, %v2248_v21 }
 0x100   :  { %v1206_v32 = vadd.f32 %v1205_v28, %v1175_v20  ;;  %v1222_v33 = vadd.f32 %v1221_v29, %v1190_v27  ;;  %v1157_v34 = vadd.f32 %v1156_v31, %v2255_v26 }
 0x102   :  { %v1223_v36 = vadd.f32 %v1222_v33, %v1191_v35 }
 0x118   :  { %v2264_v37 = vpop.f32.mrb[4].mxu0  ;;  %v2271_v40 = vpop.f32.mrb[4].mxu1 }
 0x119   :  { %v1141_v38 = vadd.f32 %v1140_v30, %v2264_v37  ;;  %v1176_v3 = vmul.f32 %v2264_v37, %v2264_v37  ;;  %v2269_v39 = vpop.f32.mrb[5].mxu0  ;;  %v1178_v43 = vmul.f32 %v2271_v40, %v2271_v40  ;;  %v2279_v44 = vpop.f32.mrb[5].mxu1 }
 0x11a   :  { %v1177_v41 = vmul.f32 %v2269_v39, %v2269_v39  ;;  %v2275_v42 = vpop.f32.mrb[6].mxu0  ;;  %v2287_v50 = vpop.f32.mrb[6].mxu1  ;;  %v1179_v52 = vmul.f32 %v2279_v44, %v2279_v44 }
 0x11b   :  { %v1207_v45 = vadd.f32 %v1206_v32, %v1176_v3  ;;  %v1142_v46 = vadd.f32 %v1141_v38, %v2269_v39  ;;  %v1158_v47 = vadd.f32 %v1157_v34, %v2275_v42  ;;  %v1192_v48 = vmul.f32 %v2275_v42, %v2275_v42  ;;  %v2285_v49 = vpop.f32.mrb[7].mxu0  ;;  %v2295_v54 = vpop.f32.mrb[7].mxu1 }
 0x11c   :  { %v1193_v51 = vmul.f32 %v2285_v49, %v2285_v49  ;;  %v1194_v53 = vmul.f32 %v2287_v50, %v2287_v50  ;;  %v1195_v2 = vmul.f32 %v2295_v54, %v2295_v54 }
 0x11d   :  { %v1208_v55 = vadd.f32 %v1207_v45, %v1177_v41  ;;  %v1224_v56 = vadd.f32 %v1223_v36, %v1192_v48  ;;  %v1143_v57 = vadd.f32 %v1142_v46, %v2271_v40  ;;  %v1159_v58 = vadd.f32 %v1158_v47, %v2285_v49 }
 0x11f   :  { %v1209_v59 = vadd.f32 %v1208_v55, %v1178_v43  ;;  %v1225_v60 = vadd.f32 %v1224_v56, %v1193_v51  ;;  %v1144_v61 = vadd.f32 %v1143_v57, %v2279_v44  ;;  %v1160_v62 = vadd.f32 %v1159_v58, %v2287_v50 }
 0x121   :  { %v1210_v63 = vadd.f32 %v1209_v59, %v1179_v52  ;;  %v1226_v0 = vadd.f32 %v1225_v60, %v1194_v53  ;;  %v1161_v1 = vadd.f32 %v1160_v62, %v2295_v54 }
 0x123   :  { %v1227_v4 = vadd.f32 %v1226_v0, %v1195_v2 }
 0x138   :  { %v2304_v5 = vpop.f32.mrb[8].mxu0  ;;  %v2311_v11 = vpop.f32.mrb[8].mxu1 }
 0x139   :  { %v1145_v6 = vadd.f32 %v1144_v61, %v2304_v5  ;;  %v1180_v7 = vmul.f32 %v2304_v5, %v2304_v5  ;;  %v2309_v8 = vpop.f32.mrb[9].mxu0  ;;  %v1182_v16 = vmul.f32 %v2311_v11, %v2311_v11  ;;  %v2319_v18 = vpop.f32.mrb[9].mxu1 }
 0x13a   :  { %v1181_v10 = vmul.f32 %v2309_v8, %v2309_v8  ;;  %v2315_v14 = vpop.f32.mrb[10].mxu0  ;;  %v2327_v27 = vpop.f32.mrb[10].mxu1  ;;  %v1183_v29 = vmul.f32 %v2319_v18, %v2319_v18 }
 0x13b   :  { %v1211_v20 = vadd.f32 %v1210_v63, %v1180_v7  ;;  %v1146_v22 = vadd.f32 %v1145_v6, %v2309_v8  ;;  %v1162_v23 = vadd.f32 %v1161_v1, %v2315_v14  ;;  %v1196_v24 = vmul.f32 %v2315_v14, %v2315_v14  ;;  %v2325_v25 = vpop.f32.mrb[11].mxu0  ;;  %v2335_v31 = vpop.f32.mrb[11].mxu1 }
 0x13c   :  { %v1197_v28 = vmul.f32 %v2325_v25, %v2325_v25  ;;  %v1198_v30 = vmul.f32 %v2327_v27, %v2327_v27  ;;  %v1199_v47 = vmul.f32 %v2335_v31, %v2335_v31 }
 0x13d   :  { %v1212_v32 = vadd.f32 %v1211_v20, %v1181_v10  ;;  %v1228_v33 = vadd.f32 %v1227_v4, %v1196_v24  ;;  %v1147_v34 = vadd.f32 %v1146_v22, %v2311_v11  ;;  %v1163_v35 = vadd.f32 %v1162_v23, %v2325_v25 }
 0x13f   :  { %v1213_v36 = vadd.f32 %v1212_v32, %v1182_v16  ;;  %v1229_v38 = vadd.f32 %v1228_v33, %v1197_v28  ;;  %v1148_v3 = vadd.f32 %v1147_v34, %v2319_v18  ;;  %v1164_v41 = vadd.f32 %v1163_v35, %v2327_v27 }
 0x141   :  { %v1214_v43 = vadd.f32 %v1213_v36, %v1183_v29  ;;  %v1230_v45 = vadd.f32 %v1229_v38, %v1198_v30  ;;  %v1165_v46 = vadd.f32 %v1164_v41, %v2335_v31  ;;  %v1361_v38 = vld [vmem:[%s2647_s3 + $0x8] sm:$0xff]  ;;  %v2390_v41 = vpop.permute.xlu1 %1325 }
 0x143   :  { %v1231_v48 = vadd.f32 %v1230_v45, %v1199_v47 }
 0x158   :  { %v2344_v51 = vpop.f32.mrb[12].mxu0  ;;  %v2351_v56 = vpop.f32.mrb[12].mxu1 }
 0x159   :  { %v1149_v52 = vadd.f32 %v1148_v3, %v2344_v51  ;;  %v1184_v53 = vmul.f32 %v2344_v51, %v2344_v51  ;;  %v2349_v55 = vpop.f32.mrb[13].mxu0  ;;  %v2357_v59 = vpop.f32.mrb[13].mxu1  ;;  %v1186_v2 = vmul.f32 %v2351_v56, %v2351_v56  ;;  %v1316_v3 = vld [vmem:[%s2646_s2] sm:$0xff] }
 0x15a   :  { %v1185_v57 = vmul.f32 %v2349_v55, %v2349_v55  ;;  %v2355_v58 = vpop.f32.mrb[14].mxu0  ;;  %v2365_v1 = vpop.f32.mrb[14].mxu1  ;;  %v1187_v29 = vmul.f32 %v2357_v59, %v2357_v59 }
 0x15b   :  { %v1215_v60 = vadd.f32 %v1214_v43, %v1184_v53  ;;  %v1150_v61 = vadd.f32 %v1149_v52, %v2349_v55  ;;  %v1166_v62 = vadd.f32 %v1165_v46, %v2355_v58  ;;  %v1200_v63 = vmul.f32 %v2355_v58, %v2355_v58  ;;  %v2363_v0 = vpop.f32.mrb[15].mxu0  ;;  %v2371_v6 = vpop.f32.mrb[15].mxu1 }
 0x15c   :  { %v1201_v4 = vmul.f32 %v2363_v0, %v2363_v0  ;;  %v1202_v23 = vmul.f32 %v2365_v1, %v2365_v1  ;;  %v1203_v32 = vmul.f32 %v2371_v6, %v2371_v6  ;;  %v2392_v43 = vpop.permute.xlu1 %1364 }
 0x15d   :  { %v1232_v7 = vadd.f32 %v1231_v48, %v1200_v63  ;;  %v1167_v10 = vadd.f32 %v1166_v62, %v2363_v0  ;;  %v1151_v16 = vadd.f32 %v1150_v61, %v2351_v56  ;;  %v1216_v20 = vadd.f32 %v1215_v60, %v1185_v57 }
 0x15f   :  { %v1233_v22 = vadd.f32 %v1232_v7, %v1201_v4  ;;  %v1152_v24 = vadd.f32 %v1151_v16, %v2357_v59  ;;  %v1168_v28 = vadd.f32 %v1167_v10, %v2365_v1  ;;  %v1217_v30 = vadd.f32 %v1216_v20, %v1186_v2 }
 0x161   :  { %1153 = vadd.xlane.f32.xlu0 %v1152_v24  ;;  %v1169_v33 = vadd.f32 %v1168_v28, %v2371_v6  ;;  %v1234_v34 = vadd.f32 %v1233_v22, %v1202_v23  ;;  %v1218_v35 = vadd.f32 %v1217_v30, %v1187_v29 }
 0x163   :  { %v1235_v36 = vadd.f32 %v1234_v34, %v1203_v32  ;;  %1219 = vadd.xlane.f32.xlu1 %v1218_v35 }
 0x165   :  { %1170 = vadd.xlane.f32.xlu0 %v1169_v33 }
 0x167   :  { %1236 = vadd.xlane.f32.xlu1 %v1235_v36 }
 0x178   :  { %1369 = vperm.xlu1 %1779, %v1361_v38  }
 0x17b   :  { %1320 = vperm.xlu0 %1778, %v1316_v3  }
 0x1ee   :  { %v1154_v45 = vpop.xlane.xlu0 %1153 }
 0x1ef   :  { %v2394_v46 = vmul.f32 0.00048828125, %v1154_v45 }
 0x1f0   :  { %v1220_v47 = vpop.xlane.xlu1 %1219 }
 0x1f1   :  { %v1242_v48 = vmul.f32 %v2394_v46, %v2394_v46  ;;  %v1240_v52 = vmul.f32 0.00048828125, %v1220_v47  ;;  %v1248_v20 = vsub.f32 %v2224_v9, %v2394_v46  ;;  %v1249_v22 = vsub.f32 %v2228_v12, %v2394_v46 }
 0x1f2   :  { %v1171_v53 = vpop.xlane.xlu0 %1170  ;;  %v1250_v23 = vsub.f32 %v2230_v13, %v2394_v46  ;;  %v1251_v24 = vsub.f32 %v2240_v17, %v2394_v46  ;;  %v1252_v28 = vsub.f32 %v2264_v37, %v2394_v46  ;;  %v1253_v29 = vsub.f32 %v2269_v39, %v2394_v46 }
 0x1f3   :  { %v2398_v57 = vmul.f32 0.00048828125, %v1171_v53  ;;  %v1244_v60 = vsub.f32 %v1240_v52, %v1242_v48  ;;  %v1254_v30 = vsub.f32 %v2271_v40, %v2394_v46  ;;  %v1255_v9 = vsub.f32 %v2279_v44, %v2394_v46 }
 0x1f4   :  { %v1237_v61 = vpop.xlane.xlu1 %1236  ;;  %v1256_v12 = vsub.f32 %v2304_v5, %v2394_v46  ;;  %v1257_v13 = vsub.f32 %v2309_v8, %v2394_v46  ;;  %v1258_v17 = vsub.f32 %v2311_v11, %v2394_v46  ;;  %v1259_v37 = vsub.f32 %v2319_v18, %v2394_v46 }
 0x1f5   :  { %v1243_v62 = vmul.f32 %v2398_v57, %v2398_v57  ;;  %v1246_v63 = vmax.f32 %v1244_v60, 0.0  ;;  %v1241_v2 = vmul.f32 0.00048828125, %v1237_v61  ;;  %v1264_v39 = vsub.f32 %v2236_v15, %v2398_v57 }
 0x1f6   :  { %v1265_v40 = vsub.f32 %v2244_v19, %v2398_v57  ;;  %v1266_v44 = vsub.f32 %v2248_v21, %v2398_v57  ;;  %v1267_v5 = vsub.f32 %v2255_v26, %v2398_v57  ;;  %v1268_v8 = vsub.f32 %v2275_v42, %v2398_v57 }
 0x1f7   :  { %v1280_v4 = vadd.f32 1e-05, %v1246_v63  ;;  %v1245_v7 = vsub.f32 %v1241_v2, %v1243_v62  ;;  %v1269_v11 = vsub.f32 %v2285_v49, %v2398_v57  ;;  %v1270_v18 = vsub.f32 %v2287_v50, %v2398_v57 }
 0x1f8   :  { %v1271_v15 = vsub.f32 %v2295_v54, %v2398_v57  ;;  %v1272_v19 = vsub.f32 %v2315_v14, %v2398_v57  ;;  %v1273_v21 = vsub.f32 %v2325_v25, %v2398_v57  ;;  %v1274_v26 = vsub.f32 %v2327_v27, %v2398_v57 }
 0x1f9   :  { %1781 = vrsqrt.f32 %v1280_v4  ;;  %v1247_v10 = vmax.f32 %v1245_v7, 0.0  ;;  %v1275_v42 = vsub.f32 %v2335_v31, %v2398_v57  ;;  %v1276_v49 = vsub.f32 %v2355_v58, %v2398_v57 }
 0x1fa   :  { %v1277_v50 = vsub.f32 %v2363_v0, %v2398_v57  ;;  %v1278_v54 = vsub.f32 %v2365_v1, %v2398_v57  ;;  %v1279_v14 = vsub.f32 %v2371_v6, %v2398_v57  ;;  %v1260_v25 = vsub.f32 %v2344_v51, %v2394_v46 }
 0x1fb   :  { %v1281_v16 = vadd.f32 1e-05, %v1247_v10  ;;  %v1261_v27 = vsub.f32 %v2349_v55, %v2394_v46  ;;  %v1262_v31 = vsub.f32 %v2351_v56, %v2394_v46  ;;  %v1263_v58 = vsub.f32 %v2357_v59, %v2394_v46 }
 0x1fd   :  { %1783 = vrsqrt.f32 %v1281_v16 }
 0x203   :  { %v1782_v32 = vpop.eup %1781 }
 0x204   :  { %v2466_v0 = vmul.f32 %v1782_v32, %v1248_v20  ;;  %v2468_v33 = vmul.f32 %v1782_v32, %v1249_v22  ;;  %v2470_v1 = vmul.f32 %v1782_v32, %v1250_v23  ;;  %v2472_v6 = vmul.f32 %v1782_v32, %v1251_v24 }
 0x205   :  { %v2474_v34 = vmul.f32 %v1782_v32, %v1252_v28  ;;  %v2476_v51 = vmul.f32 %v1782_v32, %v1253_v29  ;;  %v2478_v35 = vmul.f32 %v1782_v32, %v1254_v30  ;;  %v2480_v55 = vmul.f32 %v1782_v32, %v1255_v9 }
 0x206   :  { %v2482_v56 = vmul.f32 %v1782_v32, %v1256_v12  ;;  %v2484_v36 = vmul.f32 %v1782_v32, %v1257_v13  ;;  %v2486_v59 = vmul.f32 %v1782_v32, %v1258_v17  ;;  %v2488_v38 = vmul.f32 %v1782_v32, %v1259_v37 }
 0x207   :  { %v1784_v3 = vpop.eup %1783  ;;  %v2490_v45 = vmul.f32 %v1782_v32, %v1260_v25  ;;  %v2492_v46 = vmul.f32 %v1782_v32, %v1261_v27  ;;  %v2494_v47 = vmul.f32 %v1782_v32, %v1262_v31  ;;  %v2496_v48 = vmul.f32 %v1782_v32, %v1263_v58 }
 0x208   :  { %v1300_v52 = vmul.f32 %v1784_v3, %v1264_v39  ;;  %v1301_v53 = vmul.f32 %v1784_v3, %v1265_v40  ;;  %v1302_v57 = vmul.f32 %v1784_v3, %v1266_v44  ;;  %v1303_v60 = vmul.f32 %v1784_v3, %v1267_v5 }
 0x209   :  { %v1304_v61 = vmul.f32 %v1784_v3, %v1268_v8  ;;  %v1305_v62 = vmul.f32 %v1784_v3, %v1269_v11  ;;  %v1306_v63 = vmul.f32 %v1784_v3, %v1270_v18  ;;  %v1307_v2 = vmul.f32 %v1784_v3, %v1271_v15  ;;  %v1370_v8 = vpop.permute.xlu1 %1369 }
 0x20a   :  { %v1308_v4 = vmul.f32 %v1784_v3, %v1272_v19  ;;  %v1309_v7 = vmul.f32 %v1784_v3, %v1273_v21  ;;  %v1310_v10 = vmul.f32 %v1784_v3, %v1274_v26  ;;  %v1311_v16 = vmul.f32 %v1784_v3, %v1275_v42 }
 0x20b   :  { %v1312_v20 = vmul.f32 %v1784_v3, %v1276_v49  ;;  %v1313_v22 = vmul.f32 %v1784_v3, %v1277_v50  ;;  %v1314_v23 = vmul.f32 %v1784_v3, %v1278_v54  ;;  %v1315_v24 = vmul.f32 %v1784_v3, %v1279_v14 }
 0x20c   :  { %v1344_v28 = vmul.f32 %v2390_v41, %v1300_v52  ;;  %v1345_v29 = vmul.f32 %v2390_v41, %v1301_v53  ;;  %v1346_v30 = vmul.f32 %v2390_v41, %v1302_v57  ;;  %v1347_v9 = vmul.f32 %v2390_v41, %v1303_v60 }
 0x20d   :  { %v1348_v12 = vmul.f32 %v2390_v41, %v1304_v61  ;;  %v1349_v13 = vmul.f32 %v2390_v41, %v1305_v62  ;;  %v1350_v17 = vmul.f32 %v2390_v41, %v1306_v63  ;;  %v1351_v37 = vmul.f32 %v2390_v41, %v1307_v2 }
 0x20e   :  { %v1352_v39 = vmul.f32 %v2390_v41, %v1308_v4  ;;  %v1353_v40 = vmul.f32 %v2390_v41, %v1309_v7  ;;  %v1354_v44 = vmul.f32 %v2390_v41, %v1310_v10  ;;  %v1355_v5 = vmul.f32 %v2390_v41, %v1311_v16 }
 0x20f   :  { %v1356_v11 = vmul.f32 %v2390_v41, %v1312_v20  ;;  %v1357_v18 = vmul.f32 %v2390_v41, %v1313_v22  ;;  %v1358_v15 = vmul.f32 %v2390_v41, %v1314_v23  ;;  %v1359_v19 = vmul.f32 %v2390_v41, %v1315_v24  ;;  %v2514_v41 = vpop.permute.xlu0 %1320 }
 0x210   :  { %v1388_v21 = vadd.f32 %v1370_v8, %v1344_v28  ;;  %v1389_v26 = vadd.f32 %v1370_v8, %v1345_v29  ;;  %v1390_v42 = vadd.f32 %v1370_v8, %v1346_v30  ;;  %v1391_v49 = vadd.f32 %v1370_v8, %v1347_v9 }
 0x211   :  { %v1392_v50 = vadd.f32 %v1370_v8, %v1348_v12  ;;  %v1393_v54 = vadd.f32 %v1370_v8, %v1349_v13  ;;  %v1394_v14 = vadd.f32 %v1370_v8, %v1350_v17  ;;  %v1395_v32 = vadd.f32 %v1370_v8, %v1351_v37 }
 0x212   :  { %v1396_v25 = vadd.f32 %v1370_v8, %v1352_v39  ;;  %v1397_v27 = vadd.f32 %v1370_v8, %v1353_v40  ;;  %v1398_v31 = vadd.f32 %v1370_v8, %v1354_v44  ;;  %v1399_v58 = vadd.f32 %v1370_v8, %v1355_v5 }
 0x213   :  { %v1400_v3 = vadd.f32 %v1370_v8, %v1356_v11  ;;  %v1401_v52 = vadd.f32 %v1370_v8, %v1357_v18  ;;  %v1402_v53 = vadd.f32 %v1370_v8, %v1358_v15  ;;  %v1403_v57 = vadd.f32 %v1370_v8, %v1359_v19 }
 0x214   :  { %vm1420_vm0 = vcmp.gt.f32.partialorder %v1388_v21, 0.0  ;;  %vm1421_vm1 = vcmp.gt.f32.partialorder %v1389_v26, 0.0  ;;  %vm1422_vm2 = vcmp.gt.f32.partialorder %v1390_v42, 0.0  ;;  %vm1423_vm3 = vcmp.gt.f32.partialorder %v1391_v49, 0.0 }
 0x215   :  { %vm1424_vm4 = vcmp.gt.f32.partialorder %v1392_v50, 0.0  ;;  %vm1425_vm5 = vcmp.gt.f32.partialorder %v1393_v54, 0.0  ;;  %vm1426_vm6 = vcmp.gt.f32.partialorder %v1394_v14, 0.0  ;;  %vm1427_vm7 = vcmp.gt.f32.partialorder %v1395_v32, 0.0 }
 0x216   :  { %vm1428_vm8 = vcmp.gt.f32.partialorder %v1396_v25, 0.0  ;;  %vm1429_vm9 = vcmp.gt.f32.partialorder %v1397_v27, 0.0  ;;  %vm1430_vm10 = vcmp.gt.f32.partialorder %v1398_v31, 0.0  ;;  %vm1431_vm11 = vcmp.gt.f32.partialorder %v1399_v58, 0.0 }
 0x217   :  { %vm1432_vm12 = vcmp.gt.f32.partialorder %v1400_v3, 0.0  ;;  %vm1433_vm13 = vcmp.gt.f32.partialorder %v1401_v52, 0.0  ;;  %vm1434_vm14 = vcmp.gt.f32.partialorder %v1402_v53, 0.0  ;;  %vm1435_vm15 = vcmp.gt.f32.partialorder %v1403_v57, 0.0 }
 0x218   :  { %v1452_v60 = vmul.f32 0.2, %v1388_v21  ;;  %v1453_v61 = vmul.f32 0.2, %v1389_v26  ;;  %v1454_v62 = vmul.f32 0.2, %v1390_v42  ;;  %v1328_v63 = vmul.f32 %v2514_v41, %v2466_v0 }
 0x219   :  { %v1455_v2 = vmul.f32 0.2, %v1391_v49  ;;  %v1456_v4 = vmul.f32 0.2, %v1392_v50  ;;  %v1457_v7 = vmul.f32 0.2, %v1393_v54  ;;  %v1329_v10 = vmul.f32 %v2514_v41, %v2468_v33 }
 0x21a   :  { %v1458_v16 = vmul.f32 0.2, %v1394_v14  ;;  %v1459_v20 = vmul.f32 0.2, %v1395_v32  ;;  %v1460_v22 = vmul.f32 0.2, %v1396_v25  ;;  %v1484_v23 = vsel %vm1420_vm0, %v1388_v21, %v1452_v60 }
 0x21b   :  { %v1461_v24 = vmul.f32 0.2, %v1397_v27  ;;  %v1462_v28 = vmul.f32 0.2, %v1398_v31  ;;  %v1463_v29 = vmul.f32 0.2, %v1399_v58  ;;  %v1485_v30 = vsel %vm1421_vm1, %v1389_v26, %v1453_v61 }
 0x21c   :  { %v1464_v9 = vmul.f32 0.2, %v1400_v3  ;;  %v1465_v12 = vmul.f32 0.2, %v1401_v52  ;;  %v1466_v13 = vmul.f32 0.2, %v1402_v53  ;;  %v1486_v0 = vsel %vm1422_vm2, %v1390_v42, %v1454_v62 }
 0x21d   :  { %v1467_v17 = vmul.f32 0.2, %v1403_v57  ;;  %v1487_v37 = vsel %vm1423_vm3, %v1391_v49, %v1455_v2  ;;  %v1488_v33 = vsel %vm1424_vm4, %v1392_v50, %v1456_v4  ;;  %v1489_v39 = vsel %vm1425_vm5, %v1393_v54, %v1457_v7 }
 0x21e   :  { %v1490_v40 = vsel %vm1426_vm6, %v1394_v14, %v1458_v16  ;;  %v1491_v44 = vsel %vm1427_vm7, %v1395_v32, %v1459_v20  ;;  %v1492_v5 = vsel %vm1428_vm8, %v1396_v25, %v1460_v22  ;;  %v1493_v8 = vsel %vm1429_vm9, %v1397_v27, %v1461_v24 }
 0x21f   :  { %v1494_v11 = vsel %vm1430_vm10, %v1398_v31, %v1462_v28  ;;  %v1495_v18 = vsel %vm1431_vm11, %v1399_v58, %v1463_v29  ;;  %v1496_v15 = vsel %vm1432_vm12, %v1400_v3, %v1464_v9  ;;  %v1497_v19 = vsel %vm1433_vm13, %v1401_v52, %v1465_v12 }
 0x220   :  { %v1498_v21 = vsel %vm1434_vm14, %v1402_v53, %v1466_v13  ;;  %v1499_v26 = vsel %vm1435_vm15, %v1403_v57, %v1467_v17  ;;  %v1769_v42 = vpack.c.bf16 %v1485_v30, %v1484_v23  ;;  %v1770_v49 = vpack.c.bf16 %v1487_v37, %v1486_v0 }
 0x221   :  { %v1771_v50 = vpack.c.bf16 %v1489_v39, %v1488_v33  ;;  %v1772_v54 = vpack.c.bf16 %v1491_v44, %v1490_v40  ;;  %v1773_v14 = vpack.c.bf16 %v1493_v8, %v1492_v5  ;;  %v1774_v32 = vpack.c.bf16 %v1495_v18, %v1494_v11 }
 0x222   :  { %v1775_v25 = vpack.c.bf16 %v1497_v19, %v1496_v15  ;;  %v1776_v27 = vpack.c.bf16 %v1499_v26, %v1498_v21  ;;  %1604 = vst [vmem:[%s2648_s4 + $0x40] sm:$0xff] %v1769_v42  ;;  %1605 = vst [vmem:[%s2648_s4 + $0x48] sm:$0xff] %v1770_v49  ;;  %v1330_v31 = vmul.f32 %v2514_v41, %v2470_v1 }
 0x223   :  { %v1331_v58 = vmul.f32 %v2514_v41, %v2472_v6  ;;  %1606 = vst [vmem:[%s2648_s4 + $0x50] sm:$0xff] %v1771_v50  ;;  %1607 = vst [vmem:[%s2648_s4 + $0x58] sm:$0xff] %v1772_v54  ;;  %v1332_v1 = vmul.f32 %v2514_v41, %v2474_v34  ;;  %v1333_v6 = vmul.f32 %v2514_v41, %v2476_v51 }
 0x224   :  { %1608 = vst [vmem:[%s2648_s4 + $0x60] sm:$0xff] %v1773_v14  ;;  %1609 = vst [vmem:[%s2648_s4 + $0x68] sm:$0xff] %v1774_v32  ;;  %v1334_v3 = vmul.f32 %v2514_v41, %v2478_v35  ;;  %v1335_v52 = vmul.f32 %v2514_v41, %v2480_v55  ;;  %v1336_v34 = vmul.f32 %v2514_v41, %v2482_v56 }
 0x225   :  { %1610 = vst [vmem:[%s2648_s4 + $0x70] sm:$0xff] %v1775_v25  ;;  %1611 = vst [vmem:[%s2648_s4 + $0x78] sm:$0xff] %v1776_v27  ;;  %v1337_v51 = vmul.f32 %v2514_v41, %v2484_v36  ;;  %v1338_v35 = vmul.f32 %v2514_v41, %v2486_v59  ;;  %v1339_v55 = vmul.f32 %v2514_v41, %v2488_v38 }
 0x226   :  { %v1340_v53 = vmul.f32 %v2514_v41, %v2490_v45  ;;  %v1341_v57 = vmul.f32 %v2514_v41, %v2492_v46  ;;  %v1342_v60 = vmul.f32 %v2514_v41, %v2494_v47  ;;  %v1343_v56 = vmul.f32 %v2514_v41, %v2496_v48 }
 0x227   :  { %v1372_v36 = vadd.f32 %v2392_v43, %v1328_v63  ;;  %v1373_v61 = vadd.f32 %v2392_v43, %v1329_v10  ;;  %v1374_v59 = vadd.f32 %v2392_v43, %v1330_v31  ;;  %v1375_v38 = vadd.f32 %v2392_v43, %v1331_v58 }
 0x228   :  { %v1376_v62 = vadd.f32 %v2392_v43, %v1332_v1  ;;  %v1377_v45 = vadd.f32 %v2392_v43, %v1333_v6  ;;  %v1378_v46 = vadd.f32 %v2392_v43, %v1334_v3  ;;  %v1379_v2 = vadd.f32 %v2392_v43, %v1335_v52 }
 0x229   :  { %v1380_v47 = vadd.f32 %v2392_v43, %v1336_v34  ;;  %v1381_v48 = vadd.f32 %v2392_v43, %v1337_v51  ;;  %v1382_v41 = vadd.f32 %v2392_v43, %v1338_v35  ;;  %v1383_v63 = vadd.f32 %v2392_v43, %v1339_v55 }
 0x22a   :  { %v1384_v4 = vadd.f32 %v2392_v43, %v1340_v53  ;;  %v1385_v7 = vadd.f32 %v2392_v43, %v1341_v57  ;;  %v1386_v10 = vadd.f32 %v2392_v43, %v1342_v60  ;;  %v1387_v16 = vadd.f32 %v2392_v43, %v1343_v56 }
 0x22b   :  { %vm1404_vm0 = vcmp.gt.f32.partialorder %v1372_v36, 0.0  ;;  %vm1405_vm1 = vcmp.gt.f32.partialorder %v1373_v61, 0.0  ;;  %vm1406_vm2 = vcmp.gt.f32.partialorder %v1374_v59, 0.0  ;;  %vm1407_vm3 = vcmp.gt.f32.partialorder %v1375_v38, 0.0 }
 0x22c   :  { %vm1408_vm4 = vcmp.gt.f32.partialorder %v1376_v62, 0.0  ;;  %vm1409_vm5 = vcmp.gt.f32.partialorder %v1377_v45, 0.0  ;;  %vm1410_vm6 = vcmp.gt.f32.partialorder %v1378_v46, 0.0  ;;  %vm1411_vm7 = vcmp.gt.f32.partialorder %v1379_v2, 0.0 }
 0x22d   :  { %vm1412_vm8 = vcmp.gt.f32.partialorder %v1380_v47, 0.0  ;;  %vm1413_vm9 = vcmp.gt.f32.partialorder %v1381_v48, 0.0  ;;  %vm1414_vm10 = vcmp.gt.f32.partialorder %v1382_v41, 0.0  ;;  %vm1415_vm11 = vcmp.gt.f32.partialorder %v1383_v63, 0.0 }
 0x22e   :  { %vm1416_vm12 = vcmp.gt.f32.partialorder %v1384_v4, 0.0  ;;  %vm1417_vm13 = vcmp.gt.f32.partialorder %v1385_v7, 0.0  ;;  %vm1418_vm14 = vcmp.gt.f32.partialorder %v1386_v10, 0.0  ;;  %vm1419_vm15 = vcmp.gt.f32.partialorder %v1387_v16, 0.0 }
 0x22f   :  { %v1436_v20 = vmul.f32 0.2, %v1372_v36  ;;  %v1437_v22 = vmul.f32 0.2, %v1373_v61  ;;  %v1438_v23 = vmul.f32 0.2, %v1374_v59 }
 0x230   :  { %v1439_v43 = vmul.f32 0.2, %v1375_v38  ;;  %v1440_v24 = vmul.f32 0.2, %v1376_v62  ;;  %v1441_v28 = vmul.f32 0.2, %v1377_v45 }
 0x231   :  { %v1442_v29 = vmul.f32 0.2, %v1378_v46  ;;  %v1443_v30 = vmul.f32 0.2, %v1379_v2  ;;  %v1444_v9 = vmul.f32 0.2, %v1380_v47  ;;  %v1468_v12 = vsel %vm1404_vm0, %v1372_v36, %v1436_v20 }
 0x232   :  { %v1445_v13 = vmul.f32 0.2, %v1381_v48  ;;  %v1446_v0 = vmul.f32 0.2, %v1382_v41  ;;  %v1447_v17 = vmul.f32 0.2, %v1383_v63  ;;  %v1469_v37 = vsel %vm1405_vm1, %v1373_v61, %v1437_v22 }
 0x233   :  { %v1448_v33 = vmul.f32 0.2, %v1384_v4  ;;  %v1449_v39 = vmul.f32 0.2, %v1385_v7  ;;  %v1450_v40 = vmul.f32 0.2, %v1386_v10  ;;  %v1470_v44 = vsel %vm1406_vm2, %v1374_v59, %v1438_v23 }
 0x234   :  { %v1451_v5 = vmul.f32 0.2, %v1387_v16  ;;  %v1471_v8 = vsel %vm1407_vm3, %v1375_v38, %v1439_v43  ;;  %v1472_v11 = vsel %vm1408_vm4, %v1376_v62, %v1440_v24  ;;  %v1473_v18 = vsel %vm1409_vm5, %v1377_v45, %v1441_v28 }
 0x235   :  { %v1474_v15 = vsel %vm1410_vm6, %v1378_v46, %v1442_v29  ;;  %v1475_v19 = vsel %vm1411_vm7, %v1379_v2, %v1443_v30  ;;  %v1476_v21 = vsel %vm1412_vm8, %v1380_v47, %v1444_v9  ;;  %v1477_v26 = vsel %vm1413_vm9, %v1381_v48, %v1445_v13 }
 0x236   :  { %v1478_v42 = vsel %vm1414_vm10, %v1382_v41, %v1446_v0  ;;  %v1479_v49 = vsel %vm1415_vm11, %v1383_v63, %v1447_v17  ;;  %v1480_v50 = vsel %vm1416_vm12, %v1384_v4, %v1448_v33  ;;  %v1481_v54 = vsel %vm1417_vm13, %v1385_v7, %v1449_v39 }
 0x237   :  { %v1482_v14 = vsel %vm1418_vm14, %v1386_v10, %v1450_v40  ;;  %v1483_v32 = vsel %vm1419_vm15, %v1387_v16, %v1451_v5  ;;  %v1761_v25 = vpack.c.bf16 %v1469_v37, %v1468_v12  ;;  %v1762_v27 = vpack.c.bf16 %v1471_v8, %v1470_v44 }
 0x238   :  { %v1763_v31 = vpack.c.bf16 %v1473_v18, %v1472_v11  ;;  %v1764_v58 = vpack.c.bf16 %v1475_v19, %v1474_v15  ;;  %v1765_v1 = vpack.c.bf16 %v1477_v26, %v1476_v21  ;;  %v1766_v6 = vpack.c.bf16 %v1479_v49, %v1478_v42 }
 0x239   :  { %v1767_v3 = vpack.c.bf16 %v1481_v54, %v1480_v50  ;;  %v1768_v52 = vpack.c.bf16 %v1483_v32, %v1482_v14  ;;  %1596 = vst [vmem:[%s2648_s4] sm:$0xff] %v1761_v25  ;;  %1597 = vst [vmem:[%s2648_s4 + $0x8] sm:$0xff] %v1762_v27 }
 0x23a   :  { %1598 = vst [vmem:[%s2648_s4 + $0x10] sm:$0xff] %v1763_v31  ;;  %1599 = vst [vmem:[%s2648_s4 + $0x18] sm:$0xff] %v1764_v58 }
 0x23b   :  { %1600 = vst [vmem:[%s2648_s4 + $0x20] sm:$0xff] %v1765_v1  ;;  %1601 = vst [vmem:[%s2648_s4 + $0x28] sm:$0xff] %v1766_v6 }
 0x23c   :  { %1602 = vst [vmem:[%s2648_s4 + $0x30] sm:$0xff] %v1767_v3  ;;  %1603 = vst [vmem:[%s2648_s4 + $0x38] sm:$0xff] %v1768_v52 }

// kernel: discriminator_forward.7
= control target key start
LH: loop header
LB: loop body
LE: loop exit
PB: predicated region body
PF: predicated region fallthrough
CT: control target
= control target key end

     0   :  { %s1433_s1 = inlined_call_operand.vmem [shape: bf16[256,512], index: 1, kind: input, shape index: {}]   ;;  %s1434_s0 = inlined_call_operand.vmem [shape: bf16[32,256], index: 0, kind: input, shape index: {}]   ;;  %s1435_s2 = inlined_call_operand.vmem [shape: f32[32,1], index: 2, kind: input, shape index: {}]   ;;  %s1436_s3 = inlined_call_operand.vmem [shape: f32[32,1], index: 3, kind: input, shape index: {}]   ;;  %s1437_s4 = inlined_call_operand.vmem [shape: bf16[32,512], index: 4, kind: output, shape index: {}]  }
   0x1   :  { %v922_v0 = vld [vmem:[%s1433_s1 + $0x4] ss:$16 sps:$4 sm:$0xff]   ;;  %v924_v1 = vld [vmem:[%s1433_s1 + $0xc] ss:$16 sps:$4 sm:$0xff]   ;;  %v926_v2 = vld [vmem:[%s1433_s1] ss:$16 sps:$4 sm:$0xff]  }
   0x2   :  { %425 = vmatprep.subr.bf16.mxu0 %v922_v0  ;;  %v927_v3 = vld [vmem:[%s1433_s1 + $0x8] ss:$16 sps:$4 sm:$0xff]   ;;  %478 = vmatprep.subr.bf16.mxu1 %v924_v1  ;;  %v928_v4 = vld [vmem:[%s1433_s1 + $0x24] ss:$16 sps:$4 sm:$0xff]   ;;  %v930_v5 = vld [vmem:[%s1433_s1 + $0x2c] ss:$16 sps:$4 sm:$0xff]  }
   0x3   :  { %426 = vmatpush1.bf16.msra.mxu0 %v926_v2  ;;  %479 = vmatpush1.bf16.msra.mxu1 %v927_v3  ;;  %v932_v6 = vld [vmem:[%s1433_s1 + $0x20] ss:$16 sps:$4 sm:$0xff]   ;;  %v933_v7 = vld [vmem:[%s1433_s1 + $0x28] ss:$16 sps:$4 sm:$0xff]   ;;  %v934_v8 = vld [vmem:[%s1433_s1 + $0x44] ss:$16 sps:$4 sm:$0xff]  }
   0x4   :  { %427 = vmatprep.subr.bf16.mxu0 %v928_v4  ;;  %480 = vmatprep.subr.bf16.mxu1 %v930_v5  ;;  %v936_v9 = vld [vmem:[%s1433_s1 + $0x4c] ss:$16 sps:$4 sm:$0xff]   ;;  %v938_v10 = vld [vmem:[%s1433_s1 + $0x40] ss:$16 sps:$4 sm:$0xff]   ;;  %v939_v11 = vld [vmem:[%s1433_s1 + $0x48] ss:$16 sps:$4 sm:$0xff]  }
   0x5   :  { %v940_v12 = vld [vmem:[%s1433_s1 + $0x64] ss:$16 sps:$4 sm:$0xff]   ;;  %v942_v13 = vld [vmem:[%s1433_s1 + $0x6c] ss:$16 sps:$4 sm:$0xff]   ;;  %v944_v14 = vld [vmem:[%s1433_s1 + $0x60] ss:$16 sps:$4 sm:$0xff]  }
   0x6   :  { %v945_v15 = vld [vmem:[%s1433_s1 + $0x68] ss:$16 sps:$4 sm:$0xff]   ;;  %v946_v16 = vld [vmem:[%s1433_s1 + $0x84] ss:$16 sps:$4 sm:$0xff]   ;;  %v948_v17 = vld [vmem:[%s1433_s1 + $0x8c] ss:$16 sps:$4 sm:$0xff]  }
   0x7   :  { %428 = vmatpush1.bf16.msra.mxu0 %v932_v6  ;;  %481 = vmatpush1.bf16.msra.mxu1 %v933_v7  ;;  %v950_v18 = vld [vmem:[%s1433_s1 + $0x80] ss:$16 sps:$4 sm:$0xff]   ;;  %v951_v19 = vld [vmem:[%s1433_s1 + $0x88] ss:$16 sps:$4 sm:$0xff]   ;;  %v952_v20 = vld [vmem:[%s1433_s1 + $0xa4] ss:$16 sps:$4 sm:$0xff]  }
   0x8   :  { %429 = vmatprep.subr.bf16.mxu0 %v934_v8  ;;  %482 = vmatprep.subr.bf16.mxu1 %v936_v9  ;;  %v954_v21 = vld [vmem:[%s1433_s1 + $0xac] ss:$16 sps:$4 sm:$0xff]   ;;  %v956_v22 = vld [vmem:[%s1433_s1 + $0xa0] ss:$16 sps:$4 sm:$0xff]   ;;  %v957_v23 = vld [vmem:[%s1433_s1 + $0xa8] ss:$16 sps:$4 sm:$0xff]  }
   0x9   :  { %v958_v24 = vld [vmem:[%s1433_s1 + $0xc4] ss:$16 sps:$4 sm:$0xff]   ;;  %v960_v25 = vld [vmem:[%s1433_s1 + $0xcc] ss:$16 sps:$4 sm:$0xff]   ;;  %v962_v26 = vld [vmem:[%s1433_s1 + $0xc0] ss:$16 sps:$4 sm:$0xff]  }
   0xa   :  { %v963_v27 = vld [vmem:[%s1433_s1 + $0xc8] ss:$16 sps:$4 sm:$0xff]   ;;  %v964_v28 = vld [vmem:[%s1433_s1 + $0xe4] ss:$16 sps:$4 sm:$0xff]   ;;  %v966_v29 = vld [vmem:[%s1433_s1 + $0xec] ss:$16 sps:$4 sm:$0xff]  }
   0xb   :  { %430 = vmatpush1.bf16.msra.mxu0 %v938_v10  ;;  %483 = vmatpush1.bf16.msra.mxu1 %v939_v11  ;;  %v968_v30 = vld [vmem:[%s1433_s1 + $0xe0] ss:$16 sps:$4 sm:$0xff]   ;;  %v969_v31 = vld [vmem:[%s1433_s1 + $0xe8] ss:$16 sps:$4 sm:$0xff]   ;;  %v970_v32 = vld [vmem:[%s1433_s1 + $0x104] ss:$16 sps:$4 sm:$0xff]  }
   0xc   :  { %431 = vmatprep.subr.bf16.mxu0 %v940_v12  ;;  %484 = vmatprep.subr.bf16.mxu1 %v942_v13  ;;  %v972_v33 = vld [vmem:[%s1433_s1 + $0x10c] ss:$16 sps:$4 sm:$0xff]   ;;  %v974_v34 = vld [vmem:[%s1433_s1 + $0x100] ss:$16 sps:$4 sm:$0xff]   ;;  %v975_v35 = vld [vmem:[%s1433_s1 + $0x108] ss:$16 sps:$4 sm:$0xff]  }
   0xd   :  { %v976_v36 = vld [vmem:[%s1433_s1 + $0x124] ss:$16 sps:$4 sm:$0xff]   ;;  %v978_v37 = vld [vmem:[%s1433_s1 + $0x12c] ss:$16 sps:$4 sm:$0xff]   ;;  %v980_v38 = vld [vmem:[%s1433_s1 + $0x120] ss:$16 sps:$4 sm:$0xff]  }
   0xe   :  { %v981_v39 = vld [vmem:[%s1433_s1 + $0x128] ss:$16 sps:$4 sm:$0xff]   ;;  %v982_v40 = vld [vmem:[%s1433_s1 + $0x144] ss:$16 sps:$4 sm:$0xff]   ;;  %v984_v41 = vld [vmem:[%s1433_s1 + $0x14c] ss:$16 sps:$4 sm:$0xff]  }
   0xf   :  { %432 = vmatpush1.bf16.msra.mxu0 %v944_v14  ;;  %485 = vmatpush1.bf16.msra.mxu1 %v945_v15  ;;  %v986_v42 = vld [vmem:[%s1433_s1 + $0x140] ss:$16 sps:$4 sm:$0xff]   ;;  %v987_v43 = vld [vmem:[%s1433_s1 + $0x148] ss:$16 sps:$4 sm:$0xff]   ;;  %v988_v44 = vld [vmem:[%s1433_s1 + $0x164] ss:$16 sps:$4 sm:$0xff]  }
  0x10   :  { %433 = vmatprep.subr.bf16.mxu0 %v946_v16  ;;  %486 = vmatprep.subr.bf16.mxu1 %v948_v17  ;;  %v990_v45 = vld [vmem:[%s1433_s1 + $0x16c] ss:$16 sps:$4 sm:$0xff]   ;;  %v992_v46 = vld [vmem:[%s1433_s1 + $0x160] ss:$16 sps:$4 sm:$0xff]   ;;  %v993_v48 = vld [vmem:[%s1433_s1 + $0x168] ss:$16 sps:$4 sm:$0xff]  }
  0x11   :  { %v1020_v47 = vld [vmem:[%s1434_s0 + $0x4] ss:$8 sps:$4 sm:$0xff]   ;;  %v998_v51 = vld [vmem:[%s1433_s1 + $0x180] ss:$16 sps:$4 sm:$0xff]   ;;  %v999_v52 = vld [vmem:[%s1433_s1 + $0x188] ss:$16 sps:$4 sm:$0xff]  }
  0x12   :  { %v994_v49 = vld [vmem:[%s1433_s1 + $0x184] ss:$16 sps:$4 sm:$0xff]   ;;  %v996_v50 = vld [vmem:[%s1433_s1 + $0x18c] ss:$16 sps:$4 sm:$0xff]   ;;  %457 = vmatprep.mubr.bf16.mxu0 %v1020_v47  ;;  %510 = vmatprep.mubr.bf16.mxu1 %v1020_v47  ;;  %v1004_v55 = vld [vmem:[%s1433_s1 + $0x1a0] ss:$16 sps:$4 sm:$0xff]  }
  0x13   :  { %434 = vmatpush1.bf16.msra.mxu0 %v950_v18  ;;  %487 = vmatpush1.bf16.msra.mxu1 %v951_v19  ;;  %v1000_v53 = vld [vmem:[%s1433_s1 + $0x1a4] ss:$16 sps:$4 sm:$0xff]   ;;  %v1002_v54 = vld [vmem:[%s1433_s1 + $0x1ac] ss:$16 sps:$4 sm:$0xff]   ;;  %v1005_v56 = vld [vmem:[%s1433_s1 + $0x1a8] ss:$16 sps:$4 sm:$0xff]  }
  0x14   :  { %435 = vmatprep.subr.bf16.mxu0 %v952_v20  ;;  %488 = vmatprep.subr.bf16.mxu1 %v954_v21  ;;  %v1006_v57 = vld [vmem:[%s1433_s1 + $0x1c4] ss:$16 sps:$4 sm:$0xff]   ;;  %v1008_v58 = vld [vmem:[%s1433_s1 + $0x1cc] ss:$16 sps:$4 sm:$0xff]   ;;  %v1010_v59 = vld [vmem:[%s1433_s1 + $0x1c0] ss:$16 sps:$4 sm:$0xff]  }
  0x15   :  { %v1011_v60 = vld [vmem:[%s1433_s1 + $0x1c8] ss:$16 sps:$4 sm:$0xff]   ;;  %v1012_v61 = vld [vmem:[%s1433_s1 + $0x1e4] ss:$16 sps:$4 sm:$0xff]   ;;  %v1014_v62 = vld [vmem:[%s1433_s1 + $0x1ec] ss:$16 sps:$4 sm:$0xff]  }
  0x16   :  { %v1016_v63 = vld [vmem:[%s1433_s1 + $0x1e0] ss:$16 sps:$4 sm:$0xff]   ;;  %v1017_v0 = vld [vmem:[%s1433_s1 + $0x1e8] ss:$16 sps:$4 sm:$0xff]   ;;  %v1021_v2 = vld [vmem:[%s1434_s0 + $0x14] ss:$8 sps:$4 sm:$0xff]  }
  0x17   :  { %436 = vmatpush1.bf16.msra.mxu0 %v956_v22  ;;  %489 = vmatpush1.bf16.msra.mxu1 %v957_v23  ;;  %v1018_v1 = vld [vmem:[%s1434_s0] ss:$8 sps:$4 sm:$0xff]   ;;  %v1023_v3 = vld [vmem:[%s1434_s0 + $0x10] ss:$8 sps:$4 sm:$0xff]   ;;  %v1032_v4 = vmov 0  }
  0x18   :  { %437 = vmatprep.subr.bf16.mxu0 %v958_v24  ;;  %490 = vmatprep.subr.bf16.mxu1 %v960_v25 }
  0x19   :  { %921 = vset.pattern.permute.xlu1 %v1032_v4  ;;  %920 = vset.pattern.permute.xlu0 %v1032_v4  ;;  %v690_v4 = vld [vmem:[%s1436_s3 + $0x18] sm:$0xff] }
  0x1b   :  { %438 = vmatpush1.bf16.msra.mxu0 %v962_v26  ;;  %491 = vmatpush1.bf16.msra.mxu1 %v963_v27 }
  0x1c   :  { %439 = vmatprep.subr.bf16.mxu0 %v964_v28  ;;  %492 = vmatprep.subr.bf16.mxu1 %v966_v29 }
  0x1f   :  { %440 = vmatpush1.bf16.msra.mxu0 %v968_v30  ;;  %493 = vmatpush1.bf16.msra.mxu1 %v969_v31 }
  0x20   :  { %441 = vmatprep.subr.bf16.mxu0 %v970_v32  ;;  %494 = vmatprep.subr.bf16.mxu1 %v972_v33 }
  0x23   :  { %442 = vmatpush1.bf16.msra.mxu0 %v974_v34  ;;  %495 = vmatpush1.bf16.msra.mxu1 %v975_v35 }
  0x24   :  { %443 = vmatprep.subr.bf16.mxu0 %v976_v36  ;;  %496 = vmatprep.subr.bf16.mxu1 %v978_v37 }
  0x27   :  { %444 = vmatpush1.bf16.msra.mxu0 %v980_v38  ;;  %497 = vmatpush1.bf16.msra.mxu1 %v981_v39 }
  0x28   :  { %445 = vmatprep.subr.bf16.mxu0 %v982_v40  ;;  %498 = vmatprep.subr.bf16.mxu1 %v984_v41 }
  0x2b   :  { %446 = vmatpush1.bf16.msra.mxu0 %v986_v42  ;;  %499 = vmatpush1.bf16.msra.mxu1 %v987_v43 }
  0x2c   :  { %447 = vmatprep.subr.bf16.mxu0 %v988_v44  ;;  %500 = vmatprep.subr.bf16.mxu1 %v990_v45 }
  0x2f   :  { %448 = vmatpush1.bf16.msra.mxu0 %v992_v46  ;;  %501 = vmatpush1.bf16.msra.mxu1 %v993_v48 }
  0x30   :  { %449 = vmatprep.subr.bf16.mxu0 %v994_v49  ;;  %502 = vmatprep.subr.bf16.mxu1 %v996_v50 }
  0x33   :  { %450 = vmatpush1.bf16.msra.mxu0 %v998_v51  ;;  %503 = vmatpush1.bf16.msra.mxu1 %v999_v52 }
  0x34   :  { %451 = vmatprep.subr.bf16.mxu0 %v1000_v53  ;;  %504 = vmatprep.subr.bf16.mxu1 %v1002_v54 }
  0x37   :  { %452 = vmatpush1.bf16.msra.mxu0 %v1004_v55  ;;  %505 = vmatpush1.bf16.msra.mxu1 %v1005_v56 }
  0x38   :  { %453 = vmatprep.subr.bf16.mxu0 %v1006_v57  ;;  %506 = vmatprep.subr.bf16.mxu1 %v1008_v58 }
  0x3b   :  { %454 = vmatpush1.bf16.msra.mxu0 %v1010_v59  ;;  %507 = vmatpush1.bf16.msra.mxu1 %v1011_v60 }
  0x3c   :  { %455 = vmatprep.subr.bf16.mxu0 %v1012_v61  ;;  %508 = vmatprep.subr.bf16.mxu1 %v1014_v62  ;;  %v648_v61 = vld [vmem:[%s1435_s2 + $0x8] sm:$0xff]  ;;  %v649_v62 = vld [vmem:[%s1435_s2 + $0x10] sm:$0xff] }
  0x3f   :  { %456 = vmatpush1.bf16.msra.mxu0 %v1016_v63  ;;  %509 = vmatpush1.bf16.msra.mxu1 %v1017_v0  ;;  %v647_v63 = vld [vmem:[%s1435_s2] sm:$0xff]  ;;  %v650_v0 = vld [vmem:[%s1435_s2 + $0x18] sm:$0xff] }
  0x42   :  { %458 = vmatmul.mubr.bf16.vlgmr.msra.gmra.mrb[0].mxu0 %v1018_v1  ;;  %511 = vmatmul.mubr.bf16.vlgmr.msra.gmra.mrb[0].mxu1 %v1018_v1  ;;  %v687_v1 = vld [vmem:[%s1436_s3] sm:$0xff] }
  0x43   :  { %467 = vmatprep.mubr.bf16.mxu0 %v1021_v2  ;;  %520 = vmatprep.mubr.bf16.mxu1 %v1021_v2  ;;  %v688_v2 = vld [vmem:[%s1436_s3 + $0x8] sm:$0xff] }
  0x4a   :  { %468 = vmatmul.mubr.bf16.gmra.mrb[4].mxu0 %v1023_v3  ;;  %521 = vmatmul.mubr.bf16.gmra.mrb[4].mxu1 %v1023_v3  ;;  %v689_v3 = vld [vmem:[%s1436_s3 + $0x10] sm:$0xff] }
 0x115   :  { %v1262_v5 = vpop.f32.mrb[0].mxu0  ;;  %v1264_v6 = vpop.f32.mrb[0].mxu1 }
 0x116   :  { %v551_v7 = vmul.f32 %v1262_v5, %v1262_v5  ;;  %v1268_v8 = vpop.f32.mrb[1].mxu0  ;;  %v1270_v9 = vpop.f32.mrb[1].mxu1  ;;  %v553_v14 = vmul.f32 %v1264_v6, %v1264_v6 }
 0x117   :  { %v531_v10 = vadd.f32 %v1268_v8, %v1262_v5  ;;  %v552_v11 = vmul.f32 %v1268_v8, %v1268_v8  ;;  %v1276_v12 = vpop.f32.mrb[2].mxu0  ;;  %v1278_v13 = vpop.f32.mrb[2].mxu1  ;;  %v554_v26 = vmul.f32 %v1270_v9, %v1270_v9 }
 0x118   :  { %v555_v15 = vmul.f32 %v1276_v12, %v1276_v12  ;;  %v1284_v16 = vpop.f32.mrb[3].mxu0  ;;  %v1286_v17 = vpop.f32.mrb[3].mxu1  ;;  %v557_v22 = vmul.f32 %v1278_v13, %v1278_v13 }
 0x119   :  { %v536_v18 = vadd.f32 %v1284_v16, %v1276_v12  ;;  %v556_v19 = vmul.f32 %v1284_v16, %v1284_v16  ;;  %v532_v20 = vadd.f32 %v531_v10, %v1264_v6  ;;  %v567_v21 = vadd.f32 %v552_v11, %v551_v7 }
 0x11a   :  { %v558_v30 = vmul.f32 %v1286_v17, %v1286_v17 }
 0x11b   :  { %v533_v23 = vadd.f32 %v532_v20, %v1270_v9  ;;  %v572_v24 = vadd.f32 %v556_v19, %v555_v15  ;;  %v537_v25 = vadd.f32 %v536_v18, %v1278_v13  ;;  %v568_v27 = vadd.f32 %v567_v21, %v553_v14 }
 0x11d   :  { %v1299_v28 = vpop.f32.mrb[4].mxu1  ;;  %534 = vadd.xlane.f32.xlu0 %v533_v23  ;;  %v1301_v29 = vpop.f32.mrb[4].mxu0  ;;  %v573_v31 = vadd.f32 %v572_v24, %v557_v22  ;;  %v538_v32 = vadd.f32 %v537_v25, %v1286_v17  ;;  %v569_v36 = vadd.f32 %v568_v27, %v554_v26 }
 0x11e   :  { %v559_v33 = vmul.f32 %v1301_v29, %v1301_v29  ;;  %v1308_v34 = vpop.f32.mrb[5].mxu0  ;;  %v1310_v35 = vpop.f32.mrb[5].mxu1  ;;  %v561_v42 = vmul.f32 %v1299_v28, %v1299_v28 }
 0x11f   :  { %v541_v37 = vadd.f32 %v1308_v34, %v1301_v29  ;;  %v560_v38 = vmul.f32 %v1308_v34, %v1308_v34  ;;  %v1316_v39 = vpop.f32.mrb[6].mxu0  ;;  %v1318_v40 = vpop.f32.mrb[6].mxu1  ;;  %v574_v41 = vadd.f32 %v573_v31, %v558_v30  ;;  %v562_v54 = vmul.f32 %v1310_v35, %v1310_v35 }
 0x120   :  { %v563_v43 = vmul.f32 %v1316_v39, %v1316_v39  ;;  %v1324_v44 = vpop.f32.mrb[7].mxu0  ;;  %v1326_v45 = vpop.f32.mrb[7].mxu1  ;;  %v565_v50 = vmul.f32 %v1318_v40, %v1318_v40 }
 0x121   :  { %v546_v46 = vadd.f32 %v1324_v44, %v1316_v39  ;;  %v564_v47 = vmul.f32 %v1324_v44, %v1324_v44  ;;  %575 = vadd.xlane.f32.xlu1 %v574_v41  ;;  %539 = vadd.xlane.f32.xlu0 %v538_v32  ;;  %v542_v48 = vadd.f32 %v541_v37, %v1299_v28 }
 0x122   :  { %v577_v49 = vadd.f32 %v560_v38, %v559_v33  ;;  %v566_v56 = vmul.f32 %v1326_v45, %v1326_v45 }
 0x123   :  { %v582_v51 = vadd.f32 %v564_v47, %v563_v43  ;;  %v547_v52 = vadd.f32 %v546_v46, %v1318_v40  ;;  %v543_v53 = vadd.f32 %v542_v48, %v1310_v35 }
 0x124   :  { %v578_v55 = vadd.f32 %v577_v49, %v561_v42 }
 0x125   :  { %570 = vadd.xlane.f32.xlu0 %v569_v36  ;;  %v548_v57 = vadd.f32 %v547_v52, %v1326_v45  ;;  %v583_v58 = vadd.f32 %v582_v51, %v565_v50  ;;  %544 = vadd.xlane.f32.xlu1 %v543_v53 }
 0x126   :  { %v579_v59 = vadd.f32 %v578_v55, %v562_v54 }
 0x127   :  { %v584_v60 = vadd.f32 %v583_v58, %v566_v56 }
 0x129   :  { %580 = vadd.xlane.f32.xlu0 %v579_v59  ;;  %549 = vadd.xlane.f32.xlu1 %v548_v57 }
 0x13a   :  { %658 = vperm.xlu1 %921, %v648_v61  }
 0x13e   :  { %663 = vperm.xlu1 %921, %v649_v62  }
 0x13f   :  { %653 = vperm.xlu0 %920, %v647_v63  }
 0x142   :  { %668 = vperm.xlu1 %921, %v650_v0  }
 0x146   :  { %693 = vperm.xlu1 %921, %v687_v1  }
 0x14a   :  { %698 = vperm.xlu1 %921, %v688_v2  }
 0x14e   :  { %703 = vperm.xlu1 %921, %v689_v3  }
 0x172   :  { %585 = vadd.xlane.f32.xlu1 %v584_v60 }
 0x183   :  { %708 = vperm.xlu1 %921, %v690_v4  }
 0x1aa   :  { %v535_v7 = vpop.xlane.xlu0 %534 }
 0x1ab   :  { %v587_v14 = vmul.f32 0.001953125, %v535_v7 }
 0x1ad   :  { %v595_v22 = vmul.f32 %v587_v14, %v587_v14  ;;  %v607_v0 = vsub.f32 %v1262_v5, %v587_v14  ;;  %v608_v1 = vsub.f32 %v1268_v8, %v587_v14 }
 0x1ae   :  { %v576_v10 = vpop.xlane.xlu1 %575  ;;  %v540_v11 = vpop.xlane.xlu0 %539 }
 0x1af   :  { %v588_v15 = vmul.f32 0.001953125, %v540_v11  ;;  %v592_v18 = vmul.f32 0.001953125, %v576_v10 }
 0x1b1   :  { %v596_v19 = vmul.f32 %v588_v15, %v588_v15  ;;  %v611_v53 = vsub.f32 %v1276_v12, %v588_v15  ;;  %v612_v54 = vsub.f32 %v1284_v16, %v588_v15  ;;  %v613_v55 = vsub.f32 %v1278_v13, %v588_v15 }
 0x1b2   :  { %v571_v20 = vpop.xlane.xlu0 %570  ;;  %v545_v24 = vpop.xlane.xlu1 %544  ;;  %v614_v56 = vsub.f32 %v1286_v17, %v588_v15  ;;  %v609_v12 = vsub.f32 %v1264_v6, %v587_v14  ;;  %v610_v16 = vsub.f32 %v1270_v9, %v587_v14 }
 0x1b3   :  { %v600_v21 = vsub.f32 %v592_v18, %v596_v19  ;;  %v591_v23 = vmul.f32 0.001953125, %v571_v20  ;;  %v589_v25 = vmul.f32 0.001953125, %v545_v24 }
 0x1b5   :  { %v604_v26 = vmax.f32 %v600_v21, 0.0  ;;  %v599_v27 = vsub.f32 %v591_v23, %v595_v22  ;;  %v597_v36 = vmul.f32 %v589_v25, %v589_v25  ;;  %v615_v13 = vsub.f32 %v1301_v29, %v589_v25 }
 0x1b6   :  { %v581_v30 = vpop.xlane.xlu0 %580  ;;  %v550_v37 = vpop.xlane.xlu1 %549  ;;  %v616_v17 = vsub.f32 %v1308_v34, %v589_v25  ;;  %v617_v2 = vsub.f32 %v1299_v28, %v589_v25  ;;  %v618_v3 = vsub.f32 %v1310_v35, %v589_v25 }
 0x1b7   :  { %v624_v31 = vadd.f32 1e-05, %v604_v26  ;;  %v603_v32 = vmax.f32 %v599_v27, 0.0  ;;  %v593_v33 = vmul.f32 0.001953125, %v581_v30  ;;  %v1366_v38 = vmul.f32 0.001953125, %v550_v37 }
 0x1b9   :  { %1024 = vrsqrt.f32 %v624_v31  ;;  %v623_v41 = vadd.f32 1e-05, %v603_v32  ;;  %v601_v42 = vsub.f32 %v593_v33, %v597_v36  ;;  %v619_v43 = vsub.f32 %v1316_v39, %v1366_v38 }
 0x1ba   :  { %v620_v46 = vsub.f32 %v1324_v44, %v1366_v38  ;;  %v621_v47 = vsub.f32 %v1318_v40, %v1366_v38  ;;  %v659_v49 = vpop.permute.xlu1 %658  ;;  %v622_v50 = vsub.f32 %v1326_v45, %v1366_v38 }
 0x1bb   :  { %1026 = vrsqrt.f32 %v623_v41  ;;  %v605_v48 = vmax.f32 %v601_v42, 0.0 }
 0x1bd   :  { %v625_v51 = vadd.f32 1e-05, %v605_v48 }
 0x1be   :  { %v664_v52 = vpop.permute.xlu1 %663  ;;  %v654_v4 = vpop.permute.xlu0 %653 }
 0x1bf   :  { %1028 = vrsqrt.f32 %v625_v51 }
 0x1c2   :  { %v1380_v58 = vpop.permute.xlu1 %668 }
 0x1c3   :  { %v1025_v57 = vpop.eup %1024 }
 0x1c4   :  { %v635_v59 = vmul.f32 %v1025_v57, %v611_v53  ;;  %v636_v60 = vmul.f32 %v1025_v57, %v612_v54  ;;  %v637_v61 = vmul.f32 %v1025_v57, %v613_v55  ;;  %v638_v62 = vmul.f32 %v1025_v57, %v614_v56 }
 0x1c5   :  { %v1027_v63 = vpop.eup %1026 }
 0x1c6   :  { %v694_v7 = vpop.permute.xlu1 %693  ;;  %v631_v10 = vmul.f32 %v1027_v63, %v607_v0  ;;  %v632_v11 = vmul.f32 %v1027_v63, %v608_v1  ;;  %v633_v15 = vmul.f32 %v1027_v63, %v609_v12  ;;  %v634_v5 = vmul.f32 %v1027_v63, %v610_v16 }
 0x1c7   :  { %v675_v18 = vmul.f32 %v659_v49, %v635_v59  ;;  %v676_v8 = vmul.f32 %v659_v49, %v636_v60  ;;  %v677_v19 = vmul.f32 %v659_v49, %v637_v61  ;;  %v678_v6 = vmul.f32 %v659_v49, %v638_v62 }
 0x1c8   :  { %v671_v9 = vmul.f32 %v654_v4, %v631_v10  ;;  %v672_v14 = vmul.f32 %v654_v4, %v632_v11  ;;  %v673_v29 = vmul.f32 %v654_v4, %v633_v15  ;;  %v674_v21 = vmul.f32 %v654_v4, %v634_v5 }
 0x1c9   :  { %v1029_v20 = vpop.eup %1028 }
 0x1ca   :  { %v639_v34 = vmul.f32 %v1029_v20, %v615_v13  ;;  %v640_v22 = vmul.f32 %v1029_v20, %v616_v17  ;;  %v641_v28 = vmul.f32 %v1029_v20, %v617_v2  ;;  %v642_v23 = vmul.f32 %v1029_v20, %v618_v3  ;;  %v699_v27 = vpop.permute.xlu1 %698 }
 0x1cb   :  { %v711_v35 = vadd.f32 %v694_v7, %v671_v9  ;;  %v712_v24 = vadd.f32 %v694_v7, %v672_v14  ;;  %v713_v25 = vadd.f32 %v694_v7, %v673_v29  ;;  %v714_v26 = vadd.f32 %v694_v7, %v674_v21 }
 0x1cc   :  { %v679_v30 = vmul.f32 %v664_v52, %v639_v34  ;;  %v680_v31 = vmul.f32 %v664_v52, %v640_v22  ;;  %v681_v32 = vmul.f32 %v664_v52, %v641_v28  ;;  %v682_v33 = vmul.f32 %v664_v52, %v642_v23 }
 0x1cd   :  { %vm727_vm0 = vcmp.gt.f32.partialorder %v711_v35, 0.0  ;;  %vm728_vm1 = vcmp.gt.f32.partialorder %v712_v24, 0.0  ;;  %vm729_vm2 = vcmp.gt.f32.partialorder %v713_v25, 0.0  ;;  %vm730_vm3 = vcmp.gt.f32.partialorder %v714_v26, 0.0 }
 0x1ce   :  { %v743_v36 = vmul.f32 0.2, %v711_v35  ;;  %v744_v37 = vmul.f32 0.2, %v712_v24  ;;  %v745_v41 = vmul.f32 0.2, %v713_v25  ;;  %v715_v42 = vadd.f32 %v699_v27, %v675_v18  ;;  %v704_v57 = vpop.permute.xlu1 %703 }
 0x1cf   :  { %v746_v48 = vmul.f32 0.2, %v714_v26  ;;  %v716_v49 = vadd.f32 %v699_v27, %v676_v8  ;;  %v717_v51 = vadd.f32 %v699_v27, %v677_v19  ;;  %v718_v53 = vadd.f32 %v699_v27, %v678_v6 }
 0x1d0   :  { %v759_v54 = vsel %vm727_vm0, %v711_v35, %v743_v36  ;;  %v760_v55 = vsel %vm728_vm1, %v712_v24, %v744_v37  ;;  %v761_v56 = vsel %vm729_vm2, %v713_v25, %v745_v41  ;;  %vm731_vm4 = vcmp.gt.f32.partialorder %v715_v42, 0.0 }
 0x1d1   :  { %v762_v59 = vsel %vm730_vm3, %v714_v26, %v746_v48  ;;  %v911_v60 = vpack.c.bf16 %v760_v55, %v759_v54  ;;  %vm732_vm5 = vcmp.gt.f32.partialorder %v716_v49, 0.0  ;;  %vm733_vm6 = vcmp.gt.f32.partialorder %v717_v51, 0.0 }
 0x1d2   :  { %v912_v52 = vpack.c.bf16 %v762_v59, %v761_v56  ;;  %vm734_vm7 = vcmp.gt.f32.partialorder %v718_v53, 0.0  ;;  %v747_v61 = vmul.f32 0.2, %v715_v42  ;;  %v748_v62 = vmul.f32 0.2, %v716_v49 }
 0x1d3   :  { %823 = vst [vmem:[%s1437_s4] sm:$0xff] %v911_v60  ;;  %v749_v63 = vmul.f32 0.2, %v717_v51  ;;  %v750_v0 = vmul.f32 0.2, %v718_v53  ;;  %v719_v1 = vadd.f32 %v704_v57, %v679_v30  ;;  %v720_v12 = vadd.f32 %v704_v57, %v680_v31 }
 0x1d4   :  { %824 = vst [vmem:[%s1437_s4 + $0x8] sm:$0xff] %v912_v52  ;;  %v763_v16 = vsel %vm731_vm4, %v715_v42, %v747_v61  ;;  %v764_v13 = vsel %vm732_vm5, %v716_v49, %v748_v62  ;;  %v721_v17 = vadd.f32 %v704_v57, %v681_v32  ;;  %v722_v2 = vadd.f32 %v704_v57, %v682_v33 }
 0x1d5   :  { %v765_v3 = vsel %vm733_vm6, %v717_v51, %v749_v63  ;;  %v766_v4 = vsel %vm734_vm7, %v718_v53, %v750_v0  ;;  %v913_v7 = vpack.c.bf16 %v764_v13, %v763_v16  ;;  %vm735_vm8 = vcmp.gt.f32.partialorder %v719_v1, 0.0 }
 0x1d6   :  { %v914_v10 = vpack.c.bf16 %v766_v4, %v765_v3  ;;  %vm736_vm9 = vcmp.gt.f32.partialorder %v720_v12, 0.0  ;;  %vm737_vm10 = vcmp.gt.f32.partialorder %v721_v17, 0.0  ;;  %vm738_vm11 = vcmp.gt.f32.partialorder %v722_v2, 0.0 }
 0x1d7   :  { %825 = vst [vmem:[%s1437_s4 + $0x10] sm:$0xff] %v913_v7  ;;  %v751_v11 = vmul.f32 0.2, %v719_v1  ;;  %v752_v15 = vmul.f32 0.2, %v720_v12  ;;  %v598_v21 = vmul.f32 %v1366_v38, %v1366_v38 }
 0x1d8   :  { %v753_v5 = vmul.f32 0.2, %v721_v17  ;;  %826 = vst [vmem:[%s1437_s4 + $0x18] sm:$0xff] %v914_v10  ;;  %v754_v18 = vmul.f32 0.2, %v722_v2 }
 0x1d9   :  { %v767_v8 = vsel %vm735_vm8, %v719_v1, %v751_v11  ;;  %v768_v19 = vsel %vm736_vm9, %v720_v12, %v752_v15 }
 0x1da   :  { %v769_v6 = vsel %vm737_vm10, %v721_v17, %v753_v5  ;;  %v770_v20 = vsel %vm738_vm11, %v722_v2, %v754_v18  ;;  %v915_v9 = vpack.c.bf16 %v768_v19, %v767_v8 }
 0x1db   :  { %v916_v14 = vpack.c.bf16 %v770_v20, %v769_v6 }
 0x1dc   :  { %827 = vst [vmem:[%s1437_s4 + $0x20] sm:$0xff] %v915_v9 }
 0x1dd   :  { %828 = vst [vmem:[%s1437_s4 + $0x28] sm:$0xff] %v916_v14 }
 0x1ff   :  { %v586_v29 = vpop.xlane.xlu1 %585 }
 0x200   :  { %v594_v34 = vmul.f32 0.001953125, %v586_v29 }
 0x202   :  { %v602_v22 = vsub.f32 %v594_v34, %v598_v21 }
 0x204   :  { %v606_v28 = vmax.f32 %v602_v22, 0.0 }
 0x206   :  { %v626_v23 = vadd.f32 1e-05, %v606_v28 }
 0x208   :  { %1030 = vrsqrt.f32 %v626_v23 }
 0x212   :  { %v1031_v35 = vpop.eup %1030 }
 0x213   :  { %v643_v24 = vmul.f32 %v1031_v35, %v619_v43  ;;  %v644_v25 = vmul.f32 %v1031_v35, %v620_v46  ;;  %v645_v26 = vmul.f32 %v1031_v35, %v621_v47  ;;  %v646_v27 = vmul.f32 %v1031_v35, %v622_v50  ;;  %v709_v43 = vpop.permute.xlu1 %708 }
 0x215   :  { %v683_v30 = vmul.f32 %v1380_v58, %v643_v24  ;;  %v684_v31 = vmul.f32 %v1380_v58, %v644_v25  ;;  %v685_v32 = vmul.f32 %v1380_v58, %v645_v26  ;;  %v686_v39 = vmul.f32 %v1380_v58, %v646_v27 }
 0x217   :  { %v723_v33 = vadd.f32 %v709_v43, %v683_v30  ;;  %v724_v44 = vadd.f32 %v709_v43, %v684_v31  ;;  %v725_v46 = vadd.f32 %v709_v43, %v685_v32  ;;  %v726_v36 = vadd.f32 %v709_v43, %v686_v39 }
 0x219   :  { %vm739_vm12 = vcmp.gt.f32.partialorder %v723_v33, 0.0  ;;  %vm740_vm13 = vcmp.gt.f32.partialorder %v724_v44, 0.0  ;;  %vm741_vm14 = vcmp.gt.f32.partialorder %v725_v46, 0.0  ;;  %vm742_vm15 = vcmp.gt.f32.partialorder %v726_v36, 0.0 }
 0x21a   :  { %v755_v40 = vmul.f32 0.2, %v723_v33  ;;  %v756_v45 = vmul.f32 0.2, %v724_v44  ;;  %v757_v38 = vmul.f32 0.2, %v725_v46 }
 0x21b   :  { %v758_v47 = vmul.f32 0.2, %v726_v36 }
 0x21c   :  { %v771_v50 = vsel %vm739_vm12, %v723_v33, %v755_v40  ;;  %v772_v37 = vsel %vm740_vm13, %v724_v44, %v756_v45  ;;  %v773_v41 = vsel %vm741_vm14, %v725_v46, %v757_v38 }
 0x21d   :  { %v774_v42 = vsel %vm742_vm15, %v726_v36, %v758_v47  ;;  %v917_v48 = vpack.c.bf16 %v772_v37, %v771_v50 }
 0x21e   :  { %v918_v49 = vpack.c.bf16 %v774_v42, %v773_v41 }
 0x21f   :  { %829 = vst [vmem:[%s1437_s4 + $0x30] sm:$0xff] %v917_v48 }
 0x220   :  { %830 = vst [vmem:[%s1437_s4 + $0x38] sm:$0xff] %v918_v49 }

// kernel: discriminator_forward.8
= control target key start
LH: loop header
LB: loop body
LE: loop exit
PB: predicated region body
PF: predicated region fallthrough
CT: control target
= control target key end

     0   :  { %v1034_v1 = vmov 0   ;;  %s1385_s1 = inlined_call_operand.vmem [shape: bf16[512,128], index: 1, kind: input, shape index: {}]   ;;  %s1386_s0 = inlined_call_operand.vmem [shape: bf16[64,512], index: 0, kind: input, shape index: {}]   ;;  %s1387_s2 = inlined_call_operand.vmem [shape: f32[64,1], index: 2, kind: input, shape index: {}]   ;;  %s1388_s3 = inlined_call_operand.vmem [shape: f32[64,1], index: 3, kind: input, shape index: {}]   ;;  %s1389_s4 = inlined_call_operand.vmem [shape: bf16[64,128], index: 4, kind: output, shape index: {}]  }
   0x1   :  { %v962_v0 = vld [vmem:[%s1385_s1 + $0x40] sm:$0xff]   ;;  %961 = vset.pattern.permute.xlu1 %v1034_v1  ;;  %960 = vset.pattern.permute.xlu0 %v1034_v1  ;;  %v966_v5 = vld [vmem:[%s1385_s1 + $0x48] sm:$0xff]   ;;  %v970_v9 = vld [vmem:[%s1385_s1 + $0x50] sm:$0xff]  }
   0x2   :  { %v963_v2 = vld [vmem:[%s1385_s1 + $0xc0] sm:$0xff]   ;;  %879 = vmatprep.subr.bf16.mxu0 %v962_v0  ;;  %v967_v6 = vld [vmem:[%s1385_s1 + $0xc8] sm:$0xff]   ;;  %v971_v10 = vld [vmem:[%s1385_s1 + $0xd0] sm:$0xff]  }
   0x3   :  { %v964_v3 = vld [vmem:[%s1385_s1] sm:$0xff]   ;;  %919 = vmatprep.subr.bf16.mxu1 %v963_v2  ;;  %v968_v7 = vld [vmem:[%s1385_s1 + $0x8] sm:$0xff]   ;;  %v972_v11 = vld [vmem:[%s1385_s1 + $0x10] sm:$0xff]  }
   0x4   :  { %v965_v4 = vld [vmem:[%s1385_s1 + $0x80] sm:$0xff]   ;;  %880 = vmatpush3.bf16.msra.mxu0 %v964_v3  ;;  %v969_v8 = vld [vmem:[%s1385_s1 + $0x88] sm:$0xff]   ;;  %v973_v12 = vld [vmem:[%s1385_s1 + $0x90] sm:$0xff]  }
   0x5   :  { %920 = vmatpush3.bf16.msra.mxu1 %v965_v4  ;;  %881 = vmatprep.subr.bf16.mxu0 %v966_v5  ;;  %v974_v13 = vld [vmem:[%s1385_s1 + $0x58] sm:$0xff]   ;;  %v978_v17 = vld [vmem:[%s1385_s1 + $0x60] sm:$0xff]   ;;  %v982_v21 = vld [vmem:[%s1385_s1 + $0x68] sm:$0xff]  }
   0x6   :  { %921 = vmatprep.subr.bf16.mxu1 %v967_v6  ;;  %v975_v14 = vld [vmem:[%s1385_s1 + $0xd8] sm:$0xff]   ;;  %v979_v18 = vld [vmem:[%s1385_s1 + $0xe0] sm:$0xff]   ;;  %v983_v22 = vld [vmem:[%s1385_s1 + $0xe8] sm:$0xff]  }
   0x7   :  { %v976_v15 = vld [vmem:[%s1385_s1 + $0x18] sm:$0xff]   ;;  %v980_v19 = vld [vmem:[%s1385_s1 + $0x20] sm:$0xff]   ;;  %v984_v23 = vld [vmem:[%s1385_s1 + $0x28] sm:$0xff]  }
   0x8   :  { %882 = vmatpush3.bf16.msra.mxu0 %v968_v7  ;;  %v977_v16 = vld [vmem:[%s1385_s1 + $0x98] sm:$0xff]   ;;  %v981_v20 = vld [vmem:[%s1385_s1 + $0xa0] sm:$0xff]   ;;  %v985_v24 = vld [vmem:[%s1385_s1 + $0xa8] sm:$0xff]  }
   0x9   :  { %922 = vmatpush3.bf16.msra.mxu1 %v969_v8  ;;  %883 = vmatprep.subr.bf16.mxu0 %v970_v9  ;;  %v986_v25 = vld [vmem:[%s1385_s1 + $0x70] sm:$0xff]   ;;  %v990_v29 = vld [vmem:[%s1385_s1 + $0x78] sm:$0xff]   ;;  %v613_v43 = vld [vmem:[%s1387_s2 + $0x8] sm:$0xff] }
   0xa   :  { %923 = vmatprep.subr.bf16.mxu1 %v971_v10  ;;  %v987_v26 = vld [vmem:[%s1385_s1 + $0xf0] sm:$0xff]   ;;  %v991_v30 = vld [vmem:[%s1385_s1 + $0xf8] sm:$0xff]   ;;  %627 = vperm.xlu1 %961, %v613_v43   ;;  %v612_v45 = vld [vmem:[%s1387_s2] sm:$0xff] }
   0xb   :  { %v988_v27 = vld [vmem:[%s1385_s1 + $0x30] sm:$0xff]   ;;  %v992_v31 = vld [vmem:[%s1385_s1 + $0x38] sm:$0xff]   ;;  %622 = vperm.xlu0 %960, %v612_v45   ;;  %v669_v48 = vld [vmem:[%s1388_s3 + $0x8] sm:$0xff] }
   0xc   :  { %884 = vmatpush3.bf16.msra.mxu0 %v972_v11  ;;  %v989_v28 = vld [vmem:[%s1385_s1 + $0xb0] sm:$0xff]   ;;  %v993_v32 = vld [vmem:[%s1385_s1 + $0xb8] sm:$0xff]   ;;  %v616_v52 = vld [vmem:[%s1387_s2 + $0x20] sm:$0xff] }
   0xd   :  { %924 = vmatpush3.bf16.msra.mxu1 %v973_v12  ;;  %885 = vmatprep.subr.bf16.mxu0 %v974_v13  ;;  %v994_v33 = vld [vmem:[%s1386_s0] ss:$16 sps:$4 sm:$0xff]   ;;  %v996_v34 = vld [vmem:[%s1386_s0 + $0x4] ss:$16 sps:$4 sm:$0xff]   ;;  %v997_v35 = vld [vmem:[%s1386_s0 + $0x8] ss:$16 sps:$4 sm:$0xff]  }
   0xe   :  { %925 = vmatprep.subr.bf16.mxu1 %v975_v14  ;;  %v999_v36 = vld [vmem:[%s1386_s0 + $0xc] ss:$16 sps:$4 sm:$0xff]   ;;  %402 = vmatprep.mubr.bf16.mxu0 %v996_v34  ;;  %v1000_v37 = vld [vmem:[%s1386_s0 + $0x24] ss:$16 sps:$4 sm:$0xff]   ;;  %v1004_v39 = vld [vmem:[%s1386_s0 + $0x20] ss:$16 sps:$4 sm:$0xff]  }
   0xf   :  { %467 = vmatprep.mubr.bf16.mxu1 %v999_v36  ;;  %v1002_v38 = vld [vmem:[%s1386_s0 + $0x2c] ss:$16 sps:$4 sm:$0xff]   ;;  %v1005_v40 = vld [vmem:[%s1386_s0 + $0x28] ss:$16 sps:$4 sm:$0xff]   ;;  %v1006_v41 = vld [vmem:[%s1386_s0 + $0x44] ss:$16 sps:$4 sm:$0xff]   ;;  %683 = vperm.xlu0 %960, %v669_v48  }
  0x10   :  { %886 = vmatpush3.bf16.msra.mxu0 %v976_v15  ;;  %v1008_v42 = vld [vmem:[%s1386_s0 + $0x4c] ss:$16 sps:$4 sm:$0xff]   ;;  %v614_v44 = vld [vmem:[%s1387_s2 + $0x10] sm:$0xff]  ;;  %v1011_v49 = vld [vmem:[%s1386_s0 + $0x48] ss:$16 sps:$4 sm:$0xff]  }
  0x11   :  { %926 = vmatpush3.bf16.msra.mxu1 %v977_v16  ;;  %887 = vmatprep.subr.bf16.mxu0 %v978_v17  ;;  %v1010_v46 = vld [vmem:[%s1386_s0 + $0x40] ss:$16 sps:$4 sm:$0xff]   ;;  %v615_v47 = vld [vmem:[%s1387_s2 + $0x18] sm:$0xff]  ;;  %v1012_v50 = vld [vmem:[%s1386_s0 + $0x64] ss:$16 sps:$4 sm:$0xff]  }
  0x12   :  { %927 = vmatprep.subr.bf16.mxu1 %v979_v18  ;;  %632 = vperm.xlu1 %961, %v614_v44   ;;  %v1014_v51 = vld [vmem:[%s1386_s0 + $0x6c] ss:$16 sps:$4 sm:$0xff]   ;;  %v1016_v54 = vld [vmem:[%s1386_s0 + $0x60] ss:$16 sps:$4 sm:$0xff]   ;;  %v1017_v57 = vld [vmem:[%s1386_s0 + $0x68] ss:$16 sps:$4 sm:$0xff]  }
  0x13   :  { %v671_v53 = vld [vmem:[%s1388_s3 + $0x18] sm:$0xff]  ;;  %v617_v55 = vld [vmem:[%s1387_s2 + $0x28] sm:$0xff]  ;;  %v618_v58 = vld [vmem:[%s1387_s2 + $0x30] sm:$0xff] }
  0x14   :  { %888 = vmatpush3.bf16.msra.mxu0 %v980_v19  ;;  %693 = vperm.xlu0 %960, %v671_v53   ;;  %v673_v56 = vld [vmem:[%s1388_s3 + $0x28] sm:$0xff]  ;;  %v619_v59 = vld [vmem:[%s1387_s2 + $0x38] sm:$0xff]  ;;  %v668_v60 = vld [vmem:[%s1388_s3] sm:$0xff] }
  0x15   :  { %928 = vmatpush3.bf16.msra.mxu1 %v981_v20  ;;  %889 = vmatprep.subr.bf16.mxu0 %v982_v21  ;;  %v670_v61 = vld [vmem:[%s1388_s3 + $0x10] sm:$0xff]  ;;  %v672_v62 = vld [vmem:[%s1388_s3 + $0x20] sm:$0xff] }
  0x16   :  { %929 = vmatprep.subr.bf16.mxu1 %v983_v22  ;;  %637 = vperm.xlu1 %961, %v615_v47  }
  0x18   :  { %890 = vmatpush3.bf16.msra.mxu0 %v984_v23  ;;  %703 = vperm.xlu0 %960, %v673_v56  }
  0x19   :  { %930 = vmatpush3.bf16.msra.mxu1 %v985_v24  ;;  %891 = vmatprep.subr.bf16.mxu0 %v986_v25 }
  0x1a   :  { %931 = vmatprep.subr.bf16.mxu1 %v987_v26  ;;  %642 = vperm.xlu1 %961, %v616_v52  }
  0x1c   :  { %892 = vmatpush3.bf16.msra.mxu0 %v988_v27 }
  0x1d   :  { %932 = vmatpush3.bf16.msra.mxu1 %v989_v28  ;;  %893 = vmatprep.subr.bf16.mxu0 %v990_v29 }
  0x1e   :  { %933 = vmatprep.subr.bf16.mxu1 %v991_v30  ;;  %647 = vperm.xlu1 %961, %v617_v55  }
  0x20   :  { %894 = vmatpush3.bf16.msra.mxu0 %v992_v31 }
  0x21   :  { %934 = vmatpush3.bf16.msra.mxu1 %v993_v32 }
  0x22   :  { %652 = vperm.xlu1 %961, %v618_v58  }
  0x23   :  { %403 = vmatmul.mubr.bf16.vlgmr.msra.gmra.mrb[0].mxu0 %v994_v33 }
  0x24   :  { %468 = vmatmul.mubr.bf16.vlgmr.msra.gmra.mrb[0].mxu1 %v997_v35  ;;  %410 = vmatprep.mubr.bf16.mxu0 %v1000_v37 }
  0x25   :  { %475 = vmatprep.mubr.bf16.mxu1 %v1002_v38 }
  0x26   :  { %657 = vperm.xlu1 %961, %v619_v59  }
  0x2a   :  { %678 = vperm.xlu1 %961, %v668_v60  }
  0x2b   :  { %411 = vmatmul.mubr.bf16.gmra.mrb[4].mxu0 %v1004_v39 }
  0x2c   :  { %476 = vmatmul.mubr.bf16.gmra.mrb[4].mxu1 %v1005_v40  ;;  %418 = vmatprep.mubr.bf16.mxu0 %v1006_v41 }
  0x2d   :  { %483 = vmatprep.mubr.bf16.mxu1 %v1008_v42 }
  0x2e   :  { %688 = vperm.xlu1 %961, %v670_v61  }
  0x32   :  { %698 = vperm.xlu1 %961, %v672_v62  }
  0x33   :  { %419 = vmatmul.mubr.bf16.gmra.mrb[8].mxu0 %v1010_v46 }
  0x34   :  { %484 = vmatmul.mubr.bf16.gmra.mrb[8].mxu1 %v1011_v49  ;;  %426 = vmatprep.mubr.bf16.mxu0 %v1012_v50 }
  0x35   :  { %491 = vmatprep.mubr.bf16.mxu1 %v1014_v51 }
  0x3b   :  { %427 = vmatmul.mubr.bf16.gmra.mrb[12].mxu0 %v1016_v54 }
  0x3c   :  { %492 = vmatmul.mubr.bf16.gmra.mrb[12].mxu1 %v1017_v57 }
  0xf6   :  { %v895_v63 = vpop.f32.mrb[0].mxu0 }
  0xf7   :  { %v935_v0 = vpop.f32.mrb[0].mxu1  ;;  %v896_v1 = vpop.f32.mrb[1].mxu0 }
  0xf8   :  { %v897_v2 = vadd.f32 %v896_v1, %v895_v63  ;;  %v936_v3 = vpop.f32.mrb[1].mxu1  ;;  %v898_v4 = vpop.f32.mrb[2].mxu0  ;;  %v674_v63 = vld [vmem:[%s1388_s3 + $0x30] sm:$0xff] }
  0xf9   :  { %v937_v5 = vadd.f32 %v936_v3, %v935_v0  ;;  %v938_v6 = vpop.f32.mrb[2].mxu1  ;;  %v899_v7 = vpop.f32.mrb[3].mxu0  ;;  %v675_v0 = vld [vmem:[%s1388_s3 + $0x38] sm:$0xff] }
  0xfa   :  { %v900_v8 = vadd.f32 %v899_v7, %v898_v4  ;;  %v939_v9 = vpop.f32.mrb[3].mxu1  ;;  %v1292_v1 = vpop.permute.xlu1 %627 }
  0xfb   :  { %v1246_v10 = vadd.f32 %v937_v5, %v897_v2  ;;  %v940_v11 = vadd.f32 %v939_v9, %v938_v6  ;;  %v1304_v7 = vpop.permute.xlu0 %622 }
  0xfd   :  { %v1248_v12 = vadd.f32 %v940_v11, %v900_v8  ;;  %500 = vadd.xlane.f32.xlu0 %v1246_v10  ;;  %v516_v27 = vmul.f32 %v1246_v10, %v1246_v10 }
  0xfe   :  { %v901_v13 = vpop.f32.mrb[4].mxu0  ;;  %v1294_v2 = vpop.permute.xlu1 %632 }
  0xff   :  { %v941_v14 = vpop.f32.mrb[4].mxu1  ;;  %v902_v15 = vpop.f32.mrb[5].mxu0  ;;  %v517_v16 = vmul.f32 %v1248_v12, %v1248_v12 }
 0x100   :  { %v903_v17 = vadd.f32 %v902_v15, %v901_v13  ;;  %v942_v18 = vpop.f32.mrb[5].mxu1  ;;  %v904_v19 = vpop.f32.mrb[6].mxu0 }
 0x101   :  { %v943_v20 = vadd.f32 %v942_v18, %v941_v14  ;;  %v944_v21 = vpop.f32.mrb[6].mxu1  ;;  %526 = vadd.xlane.f32.xlu1 %v517_v16  ;;  %502 = vadd.xlane.f32.xlu0 %v1248_v12  ;;  %v905_v22 = vpop.f32.mrb[7].mxu0 }
 0x102   :  { %v906_v23 = vadd.f32 %v905_v22, %v904_v19  ;;  %v945_v24 = vpop.f32.mrb[7].mxu1  ;;  %v1296_v3 = vpop.permute.xlu1 %637 }
 0x103   :  { %v1254_v25 = vadd.f32 %v943_v20, %v903_v17  ;;  %v946_v26 = vadd.f32 %v945_v24, %v944_v21  ;;  %v1308_v9 = vpop.permute.xlu0 %683 }
 0x105   :  { %v1258_v28 = vadd.f32 %v946_v26, %v906_v23  ;;  %504 = vadd.xlane.f32.xlu1 %v1254_v25  ;;  %524 = vadd.xlane.f32.xlu0 %v516_v27  ;;  %v518_v32 = vmul.f32 %v1254_v25, %v1254_v25 }
 0x106   :  { %v907_v29 = vpop.f32.mrb[8].mxu0  ;;  %v1298_v4 = vpop.permute.xlu1 %642 }
 0x107   :  { %v947_v30 = vpop.f32.mrb[8].mxu1  ;;  %v908_v31 = vpop.f32.mrb[9].mxu0  ;;  %v519_v43 = vmul.f32 %v1258_v28, %v1258_v28 }
 0x108   :  { %v909_v33 = vadd.f32 %v908_v31, %v907_v29  ;;  %v948_v34 = vpop.f32.mrb[9].mxu1  ;;  %v910_v35 = vpop.f32.mrb[10].mxu0 }
 0x109   :  { %v949_v36 = vadd.f32 %v948_v34, %v947_v30  ;;  %v950_v37 = vpop.f32.mrb[10].mxu1  ;;  %506 = vadd.xlane.f32.xlu1 %v1258_v28  ;;  %528 = vadd.xlane.f32.xlu0 %v518_v32  ;;  %v911_v38 = vpop.f32.mrb[11].mxu0 }
 0x10a   :  { %v912_v39 = vadd.f32 %v911_v38, %v910_v35  ;;  %v951_v40 = vpop.f32.mrb[11].mxu1  ;;  %v1300_v5 = vpop.permute.xlu1 %647 }
 0x10b   :  { %v1264_v41 = vadd.f32 %v949_v36, %v909_v33  ;;  %v952_v42 = vadd.f32 %v951_v40, %v950_v37  ;;  %v1312_v13 = vpop.permute.xlu0 %693 }
 0x10d   :  { %v1268_v44 = vadd.f32 %v952_v42, %v912_v39  ;;  %530 = vadd.xlane.f32.xlu1 %v519_v43  ;;  %508 = vadd.xlane.f32.xlu0 %v1264_v41  ;;  %v520_v45 = vmul.f32 %v1264_v41, %v1264_v41 }
 0x10e   :  { %v913_v46 = vpop.f32.mrb[12].mxu0  ;;  %v1302_v6 = vpop.permute.xlu1 %652 }
 0x10f   :  { %v953_v47 = vpop.f32.mrb[12].mxu1  ;;  %v914_v48 = vpop.f32.mrb[13].mxu0  ;;  %v521_v59 = vmul.f32 %v1268_v44, %v1268_v44 }
 0x110   :  { %v915_v49 = vadd.f32 %v914_v48, %v913_v46  ;;  %v954_v50 = vpop.f32.mrb[13].mxu1  ;;  %v916_v51 = vpop.f32.mrb[14].mxu0 }
 0x111   :  { %v955_v52 = vadd.f32 %v954_v50, %v953_v47  ;;  %v956_v53 = vpop.f32.mrb[14].mxu1  ;;  %510 = vadd.xlane.f32.xlu1 %v1268_v44  ;;  %532 = vadd.xlane.f32.xlu0 %v520_v45  ;;  %v917_v54 = vpop.f32.mrb[15].mxu0 }
 0x112   :  { %v918_v55 = vadd.f32 %v917_v54, %v916_v51  ;;  %v957_v56 = vpop.f32.mrb[15].mxu1  ;;  %v1306_v8 = vpop.permute.xlu1 %657 }
 0x113   :  { %v1274_v57 = vadd.f32 %v955_v52, %v915_v49  ;;  %v958_v58 = vadd.f32 %v957_v56, %v956_v53  ;;  %v1316_v15 = vpop.permute.xlu0 %703 }
 0x115   :  { %v1278_v60 = vadd.f32 %v958_v58, %v918_v55  ;;  %534 = vadd.xlane.f32.xlu1 %v521_v59  ;;  %512 = vadd.xlane.f32.xlu0 %v1274_v57  ;;  %v522_v61 = vmul.f32 %v1274_v57, %v1274_v57 }
 0x116   :  { %v1310_v11 = vpop.permute.xlu1 %678 }
 0x117   :  { %v523_v62 = vmul.f32 %v1278_v60, %v1278_v60 }
 0x119   :  { %514 = vadd.xlane.f32.xlu1 %v1278_v60  ;;  %536 = vadd.xlane.f32.xlu0 %v522_v61 }
 0x11a   :  { %v1314_v14 = vpop.permute.xlu1 %688 }
 0x11d   :  { %538 = vadd.xlane.f32.xlu1 %v523_v62 }
 0x11e   :  { %v1318_v16 = vpop.permute.xlu1 %698 }
 0x12e   :  { %708 = vperm.xlu1 %961, %v674_v63  }
 0x12f   :  { %713 = vperm.xlu0 %960, %v675_v0  }
 0x18a   :  { %v501_v17 = vpop.xlane.xlu0 %500 }
 0x18b   :  { %v540_v20 = vmul.f32 0.0078125, %v501_v17 }
 0x18d   :  { %v556_v27 = vmul.f32 %v540_v20, %v540_v20 }
 0x18e   :  { %v527_v18 = vpop.xlane.xlu1 %526  ;;  %v503_v19 = vpop.xlane.xlu0 %502 }
 0x18f   :  { %v541_v21 = vmul.f32 0.0078125, %v503_v19  ;;  %v549_v22 = vmul.f32 0.0078125, %v527_v18 }
 0x191   :  { %v557_v23 = vmul.f32 %v541_v21, %v541_v21  ;;  %v581_v63 = vsub.f32 %v1248_v12, %v541_v21 }
 0x192   :  { %v505_v24 = vpop.xlane.xlu1 %504  ;;  %v525_v26 = vpop.xlane.xlu0 %524 }
 0x193   :  { %v565_v29 = vsub.f32 %v549_v22, %v557_v23  ;;  %v548_v30 = vmul.f32 0.0078125, %v525_v26  ;;  %v1320_v31 = vmul.f32 0.0078125, %v505_v24  ;;  %v580_v26 = vsub.f32 %v1246_v10, %v540_v20 }
 0x195   :  { %v573_v32 = vmax.f32 %v565_v29, 0.0  ;;  %v564_v33 = vsub.f32 %v548_v30, %v556_v27  ;;  %v558_v40 = vmul.f32 %v1320_v31, %v1320_v31  ;;  %v582_v20 = vsub.f32 %v1254_v25, %v1320_v31 }
 0x196   :  { %v507_v34 = vpop.xlane.xlu1 %506  ;;  %v529_v35 = vpop.xlane.xlu0 %528 }
 0x197   :  { %v589_v36 = vadd.f32 1e-05, %v573_v32  ;;  %v572_v37 = vmax.f32 %v564_v33, 0.0  ;;  %v1322_v38 = vmul.f32 0.0078125, %v507_v34  ;;  %v550_v39 = vmul.f32 0.0078125, %v529_v35 }
 0x199   :  { %1018 = vrsqrt.f32 %v589_v36  ;;  %v588_v42 = vadd.f32 1e-05, %v572_v37  ;;  %v566_v43 = vsub.f32 %v550_v39, %v558_v40  ;;  %v559_v47 = vmul.f32 %v1322_v38, %v1322_v38 }
 0x19a   :  { %v531_v45 = vpop.xlane.xlu1 %530  ;;  %v509_v46 = vpop.xlane.xlu0 %508 }
 0x19b   :  { %1020 = vrsqrt.f32 %v588_v42  ;;  %v551_v48 = vmul.f32 0.0078125, %v531_v45  ;;  %v1328_v49 = vmul.f32 0.0078125, %v509_v46  ;;  %v574_v50 = vmax.f32 %v566_v43, 0.0 }
 0x19d   :  { %v567_v51 = vsub.f32 %v551_v48, %v559_v47  ;;  %v560_v52 = vmul.f32 %v1328_v49, %v1328_v49  ;;  %v590_v53 = vadd.f32 1e-05, %v574_v50 }
 0x19e   :  { %v511_v54 = vpop.xlane.xlu1 %510  ;;  %v533_v55 = vpop.xlane.xlu0 %532 }
 0x19f   :  { %v575_v56 = vmax.f32 %v567_v51, 0.0  ;;  %v1332_v58 = vmul.f32 0.0078125, %v511_v54  ;;  %v552_v59 = vmul.f32 0.0078125, %v533_v55  ;;  %1022 = vrsqrt.f32 %v590_v53 }
 0x1a1   :  { %v591_v61 = vadd.f32 1e-05, %v575_v56  ;;  %v568_v62 = vsub.f32 %v552_v59, %v560_v52  ;;  %v561_v0 = vmul.f32 %v1332_v58, %v1332_v58 }
 0x1a2   :  { %v535_v17 = vpop.xlane.xlu1 %534  ;;  %v513_v18 = vpop.xlane.xlu0 %512 }
 0x1a3   :  { %v1019_v19 = vpop.eup %1018  ;;  %1024 = vrsqrt.f32 %v591_v61  ;;  %v576_v22 = vmax.f32 %v568_v62, 0.0  ;;  %v553_v23 = vmul.f32 0.0078125, %v535_v17  ;;  %v1337_v24 = vmul.f32 0.0078125, %v513_v18 }
 0x1a4   :  { %v605_v27 = vmul.f32 %v1019_v19, %v581_v63 }
 0x1a5   :  { %v1021_v29 = vpop.eup %1020  ;;  %v592_v30 = vadd.f32 1e-05, %v576_v22  ;;  %v569_v32 = vsub.f32 %v553_v23, %v561_v0  ;;  %v562_v12 = vmul.f32 %v1337_v24, %v1337_v24 }
 0x1a6   :  { %v661_v21 = vmul.f32 %v1292_v1, %v605_v27  ;;  %v604_v33 = vmul.f32 %v1021_v29, %v580_v26  ;;  %v515_v34 = vpop.xlane.xlu1 %514  ;;  %v537_v35 = vpop.xlane.xlu0 %536  ;;  %v586_v29 = vsub.f32 %v1274_v57, %v1337_v24 }
 0x1a7   :  { %1026 = vrsqrt.f32 %v592_v30  ;;  %v577_v36 = vmax.f32 %v569_v32, 0.0  ;;  %v1343_v37 = vmul.f32 0.0078125, %v515_v34  ;;  %v554_v39 = vmul.f32 0.0078125, %v537_v35 }
 0x1a8   :  { %v717_v40 = vadd.f32 %v1308_v9, %v661_v21  ;;  %v660_v10 = vmul.f32 %v1304_v7, %v604_v33  ;;  %v583_v7 = vsub.f32 %v1258_v28, %v1322_v38  ;;  %v584_v28 = vsub.f32 %v1264_v41, %v1328_v49 }
 0x1a9   :  { %v593_v42 = vadd.f32 1e-05, %v577_v36  ;;  %v570_v43 = vsub.f32 %v554_v39, %v562_v12  ;;  %v1023_v45 = vpop.eup %1022  ;;  %v563_v47 = vmul.f32 %v1343_v37, %v1343_v37 }
 0x1aa   :  { %vm725_vm0 = vcmp.gt.f32.partialorder %v717_v40, 0.0  ;;  %v733_v1 = vmul.f32 0.2, %v717_v40  ;;  %v716_v46 = vadd.f32 %v1310_v11, %v660_v10  ;;  %v539_v48 = vpop.xlane.xlu1 %538  ;;  %v606_v50 = vmul.f32 %v1023_v45, %v582_v20 }
 0x1ab   :  { %1028 = vrsqrt.f32 %v593_v42  ;;  %v578_v51 = vmax.f32 %v570_v43, 0.0  ;;  %v555_v9 = vmul.f32 0.0078125, %v539_v48 }
 0x1ac   :  { %vm724_vm1 = vcmp.gt.f32.partialorder %v716_v46, 0.0  ;;  %v732_v25 = vmul.f32 0.2, %v716_v46  ;;  %v662_v52 = vmul.f32 %v1294_v2, %v606_v50  ;;  %v741_v11 = vsel %vm725_vm0, %v717_v40, %v733_v1 }
 0x1ad   :  { %v1025_v31 = vpop.eup %1024  ;;  %v594_v53 = vadd.f32 1e-05, %v578_v51  ;;  %v571_v54 = vsub.f32 %v555_v9, %v563_v47 }
 0x1ae   :  { %v607_v55 = vmul.f32 %v1025_v31, %v583_v7  ;;  %v740_v56 = vsel %vm724_vm1, %v716_v46, %v732_v25  ;;  %v718_v59 = vadd.f32 %v1314_v14, %v662_v52  ;;  %v585_v14 = vsub.f32 %v1268_v44, %v1332_v58  ;;  %v709_v21 = vpop.permute.xlu1 %708 }
 0x1af   :  { %1030 = vrsqrt.f32 %v594_v53  ;;  %v579_v61 = vmax.f32 %v571_v54, 0.0  ;;  %v859_v62 = vpack.c.bf16 %v741_v11, %v740_v56 }
 0x1b0   :  { %v663_v63 = vmul.f32 %v1296_v3, %v607_v55  ;;  %v734_v18 = vmul.f32 0.2, %v718_v59  ;;  %vm726_vm2 = vcmp.gt.f32.partialorder %v718_v59, 0.0 }
 0x1b1   :  { %v1027_v38 = vpop.eup %1026  ;;  %v595_v0 = vadd.f32 1e-05, %v579_v61  ;;  %860 = vst [vmem:[%s1389_s4] sm:$0xff] %v859_v62  }
 0x1b2   :  { %v719_v2 = vadd.f32 %v1312_v13, %v663_v63  ;;  %v608_v17 = vmul.f32 %v1027_v38, %v584_v28  ;;  %v742_v23 = vsel %vm726_vm2, %v718_v59, %v734_v18 }
 0x1b3   :  { %1032 = vrsqrt.f32 %v595_v0 }
 0x1b4   :  { %v664_v3 = vmul.f32 %v1298_v4, %v608_v17  ;;  %vm727_vm3 = vcmp.gt.f32.partialorder %v719_v2, 0.0  ;;  %v735_v19 = vmul.f32 0.2, %v719_v2 }
 0x1b5   :  { %v1029_v41 = vpop.eup %1028 }
 0x1b6   :  { %v720_v49 = vadd.f32 %v1318_v16, %v664_v3  ;;  %v609_v22 = vmul.f32 %v1029_v41, %v585_v14  ;;  %v743_v26 = vsel %vm727_vm3, %v719_v2, %v735_v19  ;;  %v587_v16 = vsub.f32 %v1278_v60, %v1343_v37 }
 0x1b7   :  { %v864_v27 = vpack.c.bf16 %v743_v26, %v742_v23 }
 0x1b8   :  { %v665_v13 = vmul.f32 %v1300_v5, %v609_v22  ;;  %v736_v58 = vmul.f32 0.2, %v720_v49  ;;  %vm728_vm4 = vcmp.gt.f32.partialorder %v720_v49, 0.0 }
 0x1b9   :  { %v1031_v30 = vpop.eup %1030  ;;  %876 = vst [vmem:[%s1389_s4 + $0x8] sm:$0xff] %v864_v27  }
 0x1ba   :  { %v721_v44 = vadd.f32 %v1316_v15, %v665_v13  ;;  %v610_v4 = vmul.f32 %v1031_v30, %v586_v29  ;;  %v744_v33 = vsel %vm728_vm4, %v720_v49, %v736_v58  ;;  %v714_v15 = vpop.permute.xlu0 %713 }
 0x1bc   :  { %v666_v32 = vmul.f32 %v1302_v6, %v610_v4  ;;  %vm729_vm5 = vcmp.gt.f32.partialorder %v721_v44, 0.0  ;;  %v737_v5 = vmul.f32 0.2, %v721_v44 }
 0x1bd   :  { %v1033_v12 = vpop.eup %1032 }
 0x1be   :  { %v722_v57 = vadd.f32 %v709_v21, %v666_v32  ;;  %v611_v24 = vmul.f32 %v1033_v12, %v587_v16  ;;  %v745_v34 = vsel %vm729_vm5, %v721_v44, %v737_v5 }
 0x1bf   :  { %v869_v35 = vpack.c.bf16 %v745_v34, %v744_v33 }
 0x1c0   :  { %v667_v36 = vmul.f32 %v1306_v8, %v611_v24  ;;  %v738_v39 = vmul.f32 0.2, %v722_v57  ;;  %vm730_vm6 = vcmp.gt.f32.partialorder %v722_v57, 0.0 }
 0x1c1   :  { %877 = vst [vmem:[%s1389_s4 + $0x10] sm:$0xff] %v869_v35  }
 0x1c2   :  { %v723_v60 = vadd.f32 %v714_v15, %v667_v36  ;;  %v746_v37 = vsel %vm730_vm6, %v722_v57, %v738_v39 }
 0x1c4   :  { %vm731_vm7 = vcmp.gt.f32.partialorder %v723_v60, 0.0  ;;  %v739_v6 = vmul.f32 0.2, %v723_v60 }
 0x1c6   :  { %v747_v40 = vsel %vm731_vm7, %v723_v60, %v739_v6 }
 0x1c7   :  { %v874_v10 = vpack.c.bf16 %v747_v40, %v746_v37 }
 0x1c9   :  { %878 = vst [vmem:[%s1389_s4 + $0x18] sm:$0xff] %v874_v10  }

// kernel: discriminator_forward.9
= control target key start
LH: loop header
LB: loop body
LE: loop exit
PB: predicated region body
PF: predicated region fallthrough
CT: control target
= control target key end

     0   :  { %v2829_v52 = vmov 0   ;;  %vm1533_vm0 = vcmask 261120   ;;  %s3871_s0 = inlined_call_operand.vmem [shape: bf16[1152,32], index: 0, kind: input, shape index: {}]   ;;  %s3872_s1 = inlined_call_operand.vmem [shape: bf16[128,1152], index: 1, kind: input, shape index: {}]   ;;  %s3873_s2 = inlined_call_operand.vmem [shape: f32[128,1], index: 2, kind: input, shape index: {}]   ;;  %s3874_s3 = inlined_call_operand.vmem [shape: f32[128,1], index: 3, kind: input, shape index: {}]   ;;  %s3875_s4 = inlined_call_operand.vmem [shape: f32[128,32], index: 4, kind: input, shape index: {}]   ;;  %s3876_s5 = inlined_call_operand.vmem [shape: f32[2,32], index: 5, kind: input, shape index: {}]   ;;  %s3877_s6 = inlined_call_operand.vmem [shape: f32[2,1], index: 6, kind: output, shape index: {}]  }
   0x1   :  { %v2617_v0 = vld [vmem:[%s3871_s0 + $0x40] sm:$0xff]   ;;  %v2621_v4 = vld [vmem:[%s3871_s0 + $0x48] sm:$0xff]   ;;  %v2625_v8 = vld [vmem:[%s3871_s0 + $0x50] sm:$0xff]   ;;  %2616 = vset.pattern.permute.xlu1 %v2829_v52  ;;  %2615 = vset.pattern.permute.xlu0 %v2829_v52 }
   0x2   :  { %v2618_v1 = vld [vmem:[%s3871_s0 + $0xc0] sm:$0xff]   ;;  %2294 = vmatprep.subr.bf16.mxu0 %v2617_v0  ;;  %v2622_v5 = vld [vmem:[%s3871_s0 + $0xc8] sm:$0xff]   ;;  %v2626_v9 = vld [vmem:[%s3871_s0 + $0xd0] sm:$0xff]  }
   0x3   :  { %v2619_v2 = vld [vmem:[%s3871_s0] sm:$0xff]   ;;  %2358 = vmatprep.subr.bf16.mxu1 %v2618_v1  ;;  %v2623_v6 = vld [vmem:[%s3871_s0 + $0x8] sm:$0xff]   ;;  %v2627_v10 = vld [vmem:[%s3871_s0 + $0x10] sm:$0xff]  }
   0x4   :  { %v2620_v3 = vld [vmem:[%s3871_s0 + $0x80] sm:$0xff]   ;;  %2295 = vmatpush3.bf16.msra.mxu0 %v2619_v2  ;;  %v2624_v7 = vld [vmem:[%s3871_s0 + $0x88] sm:$0xff]   ;;  %v2628_v11 = vld [vmem:[%s3871_s0 + $0x90] sm:$0xff]  }
   0x5   :  { %2359 = vmatpush3.bf16.msra.mxu1 %v2620_v3  ;;  %2296 = vmatprep.subr.bf16.mxu0 %v2621_v4  ;;  %v2629_v12 = vld [vmem:[%s3871_s0 + $0x58] sm:$0xff]   ;;  %v2633_v16 = vld [vmem:[%s3871_s0 + $0x60] sm:$0xff]   ;;  %v2637_v20 = vld [vmem:[%s3871_s0 + $0x68] sm:$0xff]  }
   0x6   :  { %2360 = vmatprep.subr.bf16.mxu1 %v2622_v5  ;;  %v2630_v13 = vld [vmem:[%s3871_s0 + $0xd8] sm:$0xff]   ;;  %v2634_v17 = vld [vmem:[%s3871_s0 + $0xe0] sm:$0xff]   ;;  %v2638_v21 = vld [vmem:[%s3871_s0 + $0xe8] sm:$0xff]  }
   0x7   :  { %v2631_v14 = vld [vmem:[%s3871_s0 + $0x18] sm:$0xff]   ;;  %v2635_v18 = vld [vmem:[%s3871_s0 + $0x20] sm:$0xff]   ;;  %v2639_v22 = vld [vmem:[%s3871_s0 + $0x28] sm:$0xff]  }
   0x8   :  { %2297 = vmatpush3.bf16.msra.mxu0 %v2623_v6  ;;  %v2632_v15 = vld [vmem:[%s3871_s0 + $0x98] sm:$0xff]   ;;  %v2636_v19 = vld [vmem:[%s3871_s0 + $0xa0] sm:$0xff]   ;;  %v2640_v23 = vld [vmem:[%s3871_s0 + $0xa8] sm:$0xff]  }
   0x9   :  { %2361 = vmatpush3.bf16.msra.mxu1 %v2624_v7  ;;  %2298 = vmatprep.subr.bf16.mxu0 %v2625_v8  ;;  %v2641_v24 = vld [vmem:[%s3871_s0 + $0x70] sm:$0xff]   ;;  %v2645_v28 = vld [vmem:[%s3871_s0 + $0x78] sm:$0xff]   ;;  %v2649_v32 = vld [vmem:[%s3872_s1] ss:$36 sps:$4 sm:$0xff]  }
   0xa   :  { %2362 = vmatprep.subr.bf16.mxu1 %v2626_v9  ;;  %v2642_v25 = vld [vmem:[%s3871_s0 + $0xf0] sm:$0xff]   ;;  %v2646_v29 = vld [vmem:[%s3871_s0 + $0xf8] sm:$0xff]   ;;  %v2651_v33 = vld [vmem:[%s3872_s1 + $0x4] ss:$36 sps:$4 sm:$0xff]  }
   0xb   :  { %v2643_v26 = vld [vmem:[%s3871_s0 + $0x30] sm:$0xff]   ;;  %v2647_v30 = vld [vmem:[%s3871_s0 + $0x38] sm:$0xff]   ;;  %v2652_v34 = vld [vmem:[%s3872_s1 + $0x8] ss:$36 sps:$4 sm:$0xff]   ;;  %1080 = vmatprep.mubr.bf16.mxu0 %v2651_v33 }
   0xc   :  { %2299 = vmatpush3.bf16.msra.mxu0 %v2627_v10  ;;  %v2644_v27 = vld [vmem:[%s3871_s0 + $0xb0] sm:$0xff]   ;;  %v2648_v31 = vld [vmem:[%s3871_s0 + $0xb8] sm:$0xff]   ;;  %v2655_v36 = vld [vmem:[%s3871_s0 + $0x140] sm:$0xff]  }
   0xd   :  { %2363 = vmatpush3.bf16.msra.mxu1 %v2628_v11  ;;  %2300 = vmatprep.subr.bf16.mxu0 %v2629_v12  ;;  %v2654_v35 = vld [vmem:[%s3872_s1 + $0xc] ss:$36 sps:$4 sm:$0xff]   ;;  %v2656_v37 = vld [vmem:[%s3871_s0 + $0x100] sm:$0xff]   ;;  %v2659_v39 = vld [vmem:[%s3872_s1 + $0x54] ss:$36 sps:$4 sm:$0xff]  }
   0xe   :  { %2364 = vmatprep.subr.bf16.mxu1 %v2630_v13  ;;  %1177 = vmatprep.mubr.bf16.mxu1 %v2654_v35  ;;  %v2657_v38 = vld [vmem:[%s3872_s1 + $0x4c] ss:$36 sps:$4 sm:$0xff]   ;;  %v2661_v40 = vld [vmem:[%s3871_s0 + $0x1c0] sm:$0xff]   ;;  %v2667_v46 = vld [vmem:[%s3872_s1 + $0x94] ss:$36 sps:$4 sm:$0xff]  }
   0xf   :  { %v2662_v41 = vld [vmem:[%s3872_s1 + $0x48] ss:$36 sps:$4 sm:$0xff]   ;;  %v2663_v42 = vld [vmem:[%s3872_s1 + $0x50] ss:$36 sps:$4 sm:$0xff]   ;;  %v2665_v44 = vld [vmem:[%s3871_s0 + $0x180] sm:$0xff]  }
  0x10   :  { %2301 = vmatpush3.bf16.msra.mxu0 %v2631_v14  ;;  %v2664_v43 = vld [vmem:[%s3871_s0 + $0x148] sm:$0xff]   ;;  %v2669_v47 = vld [vmem:[%s3872_s1 + $0x9c] ss:$36 sps:$4 sm:$0xff]   ;;  %v2672_v49 = vld [vmem:[%s3872_s1 + $0x90] ss:$36 sps:$4 sm:$0xff]  }
  0x11   :  { %2365 = vmatpush3.bf16.msra.mxu1 %v2632_v15  ;;  %2302 = vmatprep.subr.bf16.mxu0 %v2633_v16  ;;  %v2666_v45 = vld [vmem:[%s3871_s0 + $0x108] sm:$0xff]   ;;  %v2673_v50 = vld [vmem:[%s3872_s1 + $0x98] ss:$36 sps:$4 sm:$0xff]   ;;  %v2674_v51 = vld [vmem:[%s3871_s0 + $0x150] sm:$0xff]  }
  0x12   :  { %2366 = vmatprep.subr.bf16.mxu1 %v2634_v17  ;;  %v2671_v48 = vld [vmem:[%s3871_s0 + $0x1c8] sm:$0xff]   ;;  %v2676_v54 = vld [vmem:[%s3871_s0 + $0x110] sm:$0xff]   ;;  %v2677_v55 = vld [vmem:[%s3872_s1 + $0xdc] ss:$36 sps:$4 sm:$0xff]  }
  0x13   :  { %v2675_v53 = vld [vmem:[%s3871_s0 + $0x188] sm:$0xff]   ;;  %v2681_v57 = vld [vmem:[%s3871_s0 + $0x1d0] sm:$0xff]   ;;  %v2682_v58 = vld [vmem:[%s3872_s1 + $0xd8] ss:$36 sps:$4 sm:$0xff]  }
  0x14   :  { %2303 = vmatpush3.bf16.msra.mxu0 %v2635_v18  ;;  %v2679_v56 = vld [vmem:[%s3872_s1 + $0xe4] ss:$36 sps:$4 sm:$0xff]   ;;  %v2684_v59 = vld [vmem:[%s3871_s0 + $0x158] sm:$0xff]   ;;  %v2685_v61 = vld [vmem:[%s3871_s0 + $0x190] sm:$0xff]  }
  0x15   :  { %2367 = vmatpush3.bf16.msra.mxu1 %v2636_v19  ;;  %2304 = vmatprep.subr.bf16.mxu0 %v2637_v20  ;;  %v2683_v60 = vld [vmem:[%s3872_s1 + $0xe0] ss:$36 sps:$4 sm:$0xff]   ;;  %v2686_v62 = vld [vmem:[%s3871_s0 + $0x118] sm:$0xff]   ;;  %v2689_v0 = vld [vmem:[%s3872_s1 + $0x12c] ss:$36 sps:$4 sm:$0xff]  }
  0x16   :  { %2368 = vmatprep.subr.bf16.mxu1 %v2638_v21  ;;  %v2687_v63 = vld [vmem:[%s3872_s1 + $0x124] ss:$36 sps:$4 sm:$0xff]   ;;  %v2691_v1 = vld [vmem:[%s3871_s0 + $0x1d8] sm:$0xff]   ;;  %v2697_v7 = vld [vmem:[%s3872_s1 + $0x16c] ss:$36 sps:$4 sm:$0xff]  }
  0x17   :  { %v2694_v2 = vld [vmem:[%s3871_s0 + $0x160] sm:$0xff]   ;;  %v2695_v4 = vld [vmem:[%s3871_s0 + $0x198] sm:$0xff]   ;;  %v2693_v6 = vld [vmem:[%s3872_s1 + $0x128] ss:$36 sps:$4 sm:$0xff]  }
  0x18   :  { %2305 = vmatpush3.bf16.msra.mxu0 %v2639_v22  ;;  %v2692_v3 = vld [vmem:[%s3872_s1 + $0x120] ss:$36 sps:$4 sm:$0xff]   ;;  %v2699_v8 = vld [vmem:[%s3872_s1 + $0x174] ss:$36 sps:$4 sm:$0xff]   ;;  %v2704_v10 = vld [vmem:[%s3871_s0 + $0x168] sm:$0xff]  }
  0x19   :  { %2369 = vmatpush3.bf16.msra.mxu1 %v2640_v23  ;;  %2306 = vmatprep.subr.bf16.mxu0 %v2641_v24  ;;  %v2696_v5 = vld [vmem:[%s3871_s0 + $0x120] sm:$0xff]   ;;  %v2706_v12 = vld [vmem:[%s3871_s0 + $0x128] sm:$0xff]   ;;  %v2703_v14 = vld [vmem:[%s3872_s1 + $0x170] ss:$36 sps:$4 sm:$0xff]  }
  0x1a   :  { %2370 = vmatprep.subr.bf16.mxu1 %v2642_v25  ;;  %v2701_v9 = vld [vmem:[%s3871_s0 + $0x1e0] sm:$0xff]   ;;  %v2702_v13 = vld [vmem:[%s3872_s1 + $0x168] ss:$36 sps:$4 sm:$0xff]   ;;  %v2707_v16 = vld [vmem:[%s3872_s1 + $0x1b4] ss:$36 sps:$4 sm:$0xff]  }
  0x1b   :  { %v2705_v11 = vld [vmem:[%s3871_s0 + $0x1a0] sm:$0xff]   ;;  %v2711_v15 = vld [vmem:[%s3871_s0 + $0x1e8] sm:$0xff]   ;;  %v2714_v18 = vld [vmem:[%s3871_s0 + $0x170] sm:$0xff]  }
  0x1c   :  { %2307 = vmatpush3.bf16.msra.mxu0 %v2643_v26  ;;  %v2709_v17 = vld [vmem:[%s3872_s1 + $0x1bc] ss:$36 sps:$4 sm:$0xff]   ;;  %v2715_v19 = vld [vmem:[%s3871_s0 + $0x1a8] sm:$0xff]   ;;  %v2716_v20 = vld [vmem:[%s3871_s0 + $0x130] sm:$0xff]  }
  0x1d   :  { %2371 = vmatpush3.bf16.msra.mxu1 %v2644_v27  ;;  %2308 = vmatprep.subr.bf16.mxu0 %v2645_v28  ;;  %v2712_v21 = vld [vmem:[%s3872_s1 + $0x1b0] ss:$36 sps:$4 sm:$0xff]   ;;  %v2713_v22 = vld [vmem:[%s3872_s1 + $0x1b8] ss:$36 sps:$4 sm:$0xff]   ;;  %v2719_v25 = vld [vmem:[%s3872_s1 + $0x204] ss:$36 sps:$4 sm:$0xff]  }
  0x1e   :  { %2372 = vmatprep.subr.bf16.mxu1 %v2646_v29  ;;  %v2717_v23 = vld [vmem:[%s3872_s1 + $0x1fc] ss:$36 sps:$4 sm:$0xff]   ;;  %v2721_v24 = vld [vmem:[%s3871_s0 + $0x1f0] sm:$0xff]   ;;  %v2770_v52 = vld [vmem:[%s3871_s0 + $0x228] sm:$0xff]  }
  0x1f   :  { %v2724_v26 = vld [vmem:[%s3871_s0 + $0x178] sm:$0xff]   ;;  %v2725_v27 = vld [vmem:[%s3871_s0 + $0x1b0] sm:$0xff]   ;;  %v2735_v33 = vld [vmem:[%s3871_s0 + $0x200] sm:$0xff]  }
  0x20   :  { %2309 = vmatpush3.bf16.msra.mxu0 %v2647_v30  ;;  %v2726_v28 = vld [vmem:[%s3871_s0 + $0x138] sm:$0xff]  }
  0x21   :  { %2373 = vmatpush3.bf16.msra.mxu1 %v2648_v31  ;;  %2422 = vmatprep.subr.bf16.mxu0 %v2655_v36  ;;  %v2727_v29 = vld [vmem:[%s3871_s0 + $0x1f8] sm:$0xff]   ;;  %v2729_v36 = vld [vmem:[%s3872_s1 + $0x10] ss:$36 sps:$4 sm:$0xff]  }
  0x22   :  { %2486 = vmatprep.subr.bf16.mxu1 %v2661_v40  ;;  %v2728_v30 = vld [vmem:[%s3871_s0 + $0x1b8] sm:$0xff]   ;;  %v2742_v40 = vld [vmem:[%s3871_s0 + $0x208] sm:$0xff]  }
  0x23   :  { %1081 = vmatmul.mubr.bf16.vlgmr.msra.gmra.mrb[0].mxu0 %v2649_v32  ;;  %v2722_v31 = vld [vmem:[%s3872_s1 + $0x1f8] ss:$36 sps:$4 sm:$0xff]   ;;  %v2723_v32 = vld [vmem:[%s3872_s1 + $0x200] ss:$36 sps:$4 sm:$0xff]  }
  0x24   :  { %1178 = vmatmul.mubr.bf16.vlgmr.msra.gmra.mrb[0].mxu1 %v2652_v34  ;;  %2423 = vmatpush3.bf16.msra.mxu0 %v2656_v37  ;;  %v2731_v34 = vld [vmem:[%s3872_s1 + $0x14] ss:$36 sps:$4 sm:$0xff]   ;;  %v2734_v35 = vld [vmem:[%s3872_s1 + $0x1c] ss:$36 sps:$4 sm:$0xff]  }
  0x25   :  { %1088 = vmatprep.mubr.bf16.mxu0 %v2657_v38  ;;  %1185 = vmatprep.mubr.bf16.mxu1 %v2659_v39  ;;  %v2732_v37 = vld [vmem:[%s3872_s1 + $0x18] ss:$36 sps:$4 sm:$0xff]   ;;  %v2738_v39 = vld [vmem:[%s3872_s1 + $0x64] ss:$36 sps:$4 sm:$0xff]  }
  0x26   :  { %2424 = vmatprep.subr.bf16.mxu0 %v2664_v43  ;;  %2487 = vmatpush3.bf16.msra.mxu1 %v2665_v44  ;;  %v2736_v38 = vld [vmem:[%s3872_s1 + $0x5c] ss:$36 sps:$4 sm:$0xff]   ;;  %v2743_v44 = vld [vmem:[%s3872_s1 + $0xa4] ss:$36 sps:$4 sm:$0xff]  }
  0x27   :  { %2488 = vmatprep.subr.bf16.mxu1 %v2671_v48  ;;  %v2741_v43 = vld [vmem:[%s3872_s1 + $0x60] ss:$36 sps:$4 sm:$0xff]  }
  0x28   :  { %2425 = vmatpush3.bf16.msra.mxu0 %v2666_v45  ;;  %v2745_v45 = vld [vmem:[%s3872_s1 + $0xac] ss:$36 sps:$4 sm:$0xff]   ;;  %v2747_v48 = vld [vmem:[%s3872_s1 + $0xa0] ss:$36 sps:$4 sm:$0xff]  }
  0x29   :  { %2426 = vmatprep.subr.bf16.mxu0 %v2674_v51  ;;  %v2752_v51 = vld [vmem:[%s3872_s1 + $0xf4] ss:$36 sps:$4 sm:$0xff]  }
  0x2a   :  { %2489 = vmatpush3.bf16.msra.mxu1 %v2675_v53  ;;  %v2754_v53 = vld [vmem:[%s3872_s1 + $0xe8] ss:$36 sps:$4 sm:$0xff]  }
  0x2b   :  { %1089 = vmatmul.mubr.bf16.gmra.mrb[4].mxu0 %v2662_v41  ;;  %2490 = vmatprep.subr.bf16.mxu1 %v2681_v57  ;;  %v2749_v41 = vld [vmem:[%s3871_s0 + $0x210] sm:$0xff]   ;;  %v2759_v57 = vld [vmem:[%s3872_s1 + $0x13c] ss:$36 sps:$4 sm:$0xff]  }
  0x2c   :  { %1186 = vmatmul.mubr.bf16.gmra.mrb[4].mxu1 %v2663_v42  ;;  %1096 = vmatprep.mubr.bf16.mxu0 %v2667_v46  ;;  %v2740_v42 = vld [vmem:[%s3872_s1 + $0x58] ss:$36 sps:$4 sm:$0xff]  }
  0x2d   :  { %1193 = vmatprep.mubr.bf16.mxu1 %v2669_v47  ;;  %2427 = vmatpush3.bf16.msra.mxu0 %v2676_v54  ;;  %v2756_v46 = vld [vmem:[%s3871_s0 + $0x218] sm:$0xff]   ;;  %v2763_v47 = vld [vmem:[%s3871_s0 + $0x220] sm:$0xff]   ;;  %v2777_v54 = vld [vmem:[%s3871_s0 + $0x230] sm:$0xff]  }
  0x2e   :  { %2428 = vmatprep.subr.bf16.mxu0 %v2684_v59  ;;  %2491 = vmatpush3.bf16.msra.mxu1 %v2685_v61  ;;  %v1791_v59 = vld [vmem:[%s3873_s2 + $0x8] sm:$0xff]  ;;  %v2762_v61 = vld [vmem:[%s3872_s1 + $0x138] ss:$36 sps:$4 sm:$0xff]  }
  0x2f   :  { %2492 = vmatprep.subr.bf16.mxu1 %v2691_v1  ;;  %1813 = vperm.xlu1 %2616, %v1791_v59   ;;  %v1902_v1 = vld [vmem:[%s3874_s3] sm:$0xff] }
  0x31   :  { %2429 = vmatpush3.bf16.msra.mxu0 %v2686_v62  ;;  %v2764_v62 = vld [vmem:[%s3872_s1 + $0x17c] ss:$36 sps:$4 sm:$0xff]  }
  0x32   :  { %2430 = vmatprep.subr.bf16.mxu0 %v2694_v2  ;;  %2493 = vmatpush3.bf16.msra.mxu1 %v2695_v4  ;;  %v2768_v2 = vld [vmem:[%s3872_s1 + $0x178] ss:$36 sps:$4 sm:$0xff]   ;;  %v2771_v4 = vld [vmem:[%s3872_s1 + $0x1c4] ss:$36 sps:$4 sm:$0xff]  }
  0x33   :  { %1097 = vmatmul.mubr.bf16.gmra.mrb[8].mxu0 %v2672_v49  ;;  %2494 = vmatprep.subr.bf16.mxu1 %v2701_v9  ;;  %v2748_v49 = vld [vmem:[%s3872_s1 + $0xa8] ss:$36 sps:$4 sm:$0xff]  }
  0x34   :  { %1194 = vmatmul.mubr.bf16.gmra.mrb[8].mxu1 %v2673_v50  ;;  %1104 = vmatprep.mubr.bf16.mxu0 %v2677_v55  ;;  %v2750_v50 = vld [vmem:[%s3872_s1 + $0xec] ss:$36 sps:$4 sm:$0xff]  }
  0x35   :  { %1201 = vmatprep.mubr.bf16.mxu1 %v2679_v56  ;;  %2431 = vmatpush3.bf16.msra.mxu0 %v2696_v5  ;;  %v2755_v55 = vld [vmem:[%s3872_s1 + $0xf0] ss:$36 sps:$4 sm:$0xff]   ;;  %v1903_v5 = vld [vmem:[%s3874_s3 + $0x8] sm:$0xff] }
  0x36   :  { %2432 = vmatprep.subr.bf16.mxu0 %v2704_v10  ;;  %2495 = vmatpush3.bf16.msra.mxu1 %v2705_v11  ;;  %v2757_v56 = vld [vmem:[%s3872_s1 + $0x134] ss:$36 sps:$4 sm:$0xff]   ;;  %v2776_v9 = vld [vmem:[%s3872_s1 + $0x1c8] ss:$36 sps:$4 sm:$0xff]  }
  0x37   :  { %2496 = vmatprep.subr.bf16.mxu1 %v2711_v15  ;;  %v2778_v10 = vld [vmem:[%s3872_s1 + $0x20c] ss:$36 sps:$4 sm:$0xff]  }
  0x38   :  { %v1904_v11 = vld [vmem:[%s3874_s3 + $0x10] sm:$0xff]  ;;  %v2782_v15 = vld [vmem:[%s3872_s1 + $0x208] ss:$36 sps:$4 sm:$0xff]  }
  0x39   :  { %2433 = vmatpush3.bf16.msra.mxu0 %v2706_v12  ;;  %v2780_v12 = vld [vmem:[%s3872_s1 + $0x214] ss:$36 sps:$4 sm:$0xff]  }
  0x3a   :  { %2434 = vmatprep.subr.bf16.mxu0 %v2714_v18  ;;  %2497 = vmatpush3.bf16.msra.mxu1 %v2715_v19  ;;  %v1905_v18 = vld [vmem:[%s3874_s3 + $0x18] sm:$0xff]  ;;  %v1795_v19 = vld [vmem:[%s3873_s2 + $0x28] sm:$0xff] }
  0x3b   :  { %1105 = vmatmul.mubr.bf16.gmra.mrb[12].mxu0 %v2682_v58  ;;  %2498 = vmatprep.subr.bf16.mxu1 %v2721_v24  ;;  %v2784_v58 = vld [vmem:[%s3871_s0 + $0x238] sm:$0xff]   ;;  %v2788_v24 = vld [vmem:[%s3872_s1 + $0x188] ss:$36 sps:$4 sm:$0xff]  }
  0x3c   :  { %1202 = vmatmul.mubr.bf16.gmra.mrb[12].mxu1 %v2683_v60  ;;  %1112 = vmatprep.mubr.bf16.mxu0 %v2687_v63  ;;  %v2761_v60 = vld [vmem:[%s3872_s1 + $0x130] ss:$36 sps:$4 sm:$0xff]  }
  0x3d   :  { %1209 = vmatprep.mubr.bf16.mxu1 %v2689_v0  ;;  %2435 = vmatpush3.bf16.msra.mxu0 %v2716_v20  ;;  %v1792_v63 = vld [vmem:[%s3873_s2 + $0x10] sm:$0xff]  ;;  %v2766_v0 = vld [vmem:[%s3872_s1 + $0x184] ss:$36 sps:$4 sm:$0xff]  }
  0x3e   :  { %2436 = vmatprep.subr.bf16.mxu0 %v2724_v26  ;;  %2499 = vmatpush3.bf16.msra.mxu1 %v2725_v27  ;;  %v2786_v20 = vld [vmem:[%s3872_s1 + $0x140] ss:$36 sps:$4 sm:$0xff]   ;;  %v1907_v26 = vld [vmem:[%s3874_s3 + $0x28] sm:$0xff]  ;;  %v1797_v27 = vld [vmem:[%s3873_s2 + $0x38] sm:$0xff] }
  0x3f   :  { %2500 = vmatprep.subr.bf16.mxu1 %v2727_v29  ;;  %1818 = vperm.xlu1 %2616, %v1792_v63   ;;  %v1908_v29 = vld [vmem:[%s3874_s3 + $0x30] sm:$0xff] }
  0x41   :  { %2437 = vmatpush3.bf16.msra.mxu0 %v2726_v28  ;;  %v2790_v28 = vld [vmem:[%s3872_s1 + $0x1d0] ss:$36 sps:$4 sm:$0xff]  }
  0x42   :  { %2501 = vmatpush3.bf16.msra.mxu1 %v2728_v30  ;;  %2566 = vmatprep.subr.bf16.mxu0 %v2735_v33  ;;  %v1798_v30 = vld [vmem:[%s3873_s2 + $0x40] sm:$0xff] }
  0x43   :  { %1113 = vmatmul.mubr.bf16.gmra.mrb[16].mxu0 %v2692_v3  ;;  %2598 = vmatprep.subr.bf16.mxu1 %v2735_v33  ;;  %v2769_v3 = vld [vmem:[%s3872_s1 + $0x180] ss:$36 sps:$4 sm:$0xff]  }
  0x44   :  { %1210 = vmatmul.mubr.bf16.gmra.mrb[16].mxu1 %v2693_v6  ;;  %1120 = vmatprep.mubr.bf16.mxu0 %v2697_v7  ;;  %v2773_v6 = vld [vmem:[%s3872_s1 + $0x1cc] ss:$36 sps:$4 sm:$0xff]   ;;  %v1793_v7 = vld [vmem:[%s3873_s2 + $0x18] sm:$0xff] }
  0x45   :  { %1217 = vmatprep.mubr.bf16.mxu1 %v2699_v8  ;;  %1920 = vperm.xlu1 %2616, %v1902_v1   ;;  %v2775_v8 = vld [vmem:[%s3872_s1 + $0x1c0] ss:$36 sps:$4 sm:$0xff]  }
  0x49   :  { %1925 = vperm.xlu1 %2616, %v1903_v5  }
  0x4b   :  { %1121 = vmatmul.mubr.bf16.gmra.mrb[20].mxu0 %v2702_v13  ;;  %v1794_v13 = vld [vmem:[%s3873_s2 + $0x20] sm:$0xff] }
  0x4c   :  { %1218 = vmatmul.mubr.bf16.gmra.mrb[20].mxu1 %v2703_v14  ;;  %1128 = vmatprep.mubr.bf16.mxu0 %v2707_v16  ;;  %v1790_v14 = vld [vmem:[%s3873_s2] sm:$0xff]  ;;  %v2783_v16 = vld [vmem:[%s3872_s1 + $0x210] ss:$36 sps:$4 sm:$0xff]  }
  0x4d   :  { %1225 = vmatprep.mubr.bf16.mxu1 %v2709_v17  ;;  %1823 = vperm.xlu1 %2616, %v1793_v7   ;;  %v2785_v17 = vld [vmem:[%s3872_s1 + $0x20] ss:$36 sps:$4 sm:$0xff]  }
  0x4e   :  { %1808 = vperm.xlu0 %2615, %v1790_v14  }
  0x51   :  { %1930 = vperm.xlu1 %2616, %v1904_v11  }
  0x52   :  { %1833 = vperm.xlu0 %2615, %v1795_v19  }
  0x53   :  { %1129 = vmatmul.mubr.bf16.gmra.mrb[24].mxu0 %v2712_v21  ;;  %v1906_v21 = vld [vmem:[%s3874_s3 + $0x20] sm:$0xff] }
  0x54   :  { %1226 = vmatmul.mubr.bf16.gmra.mrb[24].mxu1 %v2713_v22  ;;  %1136 = vmatprep.mubr.bf16.mxu0 %v2717_v23  ;;  %v1796_v22 = vld [vmem:[%s3873_s2 + $0x30] sm:$0xff]  ;;  %v2787_v23 = vld [vmem:[%s3872_s1 + $0x68] ss:$36 sps:$4 sm:$0xff]  }
  0x55   :  { %1233 = vmatprep.mubr.bf16.mxu1 %v2719_v25  ;;  %1828 = vperm.xlu1 %2616, %v1794_v13   ;;  %v2789_v25 = vld [vmem:[%s3872_s1 + $0xb0] ss:$36 sps:$4 sm:$0xff]  }
  0x56   :  { %1838 = vperm.xlu0 %2615, %v1796_v22  }
  0x59   :  { %1935 = vperm.xlu1 %2616, %v1905_v18  }
  0x5a   :  { %1843 = vperm.xlu0 %2615, %v1797_v27  }
  0x5b   :  { %1137 = vmatmul.mubr.bf16.gmra.mrb[28].mxu0 %v2722_v31  ;;  %v2791_v31 = vld [vmem:[%s3872_s1 + $0xf8] ss:$36 sps:$4 sm:$0xff]  }
  0x5c   :  { %1234 = vmatmul.mubr.bf16.gmra.mrb[28].mxu1 %v2723_v32  ;;  %1274 = vmatprep.mubr.bf16.mxu0 %v2731_v34  ;;  %v2792_v32 = vld [vmem:[%s3872_s1 + $0x218] ss:$36 sps:$4 sm:$0xff]   ;;  %v1799_v34 = vld [vmem:[%s3873_s2 + $0x48] sm:$0xff] }
  0x5d   :  { %1371 = vmatprep.mubr.bf16.mxu1 %v2734_v35  ;;  %1940 = vperm.xlu1 %2616, %v1906_v21   ;;  %v1910_v35 = vld [vmem:[%s3874_s3 + $0x40] sm:$0xff] }
  0x5e   :  { %1848 = vperm.xlu0 %2615, %v1798_v30  }
  0x61   :  { %1945 = vperm.xlu1 %2616, %v1907_v26  }
  0x62   :  { %1853 = vperm.xlu0 %2615, %v1799_v34  }
  0x63   :  { %1275 = vmatmul.mubr.bf16.vlgmr.msra.gmra.mrb[32].mxu0 %v2729_v36  ;;  %v1800_v36 = vld [vmem:[%s3873_s2 + $0x50] sm:$0xff] }
  0x64   :  { %1372 = vmatmul.mubr.bf16.vlgmr.msra.gmra.mrb[32].mxu1 %v2732_v37  ;;  %2567 = vmatpush3.bf16.msra.mxu0 %v2735_v33  ;;  %v1911_v37 = vld [vmem:[%s3874_s3 + $0x48] sm:$0xff] }
  0x65   :  { %1282 = vmatprep.mubr.bf16.mxu0 %v2736_v38  ;;  %1379 = vmatprep.mubr.bf16.mxu1 %v2738_v39  ;;  %v1801_v38 = vld [vmem:[%s3873_s2 + $0x58] sm:$0xff]  ;;  %v1912_v39 = vld [vmem:[%s3874_s3 + $0x50] sm:$0xff] }
  0x66   :  { %2606 = vmatpush3.bf16.msra.mxu1 %v2735_v33  ;;  %2568 = vmatprep.subr.bf16.mxu0 %v2742_v40  ;;  %v1909_v33 = vld [vmem:[%s3874_s3 + $0x38] sm:$0xff] }
  0x67   :  { %2599 = vmatprep.subr.bf16.mxu1 %v2742_v40  ;;  %1950 = vperm.xlu1 %2616, %v1908_v29  }
  0x68   :  { %2569 = vmatpush3.bf16.msra.mxu0 %v2742_v40  ;;  %1858 = vperm.xlu0 %2615, %v1800_v36  }
  0x69   :  { %2570 = vmatprep.subr.bf16.mxu0 %v2749_v41 }
  0x6a   :  { %2607 = vmatpush3.bf16.msra.mxu1 %v2742_v40  ;;  %v1802_v40 = vld [vmem:[%s3873_s2 + $0x60] sm:$0xff] }
  0x6b   :  { %1283 = vmatmul.mubr.bf16.gmra.mrb[36].mxu0 %v2740_v42  ;;  %2600 = vmatprep.subr.bf16.mxu1 %v2749_v41  ;;  %v1803_v42 = vld [vmem:[%s3873_s2 + $0x68] sm:$0xff] }
  0x6c   :  { %1380 = vmatmul.mubr.bf16.gmra.mrb[36].mxu1 %v2741_v43  ;;  %1290 = vmatprep.mubr.bf16.mxu0 %v2743_v44 }
  0x6d   :  { %1387 = vmatprep.mubr.bf16.mxu1 %v2745_v45  ;;  %2571 = vmatpush3.bf16.msra.mxu0 %v2749_v41 }
  0x6e   :  { %2608 = vmatpush3.bf16.msra.mxu1 %v2749_v41  ;;  %2572 = vmatprep.subr.bf16.mxu0 %v2756_v46  ;;  %v1913_v41 = vld [vmem:[%s3874_s3 + $0x58] sm:$0xff] }
  0x6f   :  { %2601 = vmatprep.subr.bf16.mxu1 %v2756_v46  ;;  %1955 = vperm.xlu1 %2616, %v1909_v33  }
  0x70   :  { %1863 = vperm.xlu0 %2615, %v1801_v38  }
  0x71   :  { %2573 = vmatpush3.bf16.msra.mxu0 %v2756_v46 }
  0x72   :  { %2609 = vmatpush3.bf16.msra.mxu1 %v2756_v46  ;;  %2574 = vmatprep.subr.bf16.mxu0 %v2763_v47 }
  0x73   :  { %1291 = vmatmul.mubr.bf16.gmra.mrb[40].mxu0 %v2747_v48  ;;  %2602 = vmatprep.subr.bf16.mxu1 %v2763_v47 }
  0x74   :  { %1388 = vmatmul.mubr.bf16.gmra.mrb[40].mxu1 %v2748_v49  ;;  %1298 = vmatprep.mubr.bf16.mxu0 %v2750_v50 }
  0x75   :  { %1395 = vmatprep.mubr.bf16.mxu1 %v2752_v51  ;;  %2575 = vmatpush3.bf16.msra.mxu0 %v2763_v47 }
  0x76   :  { %2610 = vmatpush3.bf16.msra.mxu1 %v2763_v47  ;;  %2576 = vmatprep.subr.bf16.mxu0 %v2770_v52 }
  0x77   :  { %2603 = vmatprep.subr.bf16.mxu1 %v2770_v52  ;;  %1960 = vperm.xlu1 %2616, %v1910_v35  }
  0x78   :  { %1868 = vperm.xlu0 %2615, %v1802_v40  }
  0x79   :  { %2577 = vmatpush3.bf16.msra.mxu0 %v2770_v52 }
  0x7a   :  { %2611 = vmatpush3.bf16.msra.mxu1 %v2770_v52  ;;  %2578 = vmatprep.subr.bf16.mxu0 %v2777_v54 }
  0x7b   :  { %1299 = vmatmul.mubr.bf16.gmra.mrb[44].mxu0 %v2754_v53  ;;  %2604 = vmatprep.subr.bf16.mxu1 %v2777_v54 }
  0x7c   :  { %1396 = vmatmul.mubr.bf16.gmra.mrb[44].mxu1 %v2755_v55  ;;  %1306 = vmatprep.mubr.bf16.mxu0 %v2757_v56 }
  0x7d   :  { %1403 = vmatprep.mubr.bf16.mxu1 %v2759_v57  ;;  %2579 = vmatpush3.bf16.msra.mxu0 %v2777_v54 }
  0x7e   :  { %2612 = vmatpush3.bf16.msra.mxu1 %v2777_v54  ;;  %2580 = vmatprep.subr.bf16.mxu0 %v2784_v58 }
  0x7f   :  { %2605 = vmatprep.subr.bf16.mxu1 %v2784_v58  ;;  %1965 = vperm.xlu1 %2616, %v1911_v37  }
  0x80   :  { %1873 = vperm.xlu0 %2615, %v1803_v42  }
  0x81   :  { %2581 = vmatpush3.bf16.msra.mxu0 %v2784_v58 }
  0x82   :  { %2613 = vmatpush3.bf16.msra.mxu1 %v2784_v58 }
  0x83   :  { %1307 = vmatmul.mubr.bf16.gmra.mrb[48].mxu0 %v2761_v60  ;;  %1970 = vperm.xlu1 %2616, %v1912_v39  }
  0x84   :  { %1404 = vmatmul.mubr.bf16.gmra.mrb[48].mxu1 %v2762_v61  ;;  %1314 = vmatprep.mubr.bf16.mxu0 %v2764_v62 }
  0x85   :  { %1411 = vmatprep.mubr.bf16.mxu1 %v2766_v0 }
  0x87   :  { %1975 = vperm.xlu1 %2616, %v1913_v41  }
  0x8b   :  { %1315 = vmatmul.mubr.bf16.gmra.mrb[52].mxu0 %v2768_v2 }
  0x8c   :  { %1412 = vmatmul.mubr.bf16.gmra.mrb[52].mxu1 %v2769_v3  ;;  %1322 = vmatprep.mubr.bf16.mxu0 %v2771_v4 }
  0x8d   :  { %1419 = vmatprep.mubr.bf16.mxu1 %v2773_v6 }
  0x93   :  { %1323 = vmatmul.mubr.bf16.gmra.mrb[56].mxu0 %v2775_v8 }
  0x94   :  { %1420 = vmatmul.mubr.bf16.gmra.mrb[56].mxu1 %v2776_v9  ;;  %1330 = vmatprep.mubr.bf16.mxu0 %v2778_v10 }
  0x95   :  { %1427 = vmatprep.mubr.bf16.mxu1 %v2780_v12 }
  0x9b   :  { %1331 = vmatmul.mubr.bf16.gmra.mrb[60].mxu0 %v2782_v15 }
  0x9c   :  { %1428 = vmatmul.mubr.bf16.gmra.mrb[60].mxu1 %v2783_v16  ;;  %2582 = vmatprep.mubr.bf16.mxu0 %v2785_v17 }
  0x9d   :  { %2590 = vmatprep.mubr.bf16.mxu1 %v2786_v20 }
  0xa3   :  { %2583 = vmatmul.mubr.bf16.vlgmr.msra.gmra.mrb[64].mxu0 %v2787_v23 }
  0xa4   :  { %2591 = vmatmul.mubr.bf16.vlgmr.msra.gmra.mrb[64].mxu1 %v2788_v24  ;;  %2586 = vmatprep.mubr.bf16.mxu0 %v2789_v25 }
  0xa5   :  { %2594 = vmatprep.mubr.bf16.mxu1 %v2790_v28 }
  0xab   :  { %2587 = vmatmul.mubr.bf16.gmra.mrb[68].mxu0 %v2791_v31 }
  0xac   :  { %2595 = vmatmul.mubr.bf16.gmra.mrb[68].mxu1 %v2792_v32 }
  0xf6   :  { %v2310_v43 = vpop.f32.mrb[0].mxu0 }
  0xf7   :  { %v2374_v44 = vpop.f32.mrb[0].mxu1  ;;  %v2311_v45 = vpop.f32.mrb[1].mxu0 }
  0xf8   :  { %v2312_v46 = vadd.f32 %v2311_v45, %v2310_v43  ;;  %v2375_v47 = vpop.f32.mrb[1].mxu1  ;;  %v2313_v48 = vpop.f32.mrb[2].mxu0 }
  0xf9   :  { %v2376_v49 = vadd.f32 %v2375_v47, %v2374_v44  ;;  %v2377_v50 = vpop.f32.mrb[2].mxu1  ;;  %v2314_v51 = vpop.f32.mrb[3].mxu0 }
  0xfa   :  { %v2315_v52 = vadd.f32 %v2314_v51, %v2313_v48  ;;  %v2378_v53 = vpop.f32.mrb[3].mxu1 }
  0xfb   :  { %v3375_v54 = vadd.f32 %v2376_v49, %v2312_v46  ;;  %v2379_v55 = vadd.f32 %v2378_v53, %v2377_v50 }
  0xfd   :  { %v3377_v56 = vadd.f32 %v2379_v55, %v2315_v52 }
  0xfe   :  { %v2316_v57 = vpop.f32.mrb[4].mxu0 }
  0xff   :  { %v2380_v58 = vpop.f32.mrb[4].mxu1  ;;  %v2317_v59 = vpop.f32.mrb[5].mxu0 }
 0x100   :  { %v2318_v60 = vadd.f32 %v2317_v59, %v2316_v57  ;;  %v2381_v61 = vpop.f32.mrb[5].mxu1  ;;  %v2319_v62 = vpop.f32.mrb[6].mxu0 }
 0x101   :  { %v2382_v63 = vadd.f32 %v2381_v61, %v2380_v58  ;;  %v2383_v0 = vpop.f32.mrb[6].mxu1  ;;  %v2320_v1 = vpop.f32.mrb[7].mxu0 }
 0x102   :  { %v2321_v2 = vadd.f32 %v2320_v1, %v2319_v62  ;;  %v2384_v3 = vpop.f32.mrb[7].mxu1 }
 0x103   :  { %v3379_v4 = vadd.f32 %v2382_v63, %v2318_v60  ;;  %v2385_v5 = vadd.f32 %v2384_v3, %v2383_v0 }
 0x105   :  { %v3381_v6 = vadd.f32 %v2385_v5, %v2321_v2 }
 0x106   :  { %v2322_v7 = vpop.f32.mrb[8].mxu0 }
 0x107   :  { %v2386_v8 = vpop.f32.mrb[8].mxu1  ;;  %v2323_v9 = vpop.f32.mrb[9].mxu0 }
 0x108   :  { %v2324_v10 = vadd.f32 %v2323_v9, %v2322_v7  ;;  %v2387_v11 = vpop.f32.mrb[9].mxu1  ;;  %v2325_v12 = vpop.f32.mrb[10].mxu0 }
 0x109   :  { %v2388_v13 = vadd.f32 %v2387_v11, %v2386_v8  ;;  %v2389_v14 = vpop.f32.mrb[10].mxu1  ;;  %v2326_v15 = vpop.f32.mrb[11].mxu0 }
 0x10a   :  { %v2327_v16 = vadd.f32 %v2326_v15, %v2325_v12  ;;  %v2390_v17 = vpop.f32.mrb[11].mxu1 }
 0x10b   :  { %v3383_v18 = vadd.f32 %v2388_v13, %v2324_v10  ;;  %v2391_v19 = vadd.f32 %v2390_v17, %v2389_v14 }
 0x10d   :  { %v3385_v20 = vadd.f32 %v2391_v19, %v2327_v16 }
 0x10e   :  { %v2328_v21 = vpop.f32.mrb[12].mxu0 }
 0x10f   :  { %v2392_v22 = vpop.f32.mrb[12].mxu1  ;;  %v2329_v23 = vpop.f32.mrb[13].mxu0 }
 0x110   :  { %v2330_v24 = vadd.f32 %v2329_v23, %v2328_v21  ;;  %v2393_v25 = vpop.f32.mrb[13].mxu1  ;;  %v2331_v26 = vpop.f32.mrb[14].mxu0 }
 0x111   :  { %v2394_v27 = vadd.f32 %v2393_v25, %v2392_v22  ;;  %v2395_v28 = vpop.f32.mrb[14].mxu1  ;;  %v2332_v29 = vpop.f32.mrb[15].mxu0 }
 0x112   :  { %v2333_v30 = vadd.f32 %v2332_v29, %v2331_v26  ;;  %v2396_v31 = vpop.f32.mrb[15].mxu1 }
 0x113   :  { %v3387_v32 = vadd.f32 %v2394_v27, %v2330_v24  ;;  %v2397_v33 = vadd.f32 %v2396_v31, %v2395_v28 }
 0x115   :  { %v3389_v34 = vadd.f32 %v2397_v33, %v2333_v30 }
 0x116   :  { %v2334_v35 = vpop.f32.mrb[16].mxu0 }
 0x117   :  { %v2398_v36 = vpop.f32.mrb[16].mxu1  ;;  %v2335_v37 = vpop.f32.mrb[17].mxu0 }
 0x118   :  { %v2336_v38 = vadd.f32 %v2335_v37, %v2334_v35  ;;  %v2399_v39 = vpop.f32.mrb[17].mxu1  ;;  %v2337_v40 = vpop.f32.mrb[18].mxu0 }
 0x119   :  { %v2400_v41 = vadd.f32 %v2399_v39, %v2398_v36  ;;  %v2401_v42 = vpop.f32.mrb[18].mxu1  ;;  %v2338_v43 = vpop.f32.mrb[19].mxu0 }
 0x11a   :  { %v2339_v44 = vadd.f32 %v2338_v43, %v2337_v40  ;;  %v2402_v45 = vpop.f32.mrb[19].mxu1 }
 0x11b   :  { %v3391_v46 = vadd.f32 %v2400_v41, %v2336_v38  ;;  %v2403_v47 = vadd.f32 %v2402_v45, %v2401_v42 }
 0x11d   :  { %v3393_v48 = vadd.f32 %v2403_v47, %v2339_v44 }
 0x11e   :  { %v2340_v49 = vpop.f32.mrb[20].mxu0 }
 0x11f   :  { %v2404_v50 = vpop.f32.mrb[20].mxu1  ;;  %v2341_v51 = vpop.f32.mrb[21].mxu0 }
 0x120   :  { %v2342_v52 = vadd.f32 %v2341_v51, %v2340_v49  ;;  %v2405_v53 = vpop.f32.mrb[21].mxu1  ;;  %v2343_v55 = vpop.f32.mrb[22].mxu0 }
 0x121   :  { %v2406_v57 = vadd.f32 %v2405_v53, %v2404_v50  ;;  %v2407_v58 = vpop.f32.mrb[22].mxu1  ;;  %v2344_v59 = vpop.f32.mrb[23].mxu0 }
 0x122   :  { %v2345_v60 = vadd.f32 %v2344_v59, %v2343_v55  ;;  %v2408_v61 = vpop.f32.mrb[23].mxu1 }
 0x123   :  { %v3395_v62 = vadd.f32 %v2406_v57, %v2342_v52  ;;  %v2409_v63 = vadd.f32 %v2408_v61, %v2407_v58 }
 0x125   :  { %v3397_v0 = vadd.f32 %v2409_v63, %v2345_v60 }
 0x126   :  { %v2346_v1 = vpop.f32.mrb[24].mxu0 }
 0x127   :  { %v2410_v2 = vpop.f32.mrb[24].mxu1  ;;  %v2347_v3 = vpop.f32.mrb[25].mxu0 }
 0x128   :  { %v2348_v5 = vadd.f32 %v2347_v3, %v2346_v1  ;;  %v2411_v7 = vpop.f32.mrb[25].mxu1  ;;  %v2349_v8 = vpop.f32.mrb[26].mxu0 }
 0x129   :  { %v2412_v9 = vadd.f32 %v2411_v7, %v2410_v2  ;;  %v2413_v10 = vpop.f32.mrb[26].mxu1  ;;  %v2350_v11 = vpop.f32.mrb[27].mxu0 }
 0x12a   :  { %v2351_v12 = vadd.f32 %v2350_v11, %v2349_v8  ;;  %v2414_v13 = vpop.f32.mrb[27].mxu1 }
 0x12b   :  { %v3399_v14 = vadd.f32 %v2412_v9, %v2348_v5  ;;  %v2415_v15 = vadd.f32 %v2414_v13, %v2413_v10 }
 0x12d   :  { %v3401_v16 = vadd.f32 %v2415_v15, %v2351_v12 }
 0x12e   :  { %v2352_v17 = vpop.f32.mrb[28].mxu0 }
 0x12f   :  { %v2416_v19 = vpop.f32.mrb[28].mxu1  ;;  %v2353_v21 = vpop.f32.mrb[29].mxu0 }
 0x130   :  { %v2354_v22 = vadd.f32 %v2353_v21, %v2352_v17  ;;  %v2417_v23 = vpop.f32.mrb[29].mxu1  ;;  %v2355_v24 = vpop.f32.mrb[30].mxu0 }
 0x131   :  { %v2418_v25 = vadd.f32 %v2417_v23, %v2416_v19  ;;  %v2419_v26 = vpop.f32.mrb[30].mxu1  ;;  %v2356_v27 = vpop.f32.mrb[31].mxu0 }
 0x132   :  { %v2357_v28 = vadd.f32 %v2356_v27, %v2355_v24  ;;  %v2420_v29 = vpop.f32.mrb[31].mxu1 }
 0x133   :  { %v3403_v30 = vadd.f32 %v2418_v25, %v2354_v22  ;;  %v2421_v31 = vadd.f32 %v2420_v29, %v2419_v26 }
 0x135   :  { %v3405_v33 = vadd.f32 %v2421_v31, %v2357_v28 }
 0x136   :  { %v2438_v35 = vpop.f32.mrb[32].mxu0 }
 0x137   :  { %v2439_v36 = vpop.f32.mrb[33].mxu0  ;;  %v2502_v37 = vpop.f32.mrb[32].mxu1 }
 0x138   :  { %v2440_v38 = vadd.f32 %v2439_v36, %v2438_v35  ;;  %v2441_v39 = vpop.f32.mrb[34].mxu0  ;;  %v2503_v40 = vpop.f32.mrb[33].mxu1 }
 0x139   :  { %v2442_v41 = vpop.f32.mrb[35].mxu0  ;;  %v2504_v42 = vadd.f32 %v2503_v40, %v2502_v37  ;;  %v2505_v43 = vpop.f32.mrb[34].mxu1 }
 0x13a   :  { %v1277_v44 = vadd.f32 %v2440_v38, %v3375_v54  ;;  %v2443_v45 = vadd.f32 %v2442_v41, %v2441_v39  ;;  %v2506_v47 = vpop.f32.mrb[35].mxu1 }
 0x13b   :  { %v2507_v49 = vadd.f32 %v2506_v47, %v2505_v43 }
 0x13c   :  { %v1280_v50 = vadd.f32 %v2443_v45, %v3377_v56  ;;  %v3409_v51 = vadd.f32 %v2504_v42, %v1277_v44 }
 0x13e   :  { %v2444_v52 = vpop.f32.mrb[36].mxu0  ;;  %v3411_v53 = vadd.f32 %v2507_v49, %v1280_v50 }
 0x13f   :  { %v2445_v55 = vpop.f32.mrb[37].mxu0  ;;  %v2508_v57 = vpop.f32.mrb[36].mxu1 }
 0x140   :  { %v2446_v58 = vadd.f32 %v2445_v55, %v2444_v52  ;;  %v2447_v59 = vpop.f32.mrb[38].mxu0  ;;  %v2509_v60 = vpop.f32.mrb[37].mxu1 }
 0x141   :  { %v2448_v61 = vpop.f32.mrb[39].mxu0  ;;  %v2510_v63 = vadd.f32 %v2509_v60, %v2508_v57  ;;  %v2511_v1 = vpop.f32.mrb[38].mxu1 }
 0x142   :  { %v1285_v54 = vadd.f32 %v2446_v58, %v3379_v4  ;;  %v2449_v2 = vadd.f32 %v2448_v61, %v2447_v59  ;;  %v2512_v3 = vpop.f32.mrb[39].mxu1 }
 0x143   :  { %v2513_v5 = vadd.f32 %v2512_v3, %v2511_v1 }
 0x144   :  { %v1288_v56 = vadd.f32 %v2449_v2, %v3381_v6  ;;  %v3415_v7 = vadd.f32 %v2510_v63, %v1285_v54 }
 0x146   :  { %v2450_v8 = vpop.f32.mrb[40].mxu0  ;;  %v3417_v9 = vadd.f32 %v2513_v5, %v1288_v56 }
 0x147   :  { %v2451_v10 = vpop.f32.mrb[41].mxu0  ;;  %v2514_v11 = vpop.f32.mrb[40].mxu1 }
 0x148   :  { %v2452_v12 = vadd.f32 %v2451_v10, %v2450_v8  ;;  %v2453_v13 = vpop.f32.mrb[42].mxu0  ;;  %v2515_v15 = vpop.f32.mrb[41].mxu1 }
 0x149   :  { %v2454_v17 = vpop.f32.mrb[43].mxu0  ;;  %v2516_v19 = vadd.f32 %v2515_v15, %v2514_v11  ;;  %v2517_v21 = vpop.f32.mrb[42].mxu1 }
 0x14a   :  { %v1293_v4 = vadd.f32 %v2452_v12, %v3383_v18  ;;  %v2455_v22 = vadd.f32 %v2454_v17, %v2453_v13  ;;  %v2518_v23 = vpop.f32.mrb[43].mxu1 }
 0x14b   :  { %v2519_v24 = vadd.f32 %v2518_v23, %v2517_v21 }
 0x14c   :  { %v1296_v6 = vadd.f32 %v2455_v22, %v3385_v20  ;;  %v3421_v25 = vadd.f32 %v2516_v19, %v1293_v4 }
 0x14e   :  { %v2456_v26 = vpop.f32.mrb[44].mxu0  ;;  %v3423_v27 = vadd.f32 %v2519_v24, %v1296_v6 }
 0x14f   :  { %v2457_v28 = vpop.f32.mrb[45].mxu0  ;;  %v2520_v29 = vpop.f32.mrb[44].mxu1 }
 0x150   :  { %v2458_v31 = vadd.f32 %v2457_v28, %v2456_v26  ;;  %v2459_v35 = vpop.f32.mrb[46].mxu0  ;;  %v2521_v36 = vpop.f32.mrb[45].mxu1 }
 0x151   :  { %v2460_v37 = vpop.f32.mrb[47].mxu0  ;;  %v2522_v38 = vadd.f32 %v2521_v36, %v2520_v29  ;;  %v2523_v39 = vpop.f32.mrb[46].mxu1 }
 0x152   :  { %v1301_v18 = vadd.f32 %v2458_v31, %v3387_v32  ;;  %v2461_v40 = vadd.f32 %v2460_v37, %v2459_v35  ;;  %v2524_v41 = vpop.f32.mrb[47].mxu1 }
 0x153   :  { %v2525_v42 = vadd.f32 %v2524_v41, %v2523_v39 }
 0x154   :  { %v1304_v20 = vadd.f32 %v2461_v40, %v3389_v34  ;;  %v3427_v43 = vadd.f32 %v2522_v38, %v1301_v18 }
 0x156   :  { %v2462_v44 = vpop.f32.mrb[48].mxu0  ;;  %v3429_v45 = vadd.f32 %v2525_v42, %v1304_v20 }
 0x157   :  { %v2463_v47 = vpop.f32.mrb[49].mxu0  ;;  %v2526_v49 = vpop.f32.mrb[48].mxu1 }
 0x158   :  { %v2464_v50 = vadd.f32 %v2463_v47, %v2462_v44  ;;  %v2465_v52 = vpop.f32.mrb[50].mxu0  ;;  %v2527_v55 = vpop.f32.mrb[49].mxu1 }
 0x159   :  { %v2466_v57 = vpop.f32.mrb[51].mxu0  ;;  %v2528_v58 = vadd.f32 %v2527_v55, %v2526_v49  ;;  %v2529_v59 = vpop.f32.mrb[50].mxu1 }
 0x15a   :  { %v1309_v32 = vadd.f32 %v2464_v50, %v3391_v46  ;;  %v2467_v60 = vadd.f32 %v2466_v57, %v2465_v52  ;;  %v2530_v61 = vpop.f32.mrb[51].mxu1 }
 0x15b   :  { %v2531_v63 = vadd.f32 %v2530_v61, %v2529_v59 }
 0x15c   :  { %v1312_v34 = vadd.f32 %v2467_v60, %v3393_v48  ;;  %v1406_v1 = vadd.f32 %v2528_v58, %v1309_v32 }
 0x15e   :  { %v2468_v54 = vpop.f32.mrb[52].mxu0  ;;  %v3433_v2 = vadd.f32 %v2531_v63, %v1312_v34 }
 0x15f   :  { %v2469_v3 = vpop.f32.mrb[53].mxu0  ;;  %v2532_v5 = vpop.f32.mrb[52].mxu1 }
 0x160   :  { %v2470_v56 = vadd.f32 %v2469_v3, %v2468_v54  ;;  %v2471_v8 = vpop.f32.mrb[54].mxu0  ;;  %v2533_v10 = vpop.f32.mrb[53].mxu1 }
 0x161   :  { %v2472_v11 = vpop.f32.mrb[55].mxu0  ;;  %v2534_v12 = vadd.f32 %v2533_v10, %v2532_v5  ;;  %v2535_v13 = vpop.f32.mrb[54].mxu1 }
 0x162   :  { %v1317_v15 = vadd.f32 %v2470_v56, %v3395_v62  ;;  %v2473_v46 = vadd.f32 %v2472_v11, %v2471_v8  ;;  %v2536_v17 = vpop.f32.mrb[55].mxu1 }
 0x163   :  { %v2537_v19 = vadd.f32 %v2536_v17, %v2535_v13 }
 0x164   :  { %v1320_v21 = vadd.f32 %v2473_v46, %v3397_v0  ;;  %v1414_v48 = vadd.f32 %v2534_v12, %v1317_v15 }
 0x166   :  { %v2474_v4 = vpop.f32.mrb[56].mxu0  ;;  %v1417_v22 = vadd.f32 %v2537_v19, %v1320_v21 }
 0x167   :  { %v2475_v23 = vpop.f32.mrb[57].mxu0  ;;  %v2538_v24 = vpop.f32.mrb[56].mxu1 }
 0x168   :  { %v2476_v6 = vadd.f32 %v2475_v23, %v2474_v4  ;;  %v2477_v26 = vpop.f32.mrb[58].mxu0  ;;  %v2539_v28 = vpop.f32.mrb[57].mxu1 }
 0x169   :  { %v2478_v29 = vpop.f32.mrb[59].mxu0  ;;  %v2540_v31 = vadd.f32 %v2539_v28, %v2538_v24  ;;  %v2541_v35 = vpop.f32.mrb[58].mxu1 }
 0x16a   :  { %v1325_v36 = vadd.f32 %v2476_v6, %v3399_v14  ;;  %v2479_v37 = vadd.f32 %v2478_v29, %v2477_v26  ;;  %v2542_v62 = vpop.f32.mrb[59].mxu1 }
 0x16b   :  { %v2543_v38 = vadd.f32 %v2542_v62, %v2541_v35 }
 0x16c   :  { %v1328_v39 = vadd.f32 %v2479_v37, %v3401_v16  ;;  %v1422_v18 = vadd.f32 %v2540_v31, %v1325_v36 }
 0x16e   :  { %v2480_v0 = vpop.f32.mrb[60].mxu0  ;;  %v1425_v40 = vadd.f32 %v2543_v38, %v1328_v39 }
 0x16f   :  { %v2481_v41 = vpop.f32.mrb[61].mxu0  ;;  %v2544_v42 = vpop.f32.mrb[60].mxu1 }
 0x170   :  { %v2482_v20 = vadd.f32 %v2481_v41, %v2480_v0  ;;  %v2483_v44 = vpop.f32.mrb[62].mxu0  ;;  %v2545_v47 = vpop.f32.mrb[61].mxu1 }
 0x171   :  { %v2484_v49 = vpop.f32.mrb[63].mxu0  ;;  %v2546_v50 = vadd.f32 %v2545_v47, %v2544_v42  ;;  %v2547_v52 = vpop.f32.mrb[62].mxu1 }
 0x172   :  { %v1333_v55 = vadd.f32 %v2482_v20, %v3403_v30  ;;  %v2485_v57 = vadd.f32 %v2484_v49, %v2483_v44  ;;  %v2548_v14 = vpop.f32.mrb[63].mxu1 }
 0x173   :  { %v2549_v58 = vadd.f32 %v2548_v14, %v2547_v52 }
 0x174   :  { %v1336_v59 = vadd.f32 %v2485_v57, %v3405_v33  ;;  %v1430_v32 = vadd.f32 %v2546_v50, %v1333_v55 }
 0x176   :  { %v2584_v16 = vpop.f32.mrb[64].mxu0  ;;  %v1433_v60 = vadd.f32 %v2549_v58, %v1336_v59 }
 0x177   :  { %v3442_v61 = vadd.f32 %v2584_v16, %v3415_v7  ;;  %v2592_v63 = vpop.f32.mrb[64].mxu1  ;;  %v1470_v34 = vpop.f32.mrb[65].mxu0 }
 0x178   :  { %v3444_v54 = vadd.f32 %v2592_v63, %v1414_v48  ;;  %v3447_v3 = vadd.f32 %v1470_v34, %v3409_v51  ;;  %v1502_v30 = vpop.f32.mrb[65].mxu1  ;;  %v2585_v5 = vpop.f32.mrb[66].mxu0 }
 0x179   :  { %v3449_v56 = vadd.f32 %v1502_v30, %v1406_v1  ;;  %v3452_v33 = vadd.f32 %v2585_v5, %v3417_v9  ;;  %v2593_v8 = vpop.f32.mrb[66].mxu1  ;;  %v1473_v10 = vpop.f32.mrb[67].mxu0  ;;  %v1540_v7 = vsel %vm1533_vm0, %v3442_v61, 0.0  ;;  %v1584_v1 = vmul.f32 %v3442_v61, %v3442_v61 }
 0x17a   :  { %3885 = vst [vmem:[#allocation2_spill] sm:$0xff] %v3444_v54  ;;  %v3456_v11 = vadd.f32 %v2593_v8, %v1417_v22  ;;  %v3459_v12 = vadd.f32 %v1473_v10, %v3411_v53  ;;  %v1505_v13 = vpop.f32.mrb[67].mxu1  ;;  %1541 = vadd.xlane.f32.xlu1 %v1540_v7  ;;  %v1534_v51 = vsel %vm1533_vm0, %v3447_v3, 0.0  ;;  %v1564_v15 = vsel %vm1533_vm0, %v3444_v54, 0.0  ;;  %v3543_v5 = vpop.permute.xlu1 %1813 }
 0x17b   :  { %v3466_v9 = vadd.f32 %v1505_v13, %v3433_v2  ;;  %1535 = vadd.xlane.f32.xlu0 %v1534_v51  ;;  %v1604_v53 = vsel %vm1533_vm0, %v1584_v1, 0.0  ;;  %v1592_v17 = vmul.f32 %v3444_v54, %v3444_v54  ;;  %v1590_v62 = vmul.f32 %v3449_v56, %v3449_v56 }
 0x17c   :  { %3886 = vst [vmem:[#allocation3_spill] sm:$0xff] %v3456_v11  ;;  %v1537_v37 = vsel %vm1533_vm0, %v3459_v12, 0.0  ;;  %v1582_v38 = vmul.f32 %v3447_v3, %v3447_v3  ;;  %v1593_v41 = vmul.f32 %v3456_v11, %v3456_v11  ;;  %v1583_v44 = vmul.f32 %v3459_v12, %v3459_v12 }
 0x17d   :  { %3887 = vst [vmem:[#allocation4_spill] sm:$0xff] %v3466_v9  ;;  %v1622_v39 = vsel %vm1533_vm0, %v1590_v62, 0.0  ;;  %v1561_v42 = vsel %vm1533_vm0, %v3466_v9, 0.0  ;;  %v1591_v50 = vmul.f32 %v3466_v9, %v3466_v9 }
 0x17e   :  { %v2588_v46 = vpop.f32.mrb[68].mxu0  ;;  %1565 = vadd.xlane.f32.xlu1 %v1564_v15  ;;  %v1598_v0 = vsel %vm1533_vm0, %v1582_v38, 0.0  ;;  %v1631_v20 = vsel %vm1533_vm0, %v1593_v41, 0.0  ;;  %v1601_v49 = vsel %vm1533_vm0, %v1583_v44, 0.0  ;;  %v3555_v15 = vpop.permute.xlu1 %1818 }
 0x17f   :  { %v3474_v19 = vadd.f32 %v2588_v46, %v3427_v43  ;;  %v2596_v21 = vpop.f32.mrb[68].mxu1  ;;  %v1486_v48 = vpop.f32.mrb[69].mxu0  ;;  %1605 = vadd.xlane.f32.xlu0 %v1604_v53  ;;  %v1558_v43 = vsel %vm1533_vm0, %v3449_v56, 0.0  ;;  %v1625_v55 = vsel %vm1533_vm0, %v1591_v50, 0.0 }
 0x180   :  { %v3476_v4 = vadd.f32 %v2596_v21, %v1430_v32  ;;  %v3479_v2 = vadd.f32 %v1486_v48, %v3421_v25  ;;  %v1518_v22 = vpop.f32.mrb[69].mxu1  ;;  %v2589_v23 = vpop.f32.mrb[70].mxu0  ;;  %v1628_v25 = vsel %vm1533_vm0, %v1592_v17, 0.0  ;;  %v1914_v21 = vld [vmem:[%s3874_s3 + $0x60] sm:$0xff] }
 0x181   :  { %v3481_v24 = vadd.f32 %v1518_v22, %v1422_v18  ;;  %v3484_v6 = vadd.f32 %v2589_v23, %v3429_v45  ;;  %v2597_v26 = vpop.f32.mrb[70].mxu1  ;;  %v1489_v28 = vpop.f32.mrb[71].mxu0  ;;  %v1543_v45 = vsel %vm1533_vm0, %v3452_v33, 0.0  ;;  %v1585_v18 = vmul.f32 %v3452_v33, %v3452_v33  ;;  %v1804_v22 = vld [vmem:[%s3873_s2 + $0x70] sm:$0xff] }
 0x182   :  { %3888 = vst [vmem:[#allocation5_spill] sm:$0xff] %v3476_v4  ;;  %v3488_v29 = vadd.f32 %v2597_v26, %v1433_v60  ;;  %v3491_v31 = vadd.f32 %v1489_v28, %v3423_v27  ;;  %v1521_v35 = vpop.f32.mrb[71].mxu1  ;;  %1559 = vadd.xlane.f32.xlu1 %v1558_v43  ;;  %v1567_v27 = vsel %vm1533_vm0, %v3456_v11, 0.0  ;;  %v1552_v47 = vsel %vm1533_vm0, %v3474_v19, 0.0  ;;  %v3558_v53 = vpop.permute.xlu1 %1920 }
 0x183   :  { %3889 = vst [vmem:[#allocation6_spill] sm:$0xff] %v3481_v24  ;;  %v3494_v36 = vadd.f32 %v1521_v35, %v1425_v40  ;;  %1629 = vadd.xlane.f32.xlu0 %v1628_v25  ;;  %v1607_v40 = vsel %vm1533_vm0, %v1585_v18, 0.0  ;;  %v1576_v52 = vsel %vm1533_vm0, %v3476_v4, 0.0  ;;  %v1588_v57 = vmul.f32 %v3474_v19, %v3474_v19  ;;  %v3574_v28 = vpop.permute.xlu0 %1808 }
 0x184   :  { %3890 = vst [vmem:[#allocation7_spill] sm:$0xff] %v3488_v29  ;;  %v1546_v14 = vsel %vm1533_vm0, %v3479_v2, 0.0  ;;  %v1596_v59 = vmul.f32 %v3476_v4, %v3476_v4  ;;  %v1570_v32 = vsel %vm1533_vm0, %v3481_v24, 0.0  ;;  %v1586_v60 = vmul.f32 %v3479_v2, %v3479_v2 }
 0x185   :  { %3891 = vst [vmem:[#allocation8_spill] sm:$0xff] %v3494_v36  ;;  %v1616_v58 = vsel %vm1533_vm0, %v1588_v57, 0.0  ;;  %v1555_v63 = vsel %vm1533_vm0, %v3484_v6, 0.0  ;;  %v1594_v30 = vmul.f32 %v3481_v24, %v3481_v24  ;;  %v1579_v8 = vsel %vm1533_vm0, %v3488_v29, 0.0  ;;  %v1805_v57 = vld [vmem:[%s3873_s2 + $0x78] sm:$0xff] }
 0x186   :  { %1544 = vadd.xlane.f32.xlu1 %v1543_v45  ;;  %v1640_v16 = vsel %vm1533_vm0, %v1596_v59, 0.0  ;;  %v1610_v34 = vsel %vm1533_vm0, %v1586_v60, 0.0  ;;  %v1589_v7 = vmul.f32 %v3484_v6, %v3484_v6  ;;  %v1549_v13 = vsel %vm1533_vm0, %v3491_v31, 0.0  ;;  %v3560_v17 = vpop.permute.xlu1 %1925  ;;  %v1917_v59 = vld [vmem:[%s3874_s3 + $0x78] sm:$0xff] }
 0x187   :  { %1538 = vadd.xlane.f32.xlu0 %v1537_v37  ;;  %v1634_v10 = vsel %vm1533_vm0, %v1594_v30, 0.0  ;;  %v1587_v1 = vmul.f32 %v3491_v31, %v3491_v31  ;;  %v3578_v35 = vpop.permute.xlu0 %1833  ;;  %v1597_v38 = vmul.f32 %v3488_v29, %v3488_v29 }
 0x188   :  { %v1619_v51 = vsel %vm1533_vm0, %v1589_v7, 0.0 }
 0x189   :  { %v1613_v46 = vsel %vm1533_vm0, %v1587_v1, 0.0 }
 0x18a   :  { %1568 = vadd.xlane.f32.xlu1 %v1567_v27  ;;  %v3565_v48 = vpop.permute.xlu1 %1823  ;;  %v1573_v27 = vsel %vm1533_vm0, %v3494_v36, 0.0 }
 0x18b   :  { %1623 = vadd.xlane.f32.xlu0 %v1622_v39  ;;  %v3582_v45 = vpop.permute.xlu0 %1838  ;;  %v1595_v39 = vmul.f32 %v3494_v36, %v3494_v36 }
 0x18d   :  { %v1637_v41 = vsel %vm1533_vm0, %v1595_v39, 0.0 }
 0x18e   :  { %1599 = vadd.xlane.f32.xlu1 %v1598_v0  ;;  %v3570_v23 = vpop.permute.xlu1 %1930 }
 0x18f   :  { %1608 = vadd.xlane.f32.xlu0 %v1607_v40  ;;  %v3586_v62 = vpop.permute.xlu0 %1843  ;;  %v1643_v40 = vsel %vm1533_vm0, %v1597_v38, 0.0 }
 0x190   :  { %3892 = vst [vmem:[#allocation9_spill] sm:$0xff] %v3586_v62 }
 0x192   :  { %1562 = vadd.xlane.f32.xlu1 %v1561_v42  ;;  %v3572_v26 = vpop.permute.xlu1 %1828 }
 0x193   :  { %1632 = vadd.xlane.f32.xlu0 %v1631_v20  ;;  %v3596_v0 = vpop.permute.xlu0 %1848 }
 0x194   :  { %3894 = vst [vmem:[#allocation11_spill] sm:$0xff] %v3596_v0 }
 0x196   :  { %1553 = vadd.xlane.f32.xlu1 %v1552_v47  ;;  %v3576_v43 = vpop.permute.xlu1 %1935 }
 0x197   :  { %1602 = vadd.xlane.f32.xlu0 %v1601_v49  ;;  %v3602_v20 = vpop.permute.xlu0 %1853  ;;  %v1915_v49 = vld [vmem:[%s3874_s3 + $0x68] sm:$0xff] }
 0x198   :  { %3896 = vst [vmem:[#allocation13_spill] sm:$0xff] %v3602_v20 }
 0x19a   :  { %1577 = vadd.xlane.f32.xlu1 %v1576_v52  ;;  %v3580_v25 = vpop.permute.xlu1 %1940 }
 0x19b   :  { %1626 = vadd.xlane.f32.xlu0 %v1625_v55  ;;  %v3606_v47 = vpop.permute.xlu0 %1858  ;;  %v1916_v55 = vld [vmem:[%s3874_s3 + $0x70] sm:$0xff] }
 0x19c   :  { %3898 = vst [vmem:[#allocation15_spill] sm:$0xff] %v3606_v47 }
 0x19e   :  { %1547 = vadd.xlane.f32.xlu1 %v1546_v14  ;;  %v3584_v37 = vpop.permute.xlu1 %1945 }
 0x19f   :  { %1617 = vadd.xlane.f32.xlu0 %v1616_v58  ;;  %v3613_v52 = vpop.permute.xlu0 %1863 }
 0x1a0   :  { %3900 = vst [vmem:[#allocation17_spill] sm:$0xff] %v3613_v52 }
 0x1a2   :  { %1571 = vadd.xlane.f32.xlu1 %v1570_v32  ;;  %v3594_v18 = vpop.permute.xlu1 %1950 }
 0x1a3   :  { %1641 = vadd.xlane.f32.xlu0 %v1640_v16  ;;  %3893 = vst [vmem:[#allocation10_spill] sm:$0xff] %v3594_v18  ;;  %v3623_v58 = vpop.permute.xlu0 %1868 }
 0x1a4   :  { %3902 = vst [vmem:[#allocation19_spill] sm:$0xff] %v3623_v58 }
 0x1a6   :  { %1556 = vadd.xlane.f32.xlu1 %v1555_v63  ;;  %v3600_v42 = vpop.permute.xlu1 %1955 }
 0x1a7   :  { %1611 = vadd.xlane.f32.xlu0 %v1610_v34  ;;  %3895 = vst [vmem:[#allocation12_spill] sm:$0xff] %v3600_v42  ;;  %v3630_v16 = vpop.permute.xlu0 %1873 }
 0x1a8   :  { %3904 = vst [vmem:[#allocation21_spill] sm:$0xff] %v3630_v16 }
 0x1aa   :  { %1580 = vadd.xlane.f32.xlu1 %v1579_v8  ;;  %v3604_v44 = vpop.permute.xlu1 %1960 }
 0x1ab   :  { %1635 = vadd.xlane.f32.xlu0 %v1634_v10  ;;  %3897 = vst [vmem:[#allocation14_spill] sm:$0xff] %v3604_v44 }
 0x1ae   :  { %1550 = vadd.xlane.f32.xlu1 %v1549_v13  ;;  %v3611_v50 = vpop.permute.xlu1 %1965 }
 0x1af   :  { %1620 = vadd.xlane.f32.xlu0 %v1619_v51  ;;  %3899 = vst [vmem:[#allocation16_spill] sm:$0xff] %v3611_v50 }
 0x1b2   :  { %v3621_v14 = vpop.permute.xlu1 %1970 }
 0x1b3   :  { %1614 = vadd.xlane.f32.xlu0 %v1613_v46  ;;  %3901 = vst [vmem:[#allocation18_spill] sm:$0xff] %v3621_v14 }
 0x1b6   :  { %v3628_v32 = vpop.permute.xlu1 %1975 }
 0x1b7   :  { %3903 = vst [vmem:[#allocation20_spill] sm:$0xff] %v3628_v32 }
 0x1bf   :  { %1980 = vperm.xlu1 %2616, %v1914_v21  }
 0x1c9   :  { %1878 = vperm.xlu0 %2615, %v1804_v22  }
 0x1e3   :  { %1574 = vadd.xlane.f32.xlu1 %v1573_v27 }
 0x1e7   :  { %1644 = vadd.xlane.f32.xlu1 %v1643_v40 }
 0x1e8   :  { %1638 = vadd.xlane.f32.xlu0 %v1637_v41 }
 0x1f8   :  { %1985 = vperm.xlu1 %2616, %v1915_v49  }
 0x1fc   :  { %1990 = vperm.xlu1 %2616, %v1916_v55  }
 0x1fe   :  { %1883 = vperm.xlu0 %2615, %v1805_v57  }
 0x202   :  { %1995 = vperm.xlu0 %2615, %v1917_v59  }
 0x207   :  { %v1542_v60 = vpop.xlane.xlu1 %1541 }
 0x208   :  { %v1536_v63 = vpop.xlane.xlu0 %1535  ;;  %v3658_v32 = vmul.f32 0.03125, %v1542_v60 }
 0x209   :  { %v3656_v29 = vmul.f32 0.03125, %v1536_v63 }
 0x20a   :  { %v1680_v63 = vmul.f32 %v3658_v32, %v3658_v32 }
 0x20b   :  { %v3632_v34 = vpop.xlane.xlu1 %1565  ;;  %v1678_v20 = vmul.f32 %v3656_v29, %v3656_v29 }
 0x20c   :  { %v1606_v30 = vpop.xlane.xlu0 %1605 }
 0x20d   :  { %v1664_v14 = vmul.f32 0.03125, %v1606_v30 }
 0x20f   :  { %v3634_v8 = vpop.xlane.xlu1 %1559  ;;  %v1696_v47 = vsub.f32 %v1664_v14, %v1680_v63 }
 0x210   :  { %v3636_v10 = vpop.xlane.xlu0 %1629 }
 0x213   :  { %v1545_v7 = vpop.xlane.xlu1 %1544 }
 0x214   :  { %v1539_v13 = vpop.xlane.xlu0 %1538  ;;  %v3670_v60 = vmul.f32 0.03125, %v1545_v7 }
 0x215   :  { %v3654_v16 = vmul.f32 0.03125, %v1539_v13 }
 0x217   :  { %v3638_v51 = vpop.xlane.xlu1 %1568  ;;  %v1679_v52 = vmul.f32 %v3654_v16, %v3654_v16 }
 0x218   :  { %v3640_v1 = vpop.xlane.xlu0 %1623 }
 0x21b   :  { %v1600_v46 = vpop.xlane.xlu1 %1599 }
 0x21c   :  { %v1609_v21 = vpop.xlane.xlu0 %1608  ;;  %v1662_v24 = vmul.f32 0.03125, %v1600_v46 }
 0x21d   :  { %v1665_v46 = vmul.f32 0.03125, %v1609_v21 }
 0x21f   :  { %v3642_v22 = vpop.xlane.xlu1 %1562 }
 0x220   :  { %v3644_v27 = vpop.xlane.xlu0 %1632 }
 0x223   :  { %v1554_v38 = vpop.xlane.xlu1 %1553 }
 0x224   :  { %v1603_v39 = vpop.xlane.xlu0 %1602 }
 0x225   :  { %v1663_v4 = vmul.f32 0.03125, %v1603_v39  ;;  %v1694_v39 = vsub.f32 %v1662_v24, %v1678_v20 }
 0x227   :  { %v3646_v40 = vpop.xlane.xlu1 %1577  ;;  %v1695_v11 = vsub.f32 %v1663_v4, %v1679_v52  ;;  %v1712_v4 = vmax.f32 %v1696_v47, 0.0  ;;  %v1681_v52 = vmul.f32 %v3670_v60, %v3670_v60 }
 0x228   :  { %v3648_v41 = vpop.xlane.xlu0 %1626 }
 0x229   :  { %v1711_v42 = vmax.f32 %v1695_v11, 0.0  ;;  %v1697_v14 = vsub.f32 %v1665_v46, %v1681_v52  ;;  %v1744_v63 = vadd.f32 1e-05, %v1712_v4 }
 0x22b   :  { %v1548_v49 = vpop.xlane.xlu1 %1547  ;;  %v1743_v18 = vadd.f32 1e-05, %v1711_v42  ;;  %v1713_v47 = vmax.f32 %v1697_v14, 0.0 }
 0x22c   :  { %v1618_v55 = vpop.xlane.xlu0 %1617  ;;  %v3672_v9 = vmul.f32 0.03125, %v1548_v49 }
 0x22d   :  { %2793 = vrsqrt.f32 %v1743_v18  ;;  %v1745_v52 = vadd.f32 1e-05, %v1713_v47  ;;  %v3692_v18 = vmul.f32 0.03125, %v3632_v34 }
 0x22e   :  { %v1682_v24 = vmul.f32 %v3672_v9, %v3672_v9 }
 0x22f   :  { %v3650_v57 = vpop.xlane.xlu1 %1571  ;;  %v1688_v34 = vmul.f32 %v3692_v18, %v3692_v18 }
 0x230   :  { %v3652_v59 = vpop.xlane.xlu0 %1641 }
 0x233   :  { %v1557_v36 = vpop.xlane.xlu1 %1556 }
 0x234   :  { %v1612_v58 = vpop.xlane.xlu0 %1611  ;;  %v3686_v46 = vmul.f32 0.03125, %v1557_v36 }
 0x235   :  { %v1666_v0 = vmul.f32 0.03125, %v1612_v58  ;;  %v3682_v58 = vmul.f32 0.03125, %v1554_v38 }
 0x237   :  { %v3662_v50 = vpop.xlane.xlu1 %1580  ;;  %v1698_v49 = vsub.f32 %v1666_v0, %v1682_v24  ;;  %v1684_v54 = vmul.f32 %v3682_v58, %v3682_v58  ;;  %v3689_v0 = vmul.f32 0.03125, %v3634_v8  ;;  %v2794_v8 = vpop.eup %2793 }
 0x238   :  { %3905 = vst [vmem:[#allocation22_spill] sm:$0xff] %v3662_v50  ;;  %v3666_v13 = vpop.xlane.xlu0 %1635  ;;  %v1710_v50 = vmax.f32 %v1694_v39, 0.0  ;;  %v1668_v39 = vmul.f32 0.03125, %v1618_v55  ;;  %v1670_v55 = vmul.f32 0.03125, %v3640_v1  ;;  %v1727_v1 = vsub.f32 %v3459_v12, %v3654_v16 }
 0x239   :  { %v1714_v42 = vmax.f32 %v1698_v49, 0.0  ;;  %v1686_v36 = vmul.f32 %v3689_v0, %v3689_v0 }
 0x23a   :  { %v1742_v11 = vadd.f32 1e-05, %v1710_v50  ;;  %v1700_v4 = vsub.f32 %v1668_v39, %v1684_v54  ;;  %v1775_v47 = vmul.f32 %v2794_v8, %v1727_v1  ;;  %v1728_v39 = vsub.f32 %v3442_v61, %v3658_v32 }
 0x23b   :  { %v1551_v44 = vpop.xlane.xlu1 %1550  ;;  %v1746_v38 = vadd.f32 1e-05, %v1714_v42  ;;  %v1671_v42 = vmul.f32 0.03125, %v3648_v41 }
 0x23c   :  { %v1621_v30 = vpop.xlane.xlu0 %1620  ;;  %v3674_v62 = vmul.f32 0.03125, %v1551_v44  ;;  %2795 = vrsqrt.f32 %v1742_v11  ;;  %v1716_v11 = vmax.f32 %v1700_v4, 0.0 }
 0x23d   :  { %2797 = vrsqrt.f32 %v1744_v63  ;;  %v1669_v24 = vmul.f32 0.03125, %v1621_v30  ;;  %v1702_v30 = vsub.f32 %v1670_v55, %v1686_v36  ;;  %v1729_v36 = vsub.f32 %v3452_v33, %v3670_v60 }
 0x23e   :  { %v1683_v21 = vmul.f32 %v3674_v62, %v3674_v62  ;;  %2799 = vrsqrt.f32 %v1745_v52  ;;  %v1731_v33 = vsub.f32 %v3491_v31, %v3674_v62  ;;  %v3733_v60 = vmul.f32 0.03125, %v3650_v57 }
 0x23f   :  { %2801 = vrsqrt.f32 %v1746_v38  ;;  %v1718_v12 = vmax.f32 %v1702_v30, 0.0  ;;  %v1732_v57 = vsub.f32 %v3474_v19, %v3682_v58 }
 0x240   :  { %v1615_v20 = vpop.xlane.xlu0 %1614 }
 0x241   :  { %v1667_v7 = vmul.f32 0.03125, %v1615_v20  ;;  %v1685_v20 = vmul.f32 %v3686_v46, %v3686_v46  ;;  %v1750_v32 = vadd.f32 1e-05, %v1718_v12 }
 0x243   :  { %v1699_v44 = vsub.f32 %v1667_v7, %v1683_v21  ;;  %v1672_v7 = vmul.f32 0.03125, %v3636_v10  ;;  %v1701_v54 = vsub.f32 %v1669_v24, %v1685_v20  ;;  %v3705_v21 = vmul.f32 0.03125, %v3642_v22 }
 0x244   :  { %v1726_v10 = vsub.f32 %v3447_v3, %v3656_v29  ;;  %v1887_v24 = vmul.f32 %v3543_v5, %v1775_v47  ;;  %v3716_v3 = vmul.f32 0.03125, %v3638_v51  ;;  %v1730_v51 = vsub.f32 %v3479_v2, %v3672_v9 }
 0x245   :  { %v1715_v50 = vmax.f32 %v1699_v44, 0.0  ;;  %v1704_v44 = vsub.f32 %v1672_v7, %v1688_v34  ;;  %v1717_v52 = vmax.f32 %v1701_v54, 0.0  ;;  %v1687_v22 = vmul.f32 %v3705_v21, %v3705_v21 }
 0x246   :  { %v2796_v49 = vpop.eup %2795  ;;  %v1673_v7 = vmul.f32 0.03125, %v3644_v27  ;;  %v1999_v5 = vadd.f32 %v3560_v17, %v1887_v24  ;;  %v1689_v54 = vmul.f32 %v3716_v3, %v3716_v3 }
 0x247   :  { %v1747_v14 = vadd.f32 1e-05, %v1715_v50  ;;  %v2798_v63 = vpop.eup %2797  ;;  %v1748_v50 = vadd.f32 1e-05, %v1716_v11  ;;  %v1774_v16 = vmul.f32 %v2796_v49, %v1726_v10  ;;  %v1720_v38 = vmax.f32 %v1704_v44, 0.0 }
 0x248   :  { %v1776_v4 = vmul.f32 %v2798_v63, %v1728_v39  ;;  %v1703_v29 = vsub.f32 %v1671_v42, %v1687_v22  ;;  %v1749_v55 = vadd.f32 1e-05, %v1717_v52  ;;  %v2800_v61 = vpop.eup %2799  ;;  %v1705_v17 = vsub.f32 %v1673_v7, %v1689_v54  ;;  %v3907_v54 = vld [vmem:[#allocation10_spill] sm:$0xff] }
 0x249   :  { %2803 = vrsqrt.f32 %v1747_v14  ;;  %v1886_v41 = vmul.f32 %v3574_v28, %v1774_v16  ;;  %v2802_v20 = vpop.eup %2801  ;;  %v1752_v8 = vadd.f32 1e-05, %v1720_v38  ;;  %v1777_v34 = vmul.f32 %v2800_v61, %v1729_v36 }
 0x24a   :  { %2805 = vrsqrt.f32 %v1748_v50  ;;  %v1888_v14 = vmul.f32 %v3555_v15, %v1776_v4  ;;  %v1719_v28 = vmax.f32 %v1703_v29, 0.0  ;;  %v1778_v1 = vmul.f32 %v2802_v20, %v1730_v51  ;;  %v2062_v50 = vld [vmem:[%s3875_s4] sm:$0xff] }
 0x24b   :  { %2807 = vrsqrt.f32 %v1749_v55  ;;  %v1998_v15 = vadd.f32 %v3558_v53, %v1886_v41  ;;  %v2031_v9 = vmul.f32 0.2, %v1999_v5  ;;  %v1889_v30 = vmul.f32 %v3565_v48, %v1777_v34  ;;  %v2063_v48 = vld [vmem:[%s3875_s4 + $0x8] sm:$0xff] }
 0x24c   :  { %2809 = vrsqrt.f32 %v1750_v32  ;;  %v2000_v27 = vadd.f32 %v3570_v23, %v1888_v14  ;;  %vm2015_vm1 = vcmp.gt.f32.partialorder %v1999_v5, 0.0  ;;  %v1751_v49 = vadd.f32 1e-05, %v1719_v28  ;;  %v2066_v28 = vld [vmem:[%s3875_s4 + $0x20] sm:$0xff] }
 0x24d   :  { %v1674_v63 = vmul.f32 0.03125, %v3666_v13  ;;  %2811 = vrsqrt.f32 %v1752_v8  ;;  %v2030_v53 = vmul.f32 0.2, %v1998_v15  ;;  %v1890_v10 = vmul.f32 %v3572_v26, %v1778_v1 }
 0x24e   :  { %vm2016_vm2 = vcmp.gt.f32.partialorder %v2000_v27, 0.0  ;;  %vm2014_vm3 = vcmp.gt.f32.partialorder %v1998_v15, 0.0  ;;  %v1721_v31 = vmax.f32 %v1705_v17, 0.0  ;;  %v1690_v23 = vmul.f32 %v3733_v60, %v3733_v60 }
 0x24f   :  { %v2032_v62 = vmul.f32 0.2, %v2000_v27  ;;  %v2047_v13 = vsel %vm2015_vm1, %v1999_v5, %v2031_v9  ;;  %v2001_v26 = vadd.f32 %v3576_v43, %v1889_v30  ;;  %v3748_v39 = vmul.f32 0.03125, %v3646_v40  ;;  %v3780_v9 = vpop.permute.xlu1 %1980 }
 0x250   :  { %2813 = vrsqrt.f32 %v1751_v49  ;;  %v1706_v42 = vsub.f32 %v1674_v63, %v1690_v23  ;;  %v2046_v52 = vsel %vm2014_vm3, %v1998_v15, %v2030_v53  ;;  %v2002_v58 = vadd.f32 %v3580_v25, %v1890_v10  ;;  %v2064_v25 = vld [vmem:[%s3875_s4 + $0x10] sm:$0xff]  ;;  %v3908_v15 = vld [vmem:[#allocation9_spill] sm:$0xff]  ;;  %v2067_v53 = vld [vmem:[%s3875_s4 + $0x28] sm:$0xff] }
 0x251   :  { %v1734_v16 = vsub.f32 %v3449_v56, %v3689_v0  ;;  %v2079_v4 = vmul.f32 %v2063_v48, %v2047_v13  ;;  %v2048_v40 = vsel %vm2016_vm2, %v2000_v27, %v2032_v62  ;;  %v1676_v22 = vmul.f32 0.03125, %v3652_v59  ;;  %v3909_v27 = vld [vmem:[#allocation11_spill] sm:$0xff]  ;;  %v3910_v49 = vld [vmem:[#allocation4_spill] sm:$0xff] }
 0x252   :  { %v1733_v38 = vsub.f32 %v3484_v6, %v3686_v46  ;;  %v2078_v29 = vmul.f32 %v2062_v50, %v2046_v52  ;;  %v2033_v55 = vmul.f32 0.2, %v2001_v26  ;;  %v1692_v56 = vmul.f32 %v3748_v39, %v3748_v39  ;;  %v3906_v46 = vld [vmem:[#allocation2_spill] sm:$0xff]  ;;  %v3911_v13 = vld [vmem:[#allocation12_spill] sm:$0xff] }
 0x253   :  { %v2804_v11 = vpop.eup %2803  ;;  %v1722_v0 = vmax.f32 %v1706_v42, 0.0  ;;  %vm2017_vm4 = vcmp.gt.f32.partialorder %v2001_v26, 0.0  ;;  %v2034_v32 = vmul.f32 0.2, %v2002_v58  ;;  %v2095_v6 = vsel %vm1533_vm0, %v2079_v4, 0.0  ;;  %v3796_v4 = vpop.permute.xlu0 %1878 }
 0x254   :  { %v1779_v2 = vmul.f32 %v2804_v11, %v1731_v33  ;;  %v2806_v44 = vpop.eup %2805  ;;  %vm2018_vm5 = vcmp.gt.f32.partialorder %v2002_v58, 0.0  ;;  %v1736_v20 = vsub.f32 %v3906_v46, %v3692_v18  ;;  %v2080_v14 = vmul.f32 %v2064_v25, %v2048_v40  ;;  %v3916_v25 = vld [vmem:[#allocation13_spill] sm:$0xff] }
 0x255   :  { %v1780_v19 = vmul.f32 %v2806_v44, %v1732_v57  ;;  %v2808_v12 = vpop.eup %2807  ;;  %v1708_v36 = vsub.f32 %v1676_v22, %v1692_v56  ;;  %v2094_v8 = vsel %vm1533_vm0, %v2078_v29, 0.0  ;;  %v2049_v5 = vsel %vm2017_vm4, %v2001_v26, %v2033_v55  ;;  %v3912_v26 = vld [vmem:[#allocation14_spill] sm:$0xff]  ;;  %v2068_v55 = vld [vmem:[%s3875_s4 + $0x30] sm:$0xff] }
 0x256   :  { %v1891_v47 = vmul.f32 %v3578_v35, %v1779_v2  ;;  %v1753_v35 = vadd.f32 1e-05, %v1721_v31  ;;  %v2810_v43 = vpop.eup %2809  ;;  %v1781_v59 = vmul.f32 %v2808_v12, %v1733_v38  ;;  %v1754_v51 = vadd.f32 1e-05, %v1722_v0 }
 0x257   :  { %v1892_v61 = vmul.f32 %v3582_v45, %v1780_v19  ;;  %v1782_v41 = vmul.f32 %v2810_v43, %v1734_v16  ;;  %v2065_v45 = vld [vmem:[%s3875_s4 + $0x18] sm:$0xff]  ;;  %v2096_v11 = vadd.f32 %v2095_v6, %v2094_v8  ;;  %v2050_v18 = vsel %vm2018_vm5, %v2002_v58, %v2034_v32  ;;  %v3914_v58 = vld [vmem:[#allocation3_spill] sm:$0xff]  ;;  %v3915_v16 = vld [vmem:[#allocation22_spill] sm:$0xff] }
 0x258   :  { %v2003_v24 = vadd.f32 %v3584_v37, %v1891_v47  ;;  %2815 = vrsqrt.f32 %v1753_v35  ;;  %v2812_v37 = vpop.eup %2811  ;;  %v1893_v1 = vmul.f32 %v3908_v15, %v1781_v59  ;;  %v2097_v2 = vsel %vm1533_vm0, %v2080_v14, 0.0  ;;  %v3917_v8 = vld [vmem:[#allocation16_spill] sm:$0xff] }
 0x259   :  { %v2004_v34 = vadd.f32 %v3907_v54, %v1892_v61  ;;  %v1894_v17 = vmul.f32 %v3909_v27, %v1782_v41  ;;  %v1784_v30 = vmul.f32 %v2812_v37, %v1736_v20  ;;  %v1735_v63 = vsub.f32 %v3910_v49, %v3705_v21  ;;  %v3913_v21 = vld [vmem:[#allocation15_spill] sm:$0xff] }
 0x25a   :  { %v2035_v7 = vmul.f32 0.2, %v2003_v24  ;;  %vm2019_vm6 = vcmp.gt.f32.partialorder %v2003_v24, 0.0  ;;  %v2814_v33 = vpop.eup %2813  ;;  %v2081_v44 = vmul.f32 %v2065_v45, %v2049_v5  ;;  %v1724_v31 = vmax.f32 %v1708_v36, 0.0 }
 0x25b   :  { %v2082_v23 = vmul.f32 %v2066_v28, %v2050_v18  ;;  %2817 = vrsqrt.f32 %v1754_v51  ;;  %v2098_v62 = vadd.f32 %v2097_v2, %v2096_v11  ;;  %v1783_v57 = vmul.f32 %v2814_v33, %v1735_v63  ;;  %v2069_v11 = vld [vmem:[%s3875_s4 + $0x38] sm:$0xff]  ;;  %v3918_v18 = vld [vmem:[#allocation18_spill] sm:$0xff] }
 0x25c   :  { %v2051_v10 = vsel %vm2019_vm6, %v2003_v24, %v2035_v7  ;;  %v2036_v48 = vmul.f32 0.2, %v2004_v34  ;;  %v2005_v47 = vadd.f32 %v3911_v13, %v1893_v1  ;;  %v2006_v42 = vadd.f32 %v3912_v26, %v1894_v17  ;;  %v3919_v1 = vld [vmem:[#allocation6_spill] sm:$0xff]  ;;  %v3920_v2 = vld [vmem:[#allocation17_spill] sm:$0xff] }
 0x25d   :  { %vm2020_vm7 = vcmp.gt.f32.partialorder %v2004_v34, 0.0  ;;  %v2083_v50 = vmul.f32 %v2067_v53, %v2051_v10  ;;  %v1896_v19 = vmul.f32 %v3913_v21, %v1784_v30  ;;  %v1737_v12 = vsub.f32 %v3914_v58, %v3716_v3  ;;  %v2071_v21 = vld [vmem:[%s3875_s4 + $0x48] sm:$0xff] }
 0x25e   :  { %v3794_v35 = vmul.f32 0.03125, %v3915_v16  ;;  %v2099_v40 = vsel %vm1533_vm0, %v2081_v44, 0.0  ;;  %v1756_v22 = vadd.f32 1e-05, %v1724_v31  ;;  %v2101_v38 = vsel %vm1533_vm0, %v2082_v23, 0.0  ;;  %v2070_v23 = vld [vmem:[%s3875_s4 + $0x40] sm:$0xff] }
 0x25f   :  { %v1895_v29 = vmul.f32 %v3916_v25, %v1783_v57  ;;  %v2052_v3 = vsel %vm2020_vm7, %v2004_v34, %v2036_v48  ;;  %v2037_v56 = vmul.f32 0.2, %v2005_v47  ;;  %v2100_v0 = vadd.f32 %v2099_v40, %v2098_v62  ;;  %v3921_v48 = vld [vmem:[#allocation20_spill] sm:$0xff]  ;;  %v3923_v16 = vld [vmem:[#allocation5_spill] sm:$0xff] }
 0x260   :  { %vm2022_vm8 = vcmp.gt.f32.partialorder %v2006_v42, 0.0  ;;  %v2038_v61 = vmul.f32 0.2, %v2006_v42  ;;  %vm2021_vm9 = vcmp.gt.f32.partialorder %v2005_v47, 0.0  ;;  %v2103_v59 = vsel %vm1533_vm0, %v2083_v50, 0.0  ;;  %v3922_v50 = vld [vmem:[#allocation19_spill] sm:$0xff] }
 0x261   :  { %v1693_v6 = vmul.f32 %v3794_v35, %v3794_v35  ;;  %v2102_v20 = vadd.f32 %v2101_v38, %v2100_v0  ;;  %v2084_v14 = vmul.f32 %v2068_v55, %v2052_v3  ;;  %2819 = vrsqrt.f32 %v1756_v22  ;;  %v2072_v3 = vld [vmem:[%s3875_s4 + $0x50] sm:$0xff] }
 0x262   :  { %v2816_v43 = vpop.eup %2815  ;;  %v2007_v5 = vadd.f32 %v3917_v8, %v1895_v29  ;;  %v2053_v51 = vsel %vm2021_vm9, %v2005_v47, %v2037_v56  ;;  %v2008_v15 = vadd.f32 %v3918_v18, %v1896_v19  ;;  %v1738_v33 = vsub.f32 %v3919_v1, %v3733_v60 }
 0x263   :  { %v1785_v41 = vmul.f32 %v2816_v43, %v1737_v12  ;;  %v2104_v54 = vadd.f32 %v2103_v59, %v2102_v20  ;;  %v2054_v17 = vsel %vm2022_vm8, %v2006_v42, %v2038_v61  ;;  %v2085_v63 = vmul.f32 %v2069_v11, %v2053_v51  ;;  %v3925_v20 = vld [vmem:[#allocation8_spill] sm:$0xff] }
 0x264   :  { %v2105_v53 = vsel %vm1533_vm0, %v2084_v14, 0.0  ;;  %v2039_v10 = vmul.f32 0.2, %v2007_v5  ;;  %vm2023_vm10 = vcmp.gt.f32.partialorder %v2007_v5, 0.0  ;;  %v2040_v60 = vmul.f32 0.2, %v2008_v15 }
 0x265   :  { %v2818_v34 = vpop.eup %2817  ;;  %v1897_v30 = vmul.f32 %v3920_v2, %v1785_v41  ;;  %v2106_v62 = vadd.f32 %v2105_v53, %v2104_v54  ;;  %v2086_v26 = vmul.f32 %v2070_v23, %v2054_v17  ;;  %v2107_v42 = vsel %vm1533_vm0, %v2085_v63, 0.0  ;;  %v2074_v54 = vld [vmem:[%s3875_s4 + $0x60] sm:$0xff]  ;;  %v2077_v23 = vld [vmem:[%s3875_s4 + $0x78] sm:$0xff] }
 0x266   :  { %v1786_v44 = vmul.f32 %v2818_v34, %v1738_v33  ;;  %vm2024_vm11 = vcmp.gt.f32.partialorder %v2008_v15, 0.0  ;;  %v2055_v19 = vsel %vm2023_vm10, %v2007_v5, %v2039_v10  ;;  %v1740_v43 = vsub.f32 %v3923_v16, %v3748_v39  ;;  %v3924_v39 = vld [vmem:[#allocation7_spill] sm:$0xff]  ;;  %v2076_v10 = vld [vmem:[%s3875_s4 + $0x70] sm:$0xff] }
 0x267   :  { %v2009_v13 = vadd.f32 %v3921_v48, %v1897_v30  ;;  %v2108_v58 = vadd.f32 %v2107_v42, %v2106_v62  ;;  %v2056_v22 = vsel %vm2024_vm11, %v2008_v15, %v2040_v60  ;;  %v2087_v38 = vmul.f32 %v2071_v21, %v2055_v19 }
 0x268   :  { %v2109_v25 = vsel %vm1533_vm0, %v2086_v26, 0.0  ;;  %v1741_v59 = vsub.f32 %v3924_v39, %v3794_v35  ;;  %vm2133_vm2 = vcmask 254976  }
 0x269   :  { %v2041_v40 = vmul.f32 0.2, %v2009_v13  ;;  %vm2025_vm12 = vcmp.gt.f32.partialorder %v2009_v13, 0.0  ;;  %v2110_v56 = vadd.f32 %v2109_v25, %v2108_v58 }
 0x26b   :  { %v2820_v12 = vpop.eup %2819  ;;  %v2057_v41 = vsel %vm2025_vm12, %v2009_v13, %v2041_v40 }
 0x26c   :  { %v1788_v55 = vmul.f32 %v2820_v12, %v1740_v43 }
 0x26e   :  { %v1900_v61 = vmul.f32 %v3796_v4, %v1788_v55 }
 0x270   :  { %v1575_v52 = vpop.xlane.xlu1 %1574 }
 0x271   :  { %v3800_v24 = vmul.f32 0.03125, %v1575_v52  ;;  %v1898_v52 = vmul.f32 %v3922_v50, %v1786_v44 }
 0x273   :  { %v1691_v36 = vmul.f32 %v3800_v24, %v3800_v24  ;;  %v2010_v29 = vadd.f32 %v3780_v9, %v1898_v52  ;;  %v1739_v14 = vsub.f32 %v3925_v20, %v3800_v24  ;;  %v3926_v24 = vld [vmem:[#allocation21_spill] sm:$0xff] }
 0x274   :  { %v1645_v32 = vpop.xlane.xlu1 %1644 }
 0x275   :  { %v1677_v37 = vmul.f32 0.03125, %v1645_v32  ;;  %v1639_v46 = vpop.xlane.xlu0 %1638  ;;  %v2042_v9 = vmul.f32 0.2, %v2010_v29  ;;  %vm2026_vm13 = vcmp.gt.f32.partialorder %v2010_v29, 0.0 }
 0x276   :  { %v1675_v7 = vmul.f32 0.03125, %v1639_v46 }
 0x277   :  { %v1709_v45 = vsub.f32 %v1677_v37, %v1693_v6  ;;  %v2088_v6 = vmul.f32 %v2072_v3, %v2056_v22  ;;  %v2111_v37 = vsel %vm1533_vm0, %v2087_v38, 0.0  ;;  %v2058_v34 = vsel %vm2026_vm13, %v2010_v29, %v2042_v9  ;;  %v2131_v22 = vld [vmem:[%s3876_s5] sm:$0x3] }
 0x278   :  { %v1707_v28 = vsub.f32 %v1675_v7, %v1691_v36  ;;  %v1986_v47 = vpop.permute.xlu1 %1985  ;;  %v2073_v36 = vld [vmem:[%s3875_s4 + $0x58] sm:$0xff]  ;;  %v2112_v7 = vadd.f32 %v2111_v37, %v2110_v56  ;;  %v2090_v17 = vmul.f32 %v2074_v54, %v2058_v34 }
 0x279   :  { %v1725_v27 = vmax.f32 %v1709_v45, 0.0  ;;  %v2089_v35 = vmul.f32 %v2073_v36, %v2057_v41  ;;  %v2113_v45 = vsel %vm1533_vm0, %v2088_v6, 0.0 }
 0x27a   :  { %v1723_v49 = vmax.f32 %v1707_v28, 0.0  ;;  %v2114_v18 = vadd.f32 %v2113_v45, %v2112_v7 }
 0x27b   :  { %v1757_v31 = vadd.f32 1e-05, %v1725_v27  ;;  %v2115_v2 = vsel %vm1533_vm0, %v2089_v35, 0.0 }
 0x27c   :  { %v1755_v57 = vadd.f32 1e-05, %v1723_v49  ;;  %v1991_v0 = vpop.permute.xlu1 %1990  ;;  %v2075_v49 = vld [vmem:[%s3875_s4 + $0x68] sm:$0xff]  ;;  %v2116_v53 = vadd.f32 %v2115_v2, %v2114_v18 }
 0x27d   :  { %2821 = vrsqrt.f32 %v1757_v31  ;;  %v1884_v32 = vpop.permute.xlu0 %1883  ;;  %v2012_v8 = vadd.f32 %v1991_v0, %v1900_v61 }
 0x27e   :  { %2823 = vrsqrt.f32 %v1755_v57  ;;  %v2117_v57 = vsel %vm1533_vm0, %v2090_v17, 0.0 }
 0x27f   :  { %v2044_v15 = vmul.f32 0.2, %v2012_v8  ;;  %vm2028_vm14 = vcmp.gt.f32.partialorder %v2012_v8, 0.0  ;;  %v2118_v13 = vadd.f32 %v2117_v57, %v2116_v53 }
 0x281   :  { %v1996_v1 = vpop.permute.xlu0 %1995  ;;  %v2060_v44 = vsel %vm2028_vm14, %v2012_v8, %v2044_v15 }
 0x282   :  { %v2092_v48 = vmul.f32 %v2076_v10, %v2060_v44 }
 0x284   :  { %v2121_v50 = vsel %vm1533_vm0, %v2092_v48, 0.0 }
 0x287   :  { %v2822_v46 = vpop.eup %2821 }
 0x288   :  { %v2824_v4 = vpop.eup %2823  ;;  %v1789_v5 = vmul.f32 %v2822_v46, %v1741_v59 }
 0x289   :  { %v1787_v51 = vmul.f32 %v2824_v4, %v1739_v14 }
 0x28a   :  { %v1901_v11 = vmul.f32 %v1884_v32, %v1789_v5 }
 0x28b   :  { %v1899_v28 = vmul.f32 %v3926_v24, %v1787_v51 }
 0x28c   :  { %v2013_v33 = vadd.f32 %v1996_v1, %v1901_v11 }
 0x28d   :  { %v2011_v27 = vadd.f32 %v1986_v47, %v1899_v28 }
 0x28e   :  { %vm2029_vm15 = vcmp.gt.f32.partialorder %v2013_v33, 0.0  ;;  %v2045_v30 = vmul.f32 0.2, %v2013_v33 }
 0x28f   :  { %vm2027_vm1 = vcmp.gt.f32.partialorder %v2011_v27, 0.0  ;;  %v2043_v63 = vmul.f32 0.2, %v2011_v27 }
 0x290   :  { %v2061_v62 = vsel %vm2029_vm15, %v2013_v33, %v2045_v30 }
 0x291   :  { %v2059_v31 = vsel %vm2027_vm1, %v2011_v27, %v2043_v63  ;;  %v2093_v26 = vmul.f32 %v2077_v23, %v2061_v62 }
 0x292   :  { %v2091_v60 = vmul.f32 %v2075_v49, %v2059_v31 }
 0x293   :  { %v2123_v21 = vsel %vm1533_vm0, %v2093_v26, 0.0 }
 0x294   :  { %v2119_v47 = vsel %vm1533_vm0, %v2091_v60, 0.0  ;;  %vm2143_vm0 = vcmask 1024  }
 0x295   :  { %v2120_v42 = vadd.f32 %v2119_v47, %v2118_v13 }
 0x297   :  { %v2122_v52 = vadd.f32 %v2121_v50, %v2120_v42 }
 0x299   :  { %v2124_v19 = vadd.f32 %v2123_v21, %v2122_v52 }
 0x29b   :  { %v2125_v58 = vrot.slane %v2124_v19, 4 }
 0x29d   :  { %v2126_v12 = vadd.f32 %v2125_v58, %v2124_v19 }
 0x29f   :  { %v2127_v16 = vrot.slane %v2126_v12, 2 }
 0x2a1   :  { %v2128_v43 = vadd.f32 %v2127_v16, %v2126_v12 }
 0x2a3   :  { %v2129_v40 = vrot.slane %v2128_v43, 1 }
 0x2a5   :  { %v2130_v38 = vadd.f32 %v2129_v40, %v2128_v43 }
 0x2a7   :  { %v2132_v25 = vmul.f32 %v2131_v22, %v2130_v38 }
 0x2a9   :  { %v2134_v29 = vsel %vm2133_vm2, %v2132_v25, 0.0 }
 0x2aa   :  { %2135 = vadd.xlane.f32.xlu1 %v2134_v29 }
 0x337   :  { %v2136_v55 = vpop.xlane.xlu1 %2135 }
 0x338   :  { %v2293_v3 = vmul.f32 -1.442695, %v2136_v55 }
 0x33a   :  { %2825 = vpow2.f32 %v2293_v3 }
 0x344   :  { %v2826_v56 = vpop.eup %2825 }
 0x345   :  { %v2140_v0 = vadd.f32 1.0, %v2826_v56 }
 0x347   :  { %2827 = vrcp.f32 %v2140_v0 }
 0x351   :  { %v2828_v61 = vpop.eup %2827 }
 0x352   :  { %2144 = vst.msk [vmem:[%s3877_s6] sm:$0x3] %vm2143_vm0, %v2828_v61 }

</bundles_post_ra>
